<compile_context>
chip_gen: v7x
topology: tpu7x:2x2x1
jax: 0.10.0
libtpu: 0.0.40
codegen_flags: <defaults>
</compile_context>

<pallas_src>
import math
import functools

import jax
import jax.numpy as jnp
from jax.experimental import pallas as pl
from jax.experimental.pallas import tpu as pltpu

_NEG = -1e30  # additive mask: exp(_NEG - m) underflows to exactly 0.0 in f32


# ----------------------------------------------------------------------------
# in-kernel math helpers
# ----------------------------------------------------------------------------

def _gelu(x):
    # tanh-approximate GELU (VPU/EUP friendly).
    # TODO(synk): PyTorch nn.GELU() default is the exact erf form (~3e-4 abs diff).
    c = math.sqrt(2.0 / math.pi)
    return 0.5 * x * (1.0 + jnp.tanh(c * (x + 0.044715 * x * x * x)))


def _layernorm(x, gamma, beta, eps=1e-5):
    mean = jnp.mean(x, axis=-1, keepdims=True)
    xc = x - mean
    var = jnp.mean(xc * xc, axis=-1, keepdims=True)
    return xc * jax.lax.rsqrt(var + eps) * gamma + beta


def _mha_grouped(q, kv, mask_add, w_refs, n_heads, scale, cdt):
    """Multi-head attention on 2-D row slabs with an additive group mask.

    q        : (Lq, D) f32 query rows (many independent groups packed together)
    kv       : (Lk, D) f32 key/value rows
    mask_add : (Lq, Lk) additive mask (0 within a group, -1e30 across groups)
    w_refs   : [wq(H,D,E), bq(H,1,E), wk, bk, wv(H,D,Ev), bv, wo(H,Ev,Dm), bo(1,Dm)]
    """
    wq, bq, wk, bk, wv, bv, wo, bo = w_refs
    d_out = wo.shape[-1]
    qc = q.astype(cdt)
    kvc = kv.astype(cdt)

    def head_body(h, acc):  # fori_loop keeps one head's working set live at a time
        Qh = jnp.dot(qc, wq[h], preferred_element_type=jnp.float32) + bq[h]   # (Lq, E)
        Kh = jnp.dot(kvc, wk[h], preferred_element_type=jnp.float32) + bk[h]  # (Lk, E)
        Vh = jnp.dot(kvc, wv[h], preferred_element_type=jnp.float32) + bv[h]  # (Lk, Ev)
        # Q @ K^T via contracting dims (no explicit transpose / relayout)
        s = jax.lax.dot_general(Qh.astype(cdt), Kh.astype(cdt),
                                (((1,), (1,)), ((), ())),
                                preferred_element_type=jnp.float32) * scale + mask_add
        m = jnp.max(s, axis=-1, keepdims=True)
        e = jnp.exp(s - m)
        a = e * pl.reciprocal(jnp.sum(e, axis=-1, keepdims=True), approx=True)
        oh = jnp.dot(a.astype(cdt), Vh.astype(cdt),
                     preferred_element_type=jnp.float32)                       # (Lq, Ev)
        # fused per-head output projection (no lane-axis concat)
        return acc + jnp.dot(oh.astype(cdt), wo[h],
                             preferred_element_type=jnp.float32)               # (Lq, Dm)

    acc0 = jnp.zeros((q.shape[0], d_out), jnp.float32)
    acc = jax.lax.fori_loop(0, n_heads, head_body, acc0)
    return acc + bo[...]


def _mlp(h, w1, b1, w2, b2, cdt):
    f = jnp.dot(h.astype(cdt), w1[...], preferred_element_type=jnp.float32) + b1[...]
    f = _gelu(f)
    return jnp.dot(f.astype(cdt), w2[...], preferred_element_type=jnp.float32) + b2[...]


# ----------------------------------------------------------------------------
# the fully fused TwoStageAttention kernel
# ----------------------------------------------------------------------------

def _tsa_kernel(*refs, n_heads, scale_t, scale_s, scale_r, compute_dtype):
    (x_ref, router_ref,
     gt_col, gt_row, gs_col, gs_row, gr_col, gr_row) = refs[:8]
    tw = refs[8:16]      # time_attention   [wq,bq,wk,bk,wv,bv,wo,bo]
    sw = refs[16:24]     # dim_sender       [...]
    rw = refs[24:32]     # dim_receiver     [...]
    (g1, be1, w1a, b1a, w1b, b1b, g2, be2,
     g3, be3, w2a, b2a, w2b, b2b, g4, be4) = refs[32:48]
    out_ref = refs[48]

    cdt = compute_dtype
    x = x_ref[...].astype(jnp.float32)            # (RB, D) rows ordered (b, t, seg)
    router = router_ref[...].astype(jnp.float32)  # (F,  D) rows ordered (b, seg, f)

    # block-diagonal group masks (groups precomputed on the host, no in-kernel
    # iota / integer division needed)
    mask_t = jnp.where(gt_col[...] == gt_row[...], 0.0, _NEG)   # (RB, RB) time groups
    mask_s = jnp.where(gr_col[...] == gs_row[...], 0.0, _NEG)   # (F,  RB) router->send
    mask_r = jnp.where(gs_col[...] == gr_row[...], 0.0, _NEG)   # (RB, F)  send->buffer

    # ---- stage 1: cross-time attention + add&norm + MLP1 + add&norm --------
    attn = _mha_grouped(x, x, mask_t, tw, n_heads, scale_t, cdt)
    h = _layernorm(x + attn, g1[...], be1[...])                    # dropout = identity (eval)
    h = _layernorm(h + _mlp(h, w1a, b1a, w1b, b1b, cdt), g2[...], be2[...])

    # ---- stage 2: router cross-dimension attention (sender -> receiver) ----
    buf = _mha_grouped(router, h, mask_s, sw, n_heads, scale_s, cdt)   # (F, D) dim_buffer
    recv = _mha_grouped(h, buf, mask_r, rw, n_heads, scale_r, cdt)     # (RB, D) dim_receive
    h2 = _layernorm(h + recv, g3[...], be3[...])
    h2 = _layernorm(h2 + _mlp(h2, w2a, b2a, w2b, b2b, cdt), g4[...], be4[...])

    out_ref[...] = h2.astype(out_ref.dtype)   # rows already in (b, t, seg) order


# ----------------------------------------------------------------------------
# host-side wrapper
# ----------------------------------------------------------------------------

def _prep_attn_weights(p, n_heads, mxu_dtype):
    """Head-major weight layouts (H, D, E) / (H, Ev, D)."""
    D, HE = p["wq"].shape
    HEv = p["wv"].shape[1]
    E, Ev = HE // n_heads, HEv // n_heads
    wq = p["wq"].reshape(D, n_heads, E).transpose(1, 0, 2)
    wk = p["wk"].reshape(D, n_heads, E).transpose(1, 0, 2)
    wv = p["wv"].reshape(D, n_heads, Ev).transpose(1, 0, 2)
    wo = p["wo"].reshape(n_heads, Ev, D)
    if mxu_dtype is not None:
        wq, wk, wv, wo = (w.astype(mxu_dtype) for w in (wq, wk, wv, wo))
    bq = p["bq"].reshape(n_heads, 1, E)
    bk = p["bk"].reshape(n_heads, 1, E)
    bv = p["bv"].reshape(n_heads, 1, Ev)
    bo = p["bo"].reshape(1, D)
    return [wq, bq, wk, bk, wv, bv, wo, bo], E


def _pick_batch_block(B, rows_per_batch, target_rows):
    """Largest divisor of B whose row block <= target, keeping >=2 grid steps
    when possible so both v7x TensorCores get work."""
    cap = max(1, target_rows // max(rows_per_batch, 1))
    bb = 1
    for d in range(1, B + 1):
        if B % d == 0 and d <= cap:
            bb = d
    while bb > 1 and (B // bb) < 2:
        nd = bb - 1
        while nd > 1 and B % nd:
            nd -= 1
        bb = nd
    return bb


def two_stage_attention_forward(x, params, n_heads, *, target_rows=512, mxu_dtype=None):
    """x: (B, ts_d, seg_num, d_model) -> (B, ts_d, seg_num, d_model)."""
    B, T, Sg, D = x.shape
    factor = params["router"].shape[1]
    R = T * Sg
    BB = _pick_batch_block(B, R, target_rows)
    RB = BB * R                      # rows per grid step (block of whole batches)
    F = BB * Sg * factor             # router rows per grid step
    cdt = mxu_dtype if mxu_dtype is not None else jnp.float32

    x2 = x.reshape(B * R, D)                             # free reshape (contiguous)
    router = params["router"].reshape(Sg * factor, D)    # NOT tiled B times
    if BB > 1:
        router = jnp.tile(router, (BB, 1))               # only BB copies, resident

    # host-precomputed group ids (row ordering within a block is (b_local, t, seg))
    r_idx = jnp.arange(RB, dtype=jnp.int32)
    gt = r_idx // Sg                                     # time group  = b_local*T + t
    gs = (r_idx // R) * Sg + (r_idx % Sg)                # dim  group  = b_local*Sg + seg
    f_idx = jnp.arange(F, dtype=jnp.int32)
    gr = f_idx // factor                                 # router row group

    tw, E_t = _prep_attn_weights(params["time_attn"], n_heads, mxu_dtype)
    sw, E_s = _prep_attn_weights(params["dim_sender"], n_heads, mxu_dtype)
    rw, E_r = _prep_attn_weights(params["dim_receiver"], n_heads, mxu_dtype)

    cast_w = (lambda w: w.astype(mxu_dtype)) if mxu_dtype is not None else (lambda w: w)
    g1, be1 = params["norm1"]; g2, be2 = params["norm2"]
    g3, be3 = params["norm3"]; g4, be4 = params["norm4"]
    m1, m2 = params["mlp1"], params["mlp2"]

    const_inputs = (
        [router,
         gt.reshape(RB, 1), gt.reshape(1, RB),
         gs.reshape(RB, 1), gs.reshape(1, RB),
         gr.reshape(F, 1), gr.reshape(1, F)]
        + tw + sw + rw
        + [g1, be1, cast_w(m1["w1"]), m1["b1"], cast_w(m1["w2"]), m1["b2"], g2, be2,
           g3, be3, cast_w(m2["w1"]), m2["b1"], cast_w(m2["w2"]), m2["b2"], g4, be4])

    def const_spec(a):
        nd = a.ndim
        return pl.BlockSpec(a.shape, lambda i, _nd=nd: (0,) * _nd)

    kernel = functools.partial(
        _tsa_kernel, n_heads=n_heads,
        scale_t=1.0 / math.sqrt(E_t), scale_s=1.0 / math.sqrt(E_s),
        scale_r=1.0 / math.sqrt(E_r), compute_dtype=cdt)

    out = pl.pallas_call(
        kernel,
        out_shape=jax.ShapeDtypeStruct((B * R, D), x.dtype),
        grid_spec=pltpu.PrefetchScalarGridSpec(
            num_scalar_prefetch=0,
            grid=(B // BB,),
            in_specs=[pl.BlockSpec((RB, D), lambda i: (i, 0))]
                     + [const_spec(a) for a in const_inputs],
            out_specs=pl.BlockSpec((RB, D), lambda i: (i, 0)),
        ),
        compiler_params=pltpu.CompilerParams(
            dimension_semantics=("parallel",)),
    )(x2, *const_inputs)

    # rows are already ordered (b, t, seg) -> final layout with a free reshape
    return out.reshape(B, T, Sg, D)
    # TODO(synk): attn_mask / tau / delta forward args are unused by
    # FullAttention(mask_flag=False); dropout layers are identity (eval mode).


# ----------------------------------------------------------------------------
# parameter init (mirrors the PyTorch module structure)
# ----------------------------------------------------------------------------

def init_two_stage_params(key, seg_num, factor, d_model, n_heads,
                          d_ff=None, d_keys=None, d_values=None):
    d_ff = d_ff or 4 * d_model
    d_keys = d_keys or d_model // n_heads
    d_values = d_values or d_model // n_heads
    ks = jax.random.split(key, 10)

    def linear(k, fan_in, fan_out):
        kw, kb = jax.random.split(k)
        bound = 1.0 / math.sqrt(fan_in)
        w = jax.random.uniform(kw, (fan_in, fan_out), jnp.float32, -bound, bound)
        b = jax.random.uniform(kb, (1, fan_out), jnp.float32, -bound, bound)
        return w, b

    def attn_params(k):
        k1, k2, k3, k4 = jax.random.split(k, 4)
        wq, bq = linear(k1, d_model, d_keys * n_heads)
        wk, bk = linear(k2, d_model, d_keys * n_heads)
        wv, bv = linear(k3, d_model, d_values * n_heads)
        wo, bo = linear(k4, d_values * n_heads, d_model)
        return dict(wq=wq, bq=bq, wk=wk, bk=bk, wv=wv, bv=bv, wo=wo, bo=bo)

    def mlp_params(k):
        k1, k2 = jax.random.split(k)
        w1, b1 = linear(k1, d_model, d_ff)
        w2, b2 = linear(k2, d_ff, d_model)
        return dict(w1=w1, b1=b1, w2=w2, b2=b2)

    def norm_params(k):
        kg, kb = jax.random.split(k)
        gamma = 1.0 + 0.1 * jax.random.normal(kg, (1, d_model), jnp.float32)
        beta = 0.1 * jax.random.normal(kb, (1, d_model), jnp.float32)
        return (gamma, beta)

    return dict(
        time_attn=attn_params(ks[0]),
        dim_sender=attn_params(ks[1]),
        dim_receiver=attn_params(ks[2]),
        router=jax.random.normal(ks[3], (seg_num, factor, d_model), jnp.float32),
        mlp1=mlp_params(ks[4]),
        mlp2=mlp_params(ks[5]),
        norm1=norm_params(ks[6]),
        norm2=norm_params(ks[7]),
        norm3=norm_params(ks[8]),
        norm4=norm_params(ks[9]),
    )


# ----------------------------------------------------------------------------
# pure-JAX reference (mirrors the PyTorch module, eval mode)
# ----------------------------------------------------------------------------

def _reference_two_stage(x, params, n_heads):
    B, T, Sg, D = x.shape

    def attn(q, k, v, p):
        HE = p["wq"].shape[1]
        HEv = p["wv"].shape[1]
        E = HE // n_heads
        Ev = HEv // n_heads
        Bq, L, _ = q.shape
        S = k.shape[1]
        Q = (q @ p["wq"] + p["bq"]).reshape(Bq, L, n_heads, E)
        K = (k @ p["wk"] + p["bk"]).reshape(Bq, S, n_heads, E)
        V = (v @ p["wv"] + p["bv"]).reshape(Bq, S, n_heads, Ev)
        scores = jnp.einsum("blhe,bshe->bhls", Q, K) / math.sqrt(E)
        A = jax.nn.softmax(scores, axis=-1)
        O = jnp.einsum("bhls,bshd->blhd", A, V).reshape(Bq, L, n_heads * Ev)
        return O @ p["wo"] + p["bo"]

    def mlp(h, p):
        return _gelu(h @ p["w1"] + p["b1"]) @ p["w2"] + p["b2"]

    time_in = x.reshape(B * T, Sg, D)
    time_out = attn(time_in, time_in, time_in, params["time_attn"])
    dim_in = _layernorm(time_in + time_out, *params["norm1"])
    dim_in = _layernorm(dim_in + mlp(dim_in, params["mlp1"]), *params["norm2"])

    dim_send = dim_in.reshape(B, T, Sg, D).transpose(0, 2, 1, 3).reshape(B * Sg, T, D)
    batch_router = jnp.tile(params["router"], (B, 1, 1))
    dim_buffer = attn(batch_router, dim_send, dim_send, params["dim_sender"])
    dim_receive = attn(dim_send, dim_buffer, dim_buffer, params["dim_receiver"])
    dim_enc = _layernorm(dim_send + dim_receive, *params["norm3"])
    dim_enc = _layernorm(dim_enc + mlp(dim_enc, params["mlp2"]), *params["norm4"])
    return dim_enc.reshape(B, Sg, T, D).transpose(0, 2, 1, 3)


# ----------------------------------------------------------------------------
# test
# ----------------------------------------------------------------------------

if __name__ == "__main__":
    B, ts_d, seg_num, d_model, n_heads, factor = 2, 4, 8, 32, 4, 2

    key = jax.random.PRNGKey(0)
    k_x, k_p = jax.random.split(key)
    x = jax.random.normal(k_x, (B, ts_d, seg_num, d_model), jnp.float32)
    params = init_two_stage_params(k_p, seg_num, factor, d_model, n_heads)

    out = two_stage_attention_forward(x, params, n_heads)
    out = jax.block_until_ready(out)

    ref = _reference_two_stage(x, params, n_heads)
    assert out.shape == x.shape
    max_err = float(jnp.max(jnp.abs(out - ref)))
    assert jnp.allclose(out, ref, atol=5e-3, rtol=5e-3), max_err

    print("KERNEL_OK")
</pallas_src>

<mosaic_0001>
module attributes {stable_mosaic.version = 11 : i64} {
  func.func @_tsa_kernel(%arg0: i32, %arg1: memref<32x32xf32, #tpu.memory_space<vmem>>, %arg2: memref<16x32xf32, #tpu.memory_space<vmem>>, %arg3: memref<32x1xi32, #tpu.memory_space<vmem>>, %arg4: memref<1x32xi32, #tpu.memory_space<vmem>>, %arg5: memref<32x1xi32, #tpu.memory_space<vmem>>, %arg6: memref<1x32xi32, #tpu.memory_space<vmem>>, %arg7: memref<16x1xi32, #tpu.memory_space<vmem>>, %arg8: memref<1x16xi32, #tpu.memory_space<vmem>>, %arg9: memref<4x32x8xf32, #tpu.memory_space<vmem>>, %arg10: memref<4x1x8xf32, #tpu.memory_space<vmem>>, %arg11: memref<4x32x8xf32, #tpu.memory_space<vmem>>, %arg12: memref<4x1x8xf32, #tpu.memory_space<vmem>>, %arg13: memref<4x32x8xf32, #tpu.memory_space<vmem>>, %arg14: memref<4x1x8xf32, #tpu.memory_space<vmem>>, %arg15: memref<4x8x32xf32, #tpu.memory_space<vmem>>, %arg16: memref<1x32xf32, #tpu.memory_space<vmem>>, %arg17: memref<4x32x8xf32, #tpu.memory_space<vmem>>, %arg18: memref<4x1x8xf32, #tpu.memory_space<vmem>>, %arg19: memref<4x32x8xf32, #tpu.memory_space<vmem>>, %arg20: memref<4x1x8xf32, #tpu.memory_space<vmem>>, %arg21: memref<4x32x8xf32, #tpu.memory_space<vmem>>, %arg22: memref<4x1x8xf32, #tpu.memory_space<vmem>>, %arg23: memref<4x8x32xf32, #tpu.memory_space<vmem>>, %arg24: memref<1x32xf32, #tpu.memory_space<vmem>>, %arg25: memref<4x32x8xf32, #tpu.memory_space<vmem>>, %arg26: memref<4x1x8xf32, #tpu.memory_space<vmem>>, %arg27: memref<4x32x8xf32, #tpu.memory_space<vmem>>, %arg28: memref<4x1x8xf32, #tpu.memory_space<vmem>>, %arg29: memref<4x32x8xf32, #tpu.memory_space<vmem>>, %arg30: memref<4x1x8xf32, #tpu.memory_space<vmem>>, %arg31: memref<4x8x32xf32, #tpu.memory_space<vmem>>, %arg32: memref<1x32xf32, #tpu.memory_space<vmem>>, %arg33: memref<1x32xf32, #tpu.memory_space<vmem>>, %arg34: memref<1x32xf32, #tpu.memory_space<vmem>>, %arg35: memref<32x128xf32, #tpu.memory_space<vmem>>, %arg36: memref<1x128xf32, #tpu.memory_space<vmem>>, %arg37: memref<128x32xf32, #tpu.memory_space<vmem>>, %arg38: memref<1x32xf32, #tpu.memory_space<vmem>>, %arg39: memref<1x32xf32, #tpu.memory_space<vmem>>, %arg40: memref<1x32xf32, #tpu.memory_space<vmem>>, %arg41: memref<1x32xf32, #tpu.memory_space<vmem>>, %arg42: memref<1x32xf32, #tpu.memory_space<vmem>>, %arg43: memref<32x128xf32, #tpu.memory_space<vmem>>, %arg44: memref<1x128xf32, #tpu.memory_space<vmem>>, %arg45: memref<128x32xf32, #tpu.memory_space<vmem>>, %arg46: memref<1x32xf32, #tpu.memory_space<vmem>>, %arg47: memref<1x32xf32, #tpu.memory_space<vmem>>, %arg48: memref<1x32xf32, #tpu.memory_space<vmem>>, %arg49: memref<32x32xf32, #tpu.memory_space<vmem>>) attributes {dimension_semantics = [#tpu.dimension_semantics<parallel>], iteration_bounds = array<i64: 2>, scalar_prefetch = 0 : i64, scratch_operands = 0 : i64, tpu.core_type = #tpu.core_type<tc>, window_params = [{transform_indices = @transform_0, window_bounds = array<i64: 32, 32>}, {pipeline_mode = #tpu.pipeline_mode<synchronous>, transform_indices = @transform_1, window_bounds = array<i64: 16, 32>}, {pipeline_mode = #tpu.pipeline_mode<synchronous>, transform_indices = @transform_2, window_bounds = array<i64: 32, 1>}, {pipeline_mode = #tpu.pipeline_mode<synchronous>, transform_indices = @transform_3, window_bounds = array<i64: 1, 32>}, {pipeline_mode = #tpu.pipeline_mode<synchronous>, transform_indices = @transform_4, window_bounds = array<i64: 32, 1>}, {pipeline_mode = #tpu.pipeline_mode<synchronous>, transform_indices = @transform_5, window_bounds = array<i64: 1, 32>}, {pipeline_mode = #tpu.pipeline_mode<synchronous>, transform_indices = @transform_6, window_bounds = array<i64: 16, 1>}, {pipeline_mode = #tpu.pipeline_mode<synchronous>, transform_indices = @transform_7, window_bounds = array<i64: 1, 16>}, {pipeline_mode = #tpu.pipeline_mode<synchronous>, transform_indices = @transform_8, window_bounds = array<i64: 4, 32, 8>}, {pipeline_mode = #tpu.pipeline_mode<synchronous>, transform_indices = @transform_9, window_bounds = array<i64: 4, 1, 8>}, {pipeline_mode = #tpu.pipeline_mode<synchronous>, transform_indices = @transform_10, window_bounds = array<i64: 4, 32, 8>}, {pipeline_mode = #tpu.pipeline_mode<synchronous>, transform_indices = @transform_11, window_bounds = array<i64: 4, 1, 8>}, {pipeline_mode = #tpu.pipeline_mode<synchronous>, transform_indices = @transform_12, window_bounds = array<i64: 4, 32, 8>}, {pipeline_mode = #tpu.pipeline_mode<synchronous>, transform_indices = @transform_13, window_bounds = array<i64: 4, 1, 8>}, {pipeline_mode = #tpu.pipeline_mode<synchronous>, transform_indices = @transform_14, window_bounds = array<i64: 4, 8, 32>}, {pipeline_mode = #tpu.pipeline_mode<synchronous>, transform_indices = @transform_15, window_bounds = array<i64: 1, 32>}, {pipeline_mode = #tpu.pipeline_mode<synchronous>, transform_indices = @transform_16, window_bounds = array<i64: 4, 32, 8>}, {pipeline_mode = #tpu.pipeline_mode<synchronous>, transform_indices = @transform_17, window_bounds = array<i64: 4, 1, 8>}, {pipeline_mode = #tpu.pipeline_mode<synchronous>, transform_indices = @transform_18, window_bounds = array<i64: 4, 32, 8>}, {pipeline_mode = #tpu.pipeline_mode<synchronous>, transform_indices = @transform_19, window_bounds = array<i64: 4, 1, 8>}, {pipeline_mode = #tpu.pipeline_mode<synchronous>, transform_indices = @transform_20, window_bounds = array<i64: 4, 32, 8>}, {pipeline_mode = #tpu.pipeline_mode<synchronous>, transform_indices = @transform_21, window_bounds = array<i64: 4, 1, 8>}, {pipeline_mode = #tpu.pipeline_mode<synchronous>, transform_indices = @transform_22, window_bounds = array<i64: 4, 8, 32>}, {pipeline_mode = #tpu.pipeline_mode<synchronous>, transform_indices = @transform_23, window_bounds = array<i64: 1, 32>}, {pipeline_mode = #tpu.pipeline_mode<synchronous>, transform_indices = @transform_24, window_bounds = array<i64: 4, 32, 8>}, {pipeline_mode = #tpu.pipeline_mode<synchronous>, transform_indices = @transform_25, window_bounds = array<i64: 4, 1, 8>}, {pipeline_mode = #tpu.pipeline_mode<synchronous>, transform_indices = @transform_26, window_bounds = array<i64: 4, 32, 8>}, {pipeline_mode = #tpu.pipeline_mode<synchronous>, transform_indices = @transform_27, window_bounds = array<i64: 4, 1, 8>}, {pipeline_mode = #tpu.pipeline_mode<synchronous>, transform_indices = @transform_28, window_bounds = array<i64: 4, 32, 8>}, {pipeline_mode = #tpu.pipeline_mode<synchronous>, transform_indices = @transform_29, window_bounds = array<i64: 4, 1, 8>}, {pipeline_mode = #tpu.pipeline_mode<synchronous>, transform_indices = @transform_30, window_bounds = array<i64: 4, 8, 32>}, {pipeline_mode = #tpu.pipeline_mode<synchronous>, transform_indices = @transform_31, window_bounds = array<i64: 1, 32>}, {pipeline_mode = #tpu.pipeline_mode<synchronous>, transform_indices = @transform_32, window_bounds = array<i64: 1, 32>}, {pipeline_mode = #tpu.pipeline_mode<synchronous>, transform_indices = @transform_33, window_bounds = array<i64: 1, 32>}, {pipeline_mode = #tpu.pipeline_mode<synchronous>, transform_indices = @transform_34, window_bounds = array<i64: 32, 128>}, {pipeline_mode = #tpu.pipeline_mode<synchronous>, transform_indices = @transform_35, window_bounds = array<i64: 1, 128>}, {pipeline_mode = #tpu.pipeline_mode<synchronous>, transform_indices = @transform_36, window_bounds = array<i64: 128, 32>}, {pipeline_mode = #tpu.pipeline_mode<synchronous>, transform_indices = @transform_37, window_bounds = array<i64: 1, 32>}, {pipeline_mode = #tpu.pipeline_mode<synchronous>, transform_indices = @transform_38, window_bounds = array<i64: 1, 32>}, {pipeline_mode = #tpu.pipeline_mode<synchronous>, transform_indices = @transform_39, window_bounds = array<i64: 1, 32>}, {pipeline_mode = #tpu.pipeline_mode<synchronous>, transform_indices = @transform_40, window_bounds = array<i64: 1, 32>}, {pipeline_mode = #tpu.pipeline_mode<synchronous>, transform_indices = @transform_41, window_bounds = array<i64: 1, 32>}, {pipeline_mode = #tpu.pipeline_mode<synchronous>, transform_indices = @transform_42, window_bounds = array<i64: 32, 128>}, {pipeline_mode = #tpu.pipeline_mode<synchronous>, transform_indices = @transform_43, window_bounds = array<i64: 1, 128>}, {pipeline_mode = #tpu.pipeline_mode<synchronous>, transform_indices = @transform_44, window_bounds = array<i64: 128, 32>}, {pipeline_mode = #tpu.pipeline_mode<synchronous>, transform_indices = @transform_45, window_bounds = array<i64: 1, 32>}, {pipeline_mode = #tpu.pipeline_mode<synchronous>, transform_indices = @transform_46, window_bounds = array<i64: 1, 32>}, {pipeline_mode = #tpu.pipeline_mode<synchronous>, transform_indices = @transform_47, window_bounds = array<i64: 1, 32>}, {transform_indices = @transform_48, window_bounds = array<i64: 32, 32>}]} {
    %c0 = arith.constant 0 : index
    %c0_0 = arith.constant 0 : index
    %0 = vector.load %arg1[%c0, %c0_0] : memref<32x32xf32, #tpu.memory_space<vmem>>, vector<32x32xf32>
    %c0_1 = arith.constant 0 : index
    %c0_2 = arith.constant 0 : index
    %1 = vector.load %arg2[%c0_1, %c0_2] : memref<16x32xf32, #tpu.memory_space<vmem>>, vector<16x32xf32>
    %c0_3 = arith.constant 0 : index
    %c0_4 = arith.constant 0 : index
    %2 = vector.load %arg3[%c0_3, %c0_4] : memref<32x1xi32, #tpu.memory_space<vmem>>, vector<32x1xi32>
    %c0_5 = arith.constant 0 : index
    %c0_6 = arith.constant 0 : index
    %3 = vector.load %arg4[%c0_5, %c0_6] : memref<1x32xi32, #tpu.memory_space<vmem>>, vector<1x32xi32>
    %4 = vector.broadcast %2 : vector<32x1xi32> to vector<32x32xi32>
    %5 = vector.broadcast %3 : vector<1x32xi32> to vector<32x32xi32>
    %6 = arith.cmpi eq, %4, %5 : vector<32x32xi32>
    %cst = arith.constant 0.000000e+00 : f32
    %cst_7 = arith.constant -1.000000e+30 : f32
    %7 = vector.broadcast %cst : f32 to vector<32x32xf32>
    %8 = vector.broadcast %cst_7 : f32 to vector<32x32xf32>
    %9 = arith.select %6, %7, %8 : vector<32x32xi1>, vector<32x32xf32>
    %c0_8 = arith.constant 0 : index
    %c0_9 = arith.constant 0 : index
    %10 = vector.load %arg7[%c0_8, %c0_9] : memref<16x1xi32, #tpu.memory_space<vmem>>, vector<16x1xi32>
    %c0_10 = arith.constant 0 : index
    %c0_11 = arith.constant 0 : index
    %11 = vector.load %arg6[%c0_10, %c0_11] : memref<1x32xi32, #tpu.memory_space<vmem>>, vector<1x32xi32>
    %12 = vector.broadcast %10 : vector<16x1xi32> to vector<16x32xi32>
    %13 = vector.broadcast %11 : vector<1x32xi32> to vector<16x32xi32>
    %14 = arith.cmpi eq, %12, %13 : vector<16x32xi32>
    %cst_12 = arith.constant 0.000000e+00 : f32
    %cst_13 = arith.constant -1.000000e+30 : f32
    %15 = vector.broadcast %cst_12 : f32 to vector<16x32xf32>
    %16 = vector.broadcast %cst_13 : f32 to vector<16x32xf32>
    %17 = arith.select %14, %15, %16 : vector<16x32xi1>, vector<16x32xf32>
    %c0_14 = arith.constant 0 : index
    %c0_15 = arith.constant 0 : index
    %18 = vector.load %arg5[%c0_14, %c0_15] : memref<32x1xi32, #tpu.memory_space<vmem>>, vector<32x1xi32>
    %c0_16 = arith.constant 0 : index
    %c0_17 = arith.constant 0 : index
    %19 = vector.load %arg8[%c0_16, %c0_17] : memref<1x16xi32, #tpu.memory_space<vmem>>, vector<1x16xi32>
    %20 = vector.broadcast %18 : vector<32x1xi32> to vector<32x16xi32>
    %21 = vector.broadcast %19 : vector<1x16xi32> to vector<32x16xi32>
    %22 = arith.cmpi eq, %20, %21 : vector<32x16xi32>
    %cst_18 = arith.constant 0.000000e+00 : f32
    %cst_19 = arith.constant -1.000000e+30 : f32
    %23 = vector.broadcast %cst_18 : f32 to vector<32x16xf32>
    %24 = vector.broadcast %cst_19 : f32 to vector<32x16xf32>
    %25 = arith.select %22, %23, %24 : vector<32x16xi1>, vector<32x16xf32>
    %cst_20 = arith.constant 0.000000e+00 : f32
    %26 = vector.broadcast %cst_20 : f32 to vector<32x32xf32>
    %c0_i32 = arith.constant 0 : i32
    %c4_i32 = arith.constant 4 : i32
    %27 = arith.addi %c0_i32, %c4_i32 : i32
    %c1_i32 = arith.constant 1 : i32
    %28 = scf.for %arg50 = %c0_i32 to %27 step %c1_i32 iter_args(%arg51 = %26) -> (vector<32x32xf32>)  : i32 {
      %183 = arith.index_cast %arg50 : i32 to index
      %c0_104 = arith.constant 0 : index
      %c0_105 = arith.constant 0 : index
      %184 = vector.load %arg9[%183, %c0_104, %c0_105] : memref<4x32x8xf32, #tpu.memory_space<vmem>>, vector<1x32x8xf32>
      %185 = vector.shape_cast %184 : vector<1x32x8xf32> to vector<32x8xf32>
      %cst_106 = arith.constant dense<0.000000e+00> : vector<32x8xf32>
      %186 = tpu.matmul %0, %185, %cst_106 {dimension_numbers = #tpu.dot_dimension_numbers<[1], [0], [0], [1], [0, 0, 1, 1], [], []>} : vector<32x32xf32>, vector<32x8xf32>, vector<32x8xf32> -> vector<32x8xf32>
      %187 = arith.index_cast %arg50 : i32 to index
      %c0_107 = arith.constant 0 : index
      %c0_108 = arith.constant 0 : index
      %188 = vector.load %arg10[%187, %c0_107, %c0_108] : memref<4x1x8xf32, #tpu.memory_space<vmem>>, vector<1x1x8xf32>
      %189 = vector.shape_cast %188 : vector<1x1x8xf32> to vector<1x8xf32>
      %190 = vector.broadcast %189 : vector<1x8xf32> to vector<32x8xf32>
      %191 = arith.addf %186, %190 : vector<32x8xf32>
      %192 = arith.index_cast %arg50 : i32 to index
      %c0_109 = arith.constant 0 : index
      %c0_110 = arith.constant 0 : index
      %193 = vector.load %arg11[%192, %c0_109, %c0_110] : memref<4x32x8xf32, #tpu.memory_space<vmem>>, vector<1x32x8xf32>
      %194 = vector.shape_cast %193 : vector<1x32x8xf32> to vector<32x8xf32>
      %cst_111 = arith.constant dense<0.000000e+00> : vector<32x8xf32>
      %195 = tpu.matmul %0, %194, %cst_111 {dimension_numbers = #tpu.dot_dimension_numbers<[1], [0], [0], [1], [0, 0, 1, 1], [], []>} : vector<32x32xf32>, vector<32x8xf32>, vector<32x8xf32> -> vector<32x8xf32>
      %196 = arith.index_cast %arg50 : i32 to index
      %c0_112 = arith.constant 0 : index
      %c0_113 = arith.constant 0 : index
      %197 = vector.load %arg12[%196, %c0_112, %c0_113] : memref<4x1x8xf32, #tpu.memory_space<vmem>>, vector<1x1x8xf32>
      %198 = vector.shape_cast %197 : vector<1x1x8xf32> to vector<1x8xf32>
      %199 = vector.broadcast %198 : vector<1x8xf32> to vector<32x8xf32>
      %200 = arith.addf %195, %199 : vector<32x8xf32>
      %201 = arith.index_cast %arg50 : i32 to index
      %c0_114 = arith.constant 0 : index
      %c0_115 = arith.constant 0 : index
      %202 = vector.load %arg13[%201, %c0_114, %c0_115] : memref<4x32x8xf32, #tpu.memory_space<vmem>>, vector<1x32x8xf32>
      %203 = vector.shape_cast %202 : vector<1x32x8xf32> to vector<32x8xf32>
      %cst_116 = arith.constant dense<0.000000e+00> : vector<32x8xf32>
      %204 = tpu.matmul %0, %203, %cst_116 {dimension_numbers = #tpu.dot_dimension_numbers<[1], [0], [0], [1], [0, 0, 1, 1], [], []>} : vector<32x32xf32>, vector<32x8xf32>, vector<32x8xf32> -> vector<32x8xf32>
      %205 = arith.index_cast %arg50 : i32 to index
      %c0_117 = arith.constant 0 : index
      %c0_118 = arith.constant 0 : index
      %206 = vector.load %arg14[%205, %c0_117, %c0_118] : memref<4x1x8xf32, #tpu.memory_space<vmem>>, vector<1x1x8xf32>
      %207 = vector.shape_cast %206 : vector<1x1x8xf32> to vector<1x8xf32>
      %208 = vector.broadcast %207 : vector<1x8xf32> to vector<32x8xf32>
      %209 = arith.addf %204, %208 : vector<32x8xf32>
      %cst_119 = arith.constant dense<0.000000e+00> : vector<32x32xf32>
      %210 = tpu.matmul %191, %200, %cst_119 {dimension_numbers = #tpu.dot_dimension_numbers<[1], [1], [0], [0], [0, 0, 1, 0], [], []>} : vector<32x8xf32>, vector<32x8xf32>, vector<32x32xf32> -> vector<32x32xf32>
      %cst_120 = arith.constant 0.353553385 : f32
      %211 = vector.broadcast %cst_120 : f32 to vector<32x32xf32>
      %212 = arith.mulf %210, %211 : vector<32x32xf32>
      %213 = arith.addf %212, %9 : vector<32x32xf32>
      %cst_121 = arith.constant dense<0xFF800000> : vector<32xf32>
      %214 = vector.multi_reduction <maximumf>, %213, %cst_121 [1] : vector<32x32xf32> to vector<32xf32>
      %215 = vector.shape_cast %214 : vector<32xf32> to vector<32x1xf32>
      %216 = vector.broadcast %215 : vector<32x1xf32> to vector<32x32xf32>
      %217 = arith.subf %213, %216 : vector<32x32xf32>
      %218 = math.exp %217 : vector<32x32xf32>
      %cst_122 = arith.constant dense<0.000000e+00> : vector<32xf32>
      %219 = vector.multi_reduction <add>, %218, %cst_122 [1] : vector<32x32xf32> to vector<32xf32>
      %220 = vector.shape_cast %219 : vector<32xf32> to vector<32x1xf32>
      %221 = tpu.reciprocal %220 {approx = true} : vector<32x1xf32> -> vector<32x1xf32>
      %222 = vector.broadcast %221 : vector<32x1xf32> to vector<32x32xf32>
      %223 = arith.mulf %218, %222 : vector<32x32xf32>
      %cst_123 = arith.constant dense<0.000000e+00> : vector<32x8xf32>
      %224 = tpu.matmul %223, %209, %cst_123 {dimension_numbers = #tpu.dot_dimension_numbers<[1], [0], [0], [1], [0, 0, 1, 1], [], []>} : vector<32x32xf32>, vector<32x8xf32>, vector<32x8xf32> -> vector<32x8xf32>
      %225 = arith.index_cast %arg50 : i32 to index
      %c0_124 = arith.constant 0 : index
      %c0_125 = arith.constant 0 : index
      %226 = vector.load %arg15[%225, %c0_124, %c0_125] : memref<4x8x32xf32, #tpu.memory_space<vmem>>, vector<1x8x32xf32>
      %227 = vector.shape_cast %226 : vector<1x8x32xf32> to vector<8x32xf32>
      %cst_126 = arith.constant dense<0.000000e+00> : vector<32x32xf32>
      %228 = tpu.matmul %224, %227, %cst_126 {dimension_numbers = #tpu.dot_dimension_numbers<[1], [0], [0], [1], [0, 0, 1, 1], [], []>} : vector<32x8xf32>, vector<8x32xf32>, vector<32x32xf32> -> vector<32x32xf32>
      %229 = arith.addf %arg51, %228 : vector<32x32xf32>
      scf.yield %229 : vector<32x32xf32>
    }
    %c4_i32_21 = arith.constant 4 : i32
    %c0_22 = arith.constant 0 : index
    %c0_23 = arith.constant 0 : index
    %29 = vector.load %arg16[%c0_22, %c0_23] : memref<1x32xf32, #tpu.memory_space<vmem>>, vector<1x32xf32>
    %30 = vector.broadcast %29 : vector<1x32xf32> to vector<32x32xf32>
    %31 = arith.addf %28, %30 : vector<32x32xf32>
    %32 = arith.addf %0, %31 : vector<32x32xf32>
    %c0_24 = arith.constant 0 : index
    %c0_25 = arith.constant 0 : index
    %33 = vector.load %arg33[%c0_24, %c0_25] : memref<1x32xf32, #tpu.memory_space<vmem>>, vector<1x32xf32>
    %c0_26 = arith.constant 0 : index
    %c0_27 = arith.constant 0 : index
    %34 = vector.load %arg34[%c0_26, %c0_27] : memref<1x32xf32, #tpu.memory_space<vmem>>, vector<1x32xf32>
    %cst_28 = arith.constant dense<0.000000e+00> : vector<32xf32>
    %35 = vector.multi_reduction <add>, %32, %cst_28 [1] : vector<32x32xf32> to vector<32xf32>
    %36 = vector.shape_cast %35 : vector<32xf32> to vector<32x1xf32>
    %cst_29 = arith.constant 3.200000e+01 : f32
    %37 = vector.broadcast %cst_29 : f32 to vector<32x1xf32>
    %38 = arith.divf %36, %37 : vector<32x1xf32>
    %39 = vector.broadcast %38 : vector<32x1xf32> to vector<32x32xf32>
    %40 = arith.subf %32, %39 : vector<32x32xf32>
    %41 = arith.mulf %40, %40 : vector<32x32xf32>
    %cst_30 = arith.constant dense<0.000000e+00> : vector<32xf32>
    %42 = vector.multi_reduction <add>, %41, %cst_30 [1] : vector<32x32xf32> to vector<32xf32>
    %43 = vector.shape_cast %42 : vector<32xf32> to vector<32x1xf32>
    %cst_31 = arith.constant 3.200000e+01 : f32
    %44 = vector.broadcast %cst_31 : f32 to vector<32x1xf32>
    %45 = arith.divf %43, %44 : vector<32x1xf32>
    %cst_32 = arith.constant 9.99999974E-6 : f32
    %46 = vector.broadcast %cst_32 : f32 to vector<32x1xf32>
    %47 = arith.addf %45, %46 : vector<32x1xf32>
    %48 = math.rsqrt %47 : vector<32x1xf32>
    %49 = vector.broadcast %48 : vector<32x1xf32> to vector<32x32xf32>
    %50 = arith.mulf %40, %49 : vector<32x32xf32>
    %51 = vector.broadcast %33 : vector<1x32xf32> to vector<32x32xf32>
    %52 = arith.mulf %50, %51 : vector<32x32xf32>
    %53 = vector.broadcast %34 : vector<1x32xf32> to vector<32x32xf32>
    %54 = arith.addf %52, %53 : vector<32x32xf32>
    %c0_33 = arith.constant 0 : index
    %c0_34 = arith.constant 0 : index
    %55 = vector.load %arg35[%c0_33, %c0_34] : memref<32x128xf32, #tpu.memory_space<vmem>>, vector<32x128xf32>
    %cst_35 = arith.constant dense<0.000000e+00> : vector<32x128xf32>
    %56 = tpu.matmul %54, %55, %cst_35 {dimension_numbers = #tpu.dot_dimension_numbers<[1], [0], [0], [1], [0, 0, 1, 1], [], []>} : vector<32x32xf32>, vector<32x128xf32>, vector<32x128xf32> -> vector<32x128xf32>
    %c0_36 = arith.constant 0 : index
    %c0_37 = arith.constant 0 : index
    %57 = vector.load %arg36[%c0_36, %c0_37] : memref<1x128xf32, #tpu.memory_space<vmem>>, vector<1x128xf32>
    %58 = vector.broadcast %57 : vector<1x128xf32> to vector<32x128xf32>
    %59 = arith.addf %56, %58 : vector<32x128xf32>
    %cst_38 = arith.constant 5.000000e-01 : f32
    %60 = vector.broadcast %cst_38 : f32 to vector<32x128xf32>
    %61 = arith.mulf %60, %59 : vector<32x128xf32>
    %cst_39 = arith.constant 4.471500e-02 : f32
    %62 = vector.broadcast %cst_39 : f32 to vector<32x128xf32>
    %63 = arith.mulf %62, %59 : vector<32x128xf32>
    %64 = arith.mulf %63, %59 : vector<32x128xf32>
    %65 = arith.mulf %64, %59 : vector<32x128xf32>
    %66 = arith.addf %59, %65 : vector<32x128xf32>
    %cst_40 = arith.constant 0.797884583 : f32
    %67 = vector.broadcast %cst_40 : f32 to vector<32x128xf32>
    %68 = arith.mulf %67, %66 : vector<32x128xf32>
    %69 = math.tanh %68 : vector<32x128xf32>
    %cst_41 = arith.constant 1.000000e+00 : f32
    %70 = vector.broadcast %cst_41 : f32 to vector<32x128xf32>
    %71 = arith.addf %70, %69 : vector<32x128xf32>
    %72 = arith.mulf %61, %71 : vector<32x128xf32>
    %c0_42 = arith.constant 0 : index
    %c0_43 = arith.constant 0 : index
    %73 = vector.load %arg37[%c0_42, %c0_43] : memref<128x32xf32, #tpu.memory_space<vmem>>, vector<128x32xf32>
    %cst_44 = arith.constant dense<0.000000e+00> : vector<32x32xf32>
    %74 = tpu.matmul %72, %73, %cst_44 {dimension_numbers = #tpu.dot_dimension_numbers<[1], [0], [0], [1], [0, 0, 1, 1], [], []>} : vector<32x128xf32>, vector<128x32xf32>, vector<32x32xf32> -> vector<32x32xf32>
    %c0_45 = arith.constant 0 : index
    %c0_46 = arith.constant 0 : index
    %75 = vector.load %arg38[%c0_45, %c0_46] : memref<1x32xf32, #tpu.memory_space<vmem>>, vector<1x32xf32>
    %76 = vector.broadcast %75 : vector<1x32xf32> to vector<32x32xf32>
    %77 = arith.addf %74, %76 : vector<32x32xf32>
    %78 = arith.addf %54, %77 : vector<32x32xf32>
    %c0_47 = arith.constant 0 : index
    %c0_48 = arith.constant 0 : index
    %79 = vector.load %arg39[%c0_47, %c0_48] : memref<1x32xf32, #tpu.memory_space<vmem>>, vector<1x32xf32>
    %c0_49 = arith.constant 0 : index
    %c0_50 = arith.constant 0 : index
    %80 = vector.load %arg40[%c0_49, %c0_50] : memref<1x32xf32, #tpu.memory_space<vmem>>, vector<1x32xf32>
    %cst_51 = arith.constant dense<0.000000e+00> : vector<32xf32>
    %81 = vector.multi_reduction <add>, %78, %cst_51 [1] : vector<32x32xf32> to vector<32xf32>
    %82 = vector.shape_cast %81 : vector<32xf32> to vector<32x1xf32>
    %cst_52 = arith.constant 3.200000e+01 : f32
    %83 = vector.broadcast %cst_52 : f32 to vector<32x1xf32>
    %84 = arith.divf %82, %83 : vector<32x1xf32>
    %85 = vector.broadcast %84 : vector<32x1xf32> to vector<32x32xf32>
    %86 = arith.subf %78, %85 : vector<32x32xf32>
    %87 = arith.mulf %86, %86 : vector<32x32xf32>
    %cst_53 = arith.constant dense<0.000000e+00> : vector<32xf32>
    %88 = vector.multi_reduction <add>, %87, %cst_53 [1] : vector<32x32xf32> to vector<32xf32>
    %89 = vector.shape_cast %88 : vector<32xf32> to vector<32x1xf32>
    %cst_54 = arith.constant 3.200000e+01 : f32
    %90 = vector.broadcast %cst_54 : f32 to vector<32x1xf32>
    %91 = arith.divf %89, %90 : vector<32x1xf32>
    %cst_55 = arith.constant 9.99999974E-6 : f32
    %92 = vector.broadcast %cst_55 : f32 to vector<32x1xf32>
    %93 = arith.addf %91, %92 : vector<32x1xf32>
    %94 = math.rsqrt %93 : vector<32x1xf32>
    %95 = vector.broadcast %94 : vector<32x1xf32> to vector<32x32xf32>
    %96 = arith.mulf %86, %95 : vector<32x32xf32>
    %97 = vector.broadcast %79 : vector<1x32xf32> to vector<32x32xf32>
    %98 = arith.mulf %96, %97 : vector<32x32xf32>
    %99 = vector.broadcast %80 : vector<1x32xf32> to vector<32x32xf32>
    %100 = arith.addf %98, %99 : vector<32x32xf32>
    %cst_56 = arith.constant 0.000000e+00 : f32
    %101 = vector.broadcast %cst_56 : f32 to vector<16x32xf32>
    %c0_i32_57 = arith.constant 0 : i32
    %c4_i32_58 = arith.constant 4 : i32
    %102 = arith.addi %c0_i32_57, %c4_i32_58 : i32
    %c1_i32_59 = arith.constant 1 : i32
    %103 = scf.for %arg50 = %c0_i32_57 to %102 step %c1_i32_59 iter_args(%arg51 = %101) -> (vector<16x32xf32>)  : i32 {
      %183 = arith.index_cast %arg50 : i32 to index
      %c0_104 = arith.constant 0 : index
      %c0_105 = arith.constant 0 : index
      %184 = vector.load %arg17[%183, %c0_104, %c0_105] : memref<4x32x8xf32, #tpu.memory_space<vmem>>, vector<1x32x8xf32>
      %185 = vector.shape_cast %184 : vector<1x32x8xf32> to vector<32x8xf32>
      %cst_106 = arith.constant dense<0.000000e+00> : vector<16x8xf32>
      %186 = tpu.matmul %1, %185, %cst_106 {dimension_numbers = #tpu.dot_dimension_numbers<[1], [0], [0], [1], [0, 0, 1, 1], [], []>} : vector<16x32xf32>, vector<32x8xf32>, vector<16x8xf32> -> vector<16x8xf32>
      %187 = arith.index_cast %arg50 : i32 to index
      %c0_107 = arith.constant 0 : index
      %c0_108 = arith.constant 0 : index
      %188 = vector.load %arg18[%187, %c0_107, %c0_108] : memref<4x1x8xf32, #tpu.memory_space<vmem>>, vector<1x1x8xf32>
      %189 = vector.shape_cast %188 : vector<1x1x8xf32> to vector<1x8xf32>
      %190 = vector.broadcast %189 : vector<1x8xf32> to vector<16x8xf32>
      %191 = arith.addf %186, %190 : vector<16x8xf32>
      %192 = arith.index_cast %arg50 : i32 to index
      %c0_109 = arith.constant 0 : index
      %c0_110 = arith.constant 0 : index
      %193 = vector.load %arg19[%192, %c0_109, %c0_110] : memref<4x32x8xf32, #tpu.memory_space<vmem>>, vector<1x32x8xf32>
      %194 = vector.shape_cast %193 : vector<1x32x8xf32> to vector<32x8xf32>
      %cst_111 = arith.constant dense<0.000000e+00> : vector<32x8xf32>
      %195 = tpu.matmul %100, %194, %cst_111 {dimension_numbers = #tpu.dot_dimension_numbers<[1], [0], [0], [1], [0, 0, 1, 1], [], []>} : vector<32x32xf32>, vector<32x8xf32>, vector<32x8xf32> -> vector<32x8xf32>
      %196 = arith.index_cast %arg50 : i32 to index
      %c0_112 = arith.constant 0 : index
      %c0_113 = arith.constant 0 : index
      %197 = vector.load %arg20[%196, %c0_112, %c0_113] : memref<4x1x8xf32, #tpu.memory_space<vmem>>, vector<1x1x8xf32>
      %198 = vector.shape_cast %197 : vector<1x1x8xf32> to vector<1x8xf32>
      %199 = vector.broadcast %198 : vector<1x8xf32> to vector<32x8xf32>
      %200 = arith.addf %195, %199 : vector<32x8xf32>
      %201 = arith.index_cast %arg50 : i32 to index
      %c0_114 = arith.constant 0 : index
      %c0_115 = arith.constant 0 : index
      %202 = vector.load %arg21[%201, %c0_114, %c0_115] : memref<4x32x8xf32, #tpu.memory_space<vmem>>, vector<1x32x8xf32>
      %203 = vector.shape_cast %202 : vector<1x32x8xf32> to vector<32x8xf32>
      %cst_116 = arith.constant dense<0.000000e+00> : vector<32x8xf32>
      %204 = tpu.matmul %100, %203, %cst_116 {dimension_numbers = #tpu.dot_dimension_numbers<[1], [0], [0], [1], [0, 0, 1, 1], [], []>} : vector<32x32xf32>, vector<32x8xf32>, vector<32x8xf32> -> vector<32x8xf32>
      %205 = arith.index_cast %arg50 : i32 to index
      %c0_117 = arith.constant 0 : index
      %c0_118 = arith.constant 0 : index
      %206 = vector.load %arg22[%205, %c0_117, %c0_118] : memref<4x1x8xf32, #tpu.memory_space<vmem>>, vector<1x1x8xf32>
      %207 = vector.shape_cast %206 : vector<1x1x8xf32> to vector<1x8xf32>
      %208 = vector.broadcast %207 : vector<1x8xf32> to vector<32x8xf32>
      %209 = arith.addf %204, %208 : vector<32x8xf32>
      %cst_119 = arith.constant dense<0.000000e+00> : vector<16x32xf32>
      %210 = tpu.matmul %191, %200, %cst_119 {dimension_numbers = #tpu.dot_dimension_numbers<[1], [1], [0], [0], [0, 0, 1, 0], [], []>} : vector<16x8xf32>, vector<32x8xf32>, vector<16x32xf32> -> vector<16x32xf32>
      %cst_120 = arith.constant 0.353553385 : f32
      %211 = vector.broadcast %cst_120 : f32 to vector<16x32xf32>
      %212 = arith.mulf %210, %211 : vector<16x32xf32>
      %213 = arith.addf %212, %17 : vector<16x32xf32>
      %cst_121 = arith.constant dense<0xFF800000> : vector<16xf32>
      %214 = vector.multi_reduction <maximumf>, %213, %cst_121 [1] : vector<16x32xf32> to vector<16xf32>
      %215 = vector.shape_cast %214 : vector<16xf32> to vector<16x1xf32>
      %216 = vector.broadcast %215 : vector<16x1xf32> to vector<16x32xf32>
      %217 = arith.subf %213, %216 : vector<16x32xf32>
      %218 = math.exp %217 : vector<16x32xf32>
      %cst_122 = arith.constant dense<0.000000e+00> : vector<16xf32>
      %219 = vector.multi_reduction <add>, %218, %cst_122 [1] : vector<16x32xf32> to vector<16xf32>
      %220 = vector.shape_cast %219 : vector<16xf32> to vector<16x1xf32>
      %221 = tpu.reciprocal %220 {approx = true} : vector<16x1xf32> -> vector<16x1xf32>
      %222 = vector.broadcast %221 : vector<16x1xf32> to vector<16x32xf32>
      %223 = arith.mulf %218, %222 : vector<16x32xf32>
      %cst_123 = arith.constant dense<0.000000e+00> : vector<16x8xf32>
      %224 = tpu.matmul %223, %209, %cst_123 {dimension_numbers = #tpu.dot_dimension_numbers<[1], [0], [0], [1], [0, 0, 1, 1], [], []>} : vector<16x32xf32>, vector<32x8xf32>, vector<16x8xf32> -> vector<16x8xf32>
      %225 = arith.index_cast %arg50 : i32 to index
      %c0_124 = arith.constant 0 : index
      %c0_125 = arith.constant 0 : index
      %226 = vector.load %arg23[%225, %c0_124, %c0_125] : memref<4x8x32xf32, #tpu.memory_space<vmem>>, vector<1x8x32xf32>
      %227 = vector.shape_cast %226 : vector<1x8x32xf32> to vector<8x32xf32>
      %cst_126 = arith.constant dense<0.000000e+00> : vector<16x32xf32>
      %228 = tpu.matmul %224, %227, %cst_126 {dimension_numbers = #tpu.dot_dimension_numbers<[1], [0], [0], [1], [0, 0, 1, 1], [], []>} : vector<16x8xf32>, vector<8x32xf32>, vector<16x32xf32> -> vector<16x32xf32>
      %229 = arith.addf %arg51, %228 : vector<16x32xf32>
      scf.yield %229 : vector<16x32xf32>
    }
    %c4_i32_60 = arith.constant 4 : i32
    %c0_61 = arith.constant 0 : index
    %c0_62 = arith.constant 0 : index
    %104 = vector.load %arg24[%c0_61, %c0_62] : memref<1x32xf32, #tpu.memory_space<vmem>>, vector<1x32xf32>
    %105 = vector.broadcast %104 : vector<1x32xf32> to vector<16x32xf32>
    %106 = arith.addf %103, %105 : vector<16x32xf32>
    %cst_63 = arith.constant 0.000000e+00 : f32
    %107 = vector.broadcast %cst_63 : f32 to vector<32x32xf32>
    %c0_i32_64 = arith.constant 0 : i32
    %c4_i32_65 = arith.constant 4 : i32
    %108 = arith.addi %c0_i32_64, %c4_i32_65 : i32
    %c1_i32_66 = arith.constant 1 : i32
    %109 = scf.for %arg50 = %c0_i32_64 to %108 step %c1_i32_66 iter_args(%arg51 = %107) -> (vector<32x32xf32>)  : i32 {
      %183 = arith.index_cast %arg50 : i32 to index
      %c0_104 = arith.constant 0 : index
      %c0_105 = arith.constant 0 : index
      %184 = vector.load %arg25[%183, %c0_104, %c0_105] : memref<4x32x8xf32, #tpu.memory_space<vmem>>, vector<1x32x8xf32>
      %185 = vector.shape_cast %184 : vector<1x32x8xf32> to vector<32x8xf32>
      %cst_106 = arith.constant dense<0.000000e+00> : vector<32x8xf32>
      %186 = tpu.matmul %100, %185, %cst_106 {dimension_numbers = #tpu.dot_dimension_numbers<[1], [0], [0], [1], [0, 0, 1, 1], [], []>} : vector<32x32xf32>, vector<32x8xf32>, vector<32x8xf32> -> vector<32x8xf32>
      %187 = arith.index_cast %arg50 : i32 to index
      %c0_107 = arith.constant 0 : index
      %c0_108 = arith.constant 0 : index
      %188 = vector.load %arg26[%187, %c0_107, %c0_108] : memref<4x1x8xf32, #tpu.memory_space<vmem>>, vector<1x1x8xf32>
      %189 = vector.shape_cast %188 : vector<1x1x8xf32> to vector<1x8xf32>
      %190 = vector.broadcast %189 : vector<1x8xf32> to vector<32x8xf32>
      %191 = arith.addf %186, %190 : vector<32x8xf32>
      %192 = arith.index_cast %arg50 : i32 to index
      %c0_109 = arith.constant 0 : index
      %c0_110 = arith.constant 0 : index
      %193 = vector.load %arg27[%192, %c0_109, %c0_110] : memref<4x32x8xf32, #tpu.memory_space<vmem>>, vector<1x32x8xf32>
      %194 = vector.shape_cast %193 : vector<1x32x8xf32> to vector<32x8xf32>
      %cst_111 = arith.constant dense<0.000000e+00> : vector<16x8xf32>
      %195 = tpu.matmul %106, %194, %cst_111 {dimension_numbers = #tpu.dot_dimension_numbers<[1], [0], [0], [1], [0, 0, 1, 1], [], []>} : vector<16x32xf32>, vector<32x8xf32>, vector<16x8xf32> -> vector<16x8xf32>
      %196 = arith.index_cast %arg50 : i32 to index
      %c0_112 = arith.constant 0 : index
      %c0_113 = arith.constant 0 : index
      %197 = vector.load %arg28[%196, %c0_112, %c0_113] : memref<4x1x8xf32, #tpu.memory_space<vmem>>, vector<1x1x8xf32>
      %198 = vector.shape_cast %197 : vector<1x1x8xf32> to vector<1x8xf32>
      %199 = vector.broadcast %198 : vector<1x8xf32> to vector<16x8xf32>
      %200 = arith.addf %195, %199 : vector<16x8xf32>
      %201 = arith.index_cast %arg50 : i32 to index
      %c0_114 = arith.constant 0 : index
      %c0_115 = arith.constant 0 : index
      %202 = vector.load %arg29[%201, %c0_114, %c0_115] : memref<4x32x8xf32, #tpu.memory_space<vmem>>, vector<1x32x8xf32>
      %203 = vector.shape_cast %202 : vector<1x32x8xf32> to vector<32x8xf32>
      %cst_116 = arith.constant dense<0.000000e+00> : vector<16x8xf32>
      %204 = tpu.matmul %106, %203, %cst_116 {dimension_numbers = #tpu.dot_dimension_numbers<[1], [0], [0], [1], [0, 0, 1, 1], [], []>} : vector<16x32xf32>, vector<32x8xf32>, vector<16x8xf32> -> vector<16x8xf32>
      %205 = arith.index_cast %arg50 : i32 to index
      %c0_117 = arith.constant 0 : index
      %c0_118 = arith.constant 0 : index
      %206 = vector.load %arg30[%205, %c0_117, %c0_118] : memref<4x1x8xf32, #tpu.memory_space<vmem>>, vector<1x1x8xf32>
      %207 = vector.shape_cast %206 : vector<1x1x8xf32> to vector<1x8xf32>
      %208 = vector.broadcast %207 : vector<1x8xf32> to vector<16x8xf32>
      %209 = arith.addf %204, %208 : vector<16x8xf32>
      %cst_119 = arith.constant dense<0.000000e+00> : vector<32x16xf32>
      %210 = tpu.matmul %191, %200, %cst_119 {dimension_numbers = #tpu.dot_dimension_numbers<[1], [1], [0], [0], [0, 0, 1, 0], [], []>} : vector<32x8xf32>, vector<16x8xf32>, vector<32x16xf32> -> vector<32x16xf32>
      %cst_120 = arith.constant 0.353553385 : f32
      %211 = vector.broadcast %cst_120 : f32 to vector<32x16xf32>
      %212 = arith.mulf %210, %211 : vector<32x16xf32>
      %213 = arith.addf %212, %25 : vector<32x16xf32>
      %cst_121 = arith.constant dense<0xFF800000> : vector<32xf32>
      %214 = vector.multi_reduction <maximumf>, %213, %cst_121 [1] : vector<32x16xf32> to vector<32xf32>
      %215 = vector.shape_cast %214 : vector<32xf32> to vector<32x1xf32>
      %216 = vector.broadcast %215 : vector<32x1xf32> to vector<32x16xf32>
      %217 = arith.subf %213, %216 : vector<32x16xf32>
      %218 = math.exp %217 : vector<32x16xf32>
      %cst_122 = arith.constant dense<0.000000e+00> : vector<32xf32>
      %219 = vector.multi_reduction <add>, %218, %cst_122 [1] : vector<32x16xf32> to vector<32xf32>
      %220 = vector.shape_cast %219 : vector<32xf32> to vector<32x1xf32>
      %221 = tpu.reciprocal %220 {approx = true} : vector<32x1xf32> -> vector<32x1xf32>
      %222 = vector.broadcast %221 : vector<32x1xf32> to vector<32x16xf32>
      %223 = arith.mulf %218, %222 : vector<32x16xf32>
      %cst_123 = arith.constant dense<0.000000e+00> : vector<32x8xf32>
      %224 = tpu.matmul %223, %209, %cst_123 {dimension_numbers = #tpu.dot_dimension_numbers<[1], [0], [0], [1], [0, 0, 1, 1], [], []>} : vector<32x16xf32>, vector<16x8xf32>, vector<32x8xf32> -> vector<32x8xf32>
      %225 = arith.index_cast %arg50 : i32 to index
      %c0_124 = arith.constant 0 : index
      %c0_125 = arith.constant 0 : index
      %226 = vector.load %arg31[%225, %c0_124, %c0_125] : memref<4x8x32xf32, #tpu.memory_space<vmem>>, vector<1x8x32xf32>
      %227 = vector.shape_cast %226 : vector<1x8x32xf32> to vector<8x32xf32>
      %cst_126 = arith.constant dense<0.000000e+00> : vector<32x32xf32>
      %228 = tpu.matmul %224, %227, %cst_126 {dimension_numbers = #tpu.dot_dimension_numbers<[1], [0], [0], [1], [0, 0, 1, 1], [], []>} : vector<32x8xf32>, vector<8x32xf32>, vector<32x32xf32> -> vector<32x32xf32>
      %229 = arith.addf %arg51, %228 : vector<32x32xf32>
      scf.yield %229 : vector<32x32xf32>
    }
    %c4_i32_67 = arith.constant 4 : i32
    %c0_68 = arith.constant 0 : index
    %c0_69 = arith.constant 0 : index
    %110 = vector.load %arg32[%c0_68, %c0_69] : memref<1x32xf32, #tpu.memory_space<vmem>>, vector<1x32xf32>
    %111 = vector.broadcast %110 : vector<1x32xf32> to vector<32x32xf32>
    %112 = arith.addf %109, %111 : vector<32x32xf32>
    %113 = arith.addf %100, %112 : vector<32x32xf32>
    %c0_70 = arith.constant 0 : index
    %c0_71 = arith.constant 0 : index
    %114 = vector.load %arg41[%c0_70, %c0_71] : memref<1x32xf32, #tpu.memory_space<vmem>>, vector<1x32xf32>
    %c0_72 = arith.constant 0 : index
    %c0_73 = arith.constant 0 : index
    %115 = vector.load %arg42[%c0_72, %c0_73] : memref<1x32xf32, #tpu.memory_space<vmem>>, vector<1x32xf32>
    %cst_74 = arith.constant dense<0.000000e+00> : vector<32xf32>
    %116 = vector.multi_reduction <add>, %113, %cst_74 [1] : vector<32x32xf32> to vector<32xf32>
    %117 = vector.shape_cast %116 : vector<32xf32> to vector<32x1xf32>
    %cst_75 = arith.constant 3.200000e+01 : f32
    %118 = vector.broadcast %cst_75 : f32 to vector<32x1xf32>
    %119 = arith.divf %117, %118 : vector<32x1xf32>
    %120 = vector.broadcast %119 : vector<32x1xf32> to vector<32x32xf32>
    %121 = arith.subf %113, %120 : vector<32x32xf32>
    %122 = arith.mulf %121, %121 : vector<32x32xf32>
    %cst_76 = arith.constant dense<0.000000e+00> : vector<32xf32>
    %123 = vector.multi_reduction <add>, %122, %cst_76 [1] : vector<32x32xf32> to vector<32xf32>
    %124 = vector.shape_cast %123 : vector<32xf32> to vector<32x1xf32>
    %cst_77 = arith.constant 3.200000e+01 : f32
    %125 = vector.broadcast %cst_77 : f32 to vector<32x1xf32>
    %126 = arith.divf %124, %125 : vector<32x1xf32>
    %cst_78 = arith.constant 9.99999974E-6 : f32
    %127 = vector.broadcast %cst_78 : f32 to vector<32x1xf32>
    %128 = arith.addf %126, %127 : vector<32x1xf32>
    %129 = math.rsqrt %128 : vector<32x1xf32>
    %130 = vector.broadcast %129 : vector<32x1xf32> to vector<32x32xf32>
    %131 = arith.mulf %121, %130 : vector<32x32xf32>
    %132 = vector.broadcast %114 : vector<1x32xf32> to vector<32x32xf32>
    %133 = arith.mulf %131, %132 : vector<32x32xf32>
    %134 = vector.broadcast %115 : vector<1x32xf32> to vector<32x32xf32>
    %135 = arith.addf %133, %134 : vector<32x32xf32>
    %c0_79 = arith.constant 0 : index
    %c0_80 = arith.constant 0 : index
    %136 = vector.load %arg43[%c0_79, %c0_80] : memref<32x128xf32, #tpu.memory_space<vmem>>, vector<32x128xf32>
    %cst_81 = arith.constant dense<0.000000e+00> : vector<32x128xf32>
    %137 = tpu.matmul %135, %136, %cst_81 {dimension_numbers = #tpu.dot_dimension_numbers<[1], [0], [0], [1], [0, 0, 1, 1], [], []>} : vector<32x32xf32>, vector<32x128xf32>, vector<32x128xf32> -> vector<32x128xf32>
    %c0_82 = arith.constant 0 : index
    %c0_83 = arith.constant 0 : index
    %138 = vector.load %arg44[%c0_82, %c0_83] : memref<1x128xf32, #tpu.memory_space<vmem>>, vector<1x128xf32>
    %139 = vector.broadcast %138 : vector<1x128xf32> to vector<32x128xf32>
    %140 = arith.addf %137, %139 : vector<32x128xf32>
    %cst_84 = arith.constant 5.000000e-01 : f32
    %141 = vector.broadcast %cst_84 : f32 to vector<32x128xf32>
    %142 = arith.mulf %141, %140 : vector<32x128xf32>
    %cst_85 = arith.constant 4.471500e-02 : f32
    %143 = vector.broadcast %cst_85 : f32 to vector<32x128xf32>
    %144 = arith.mulf %143, %140 : vector<32x128xf32>
    %145 = arith.mulf %144, %140 : vector<32x128xf32>
    %146 = arith.mulf %145, %140 : vector<32x128xf32>
    %147 = arith.addf %140, %146 : vector<32x128xf32>
    %cst_86 = arith.constant 0.797884583 : f32
    %148 = vector.broadcast %cst_86 : f32 to vector<32x128xf32>
    %149 = arith.mulf %148, %147 : vector<32x128xf32>
    %150 = math.tanh %149 : vector<32x128xf32>
    %cst_87 = arith.constant 1.000000e+00 : f32
    %151 = vector.broadcast %cst_87 : f32 to vector<32x128xf32>
    %152 = arith.addf %151, %150 : vector<32x128xf32>
    %153 = arith.mulf %142, %152 : vector<32x128xf32>
    %c0_88 = arith.constant 0 : index
    %c0_89 = arith.constant 0 : index
    %154 = vector.load %arg45[%c0_88, %c0_89] : memref<128x32xf32, #tpu.memory_space<vmem>>, vector<128x32xf32>
    %cst_90 = arith.constant dense<0.000000e+00> : vector<32x32xf32>
    %155 = tpu.matmul %153, %154, %cst_90 {dimension_numbers = #tpu.dot_dimension_numbers<[1], [0], [0], [1], [0, 0, 1, 1], [], []>} : vector<32x128xf32>, vector<128x32xf32>, vector<32x32xf32> -> vector<32x32xf32>
    %c0_91 = arith.constant 0 : index
    %c0_92 = arith.constant 0 : index
    %156 = vector.load %arg46[%c0_91, %c0_92] : memref<1x32xf32, #tpu.memory_space<vmem>>, vector<1x32xf32>
    %157 = vector.broadcast %156 : vector<1x32xf32> to vector<32x32xf32>
    %158 = arith.addf %155, %157 : vector<32x32xf32>
    %159 = arith.addf %135, %158 : vector<32x32xf32>
    %c0_93 = arith.constant 0 : index
    %c0_94 = arith.constant 0 : index
    %160 = vector.load %arg47[%c0_93, %c0_94] : memref<1x32xf32, #tpu.memory_space<vmem>>, vector<1x32xf32>
    %c0_95 = arith.constant 0 : index
    %c0_96 = arith.constant 0 : index
    %161 = vector.load %arg48[%c0_95, %c0_96] : memref<1x32xf32, #tpu.memory_space<vmem>>, vector<1x32xf32>
    %cst_97 = arith.constant dense<0.000000e+00> : vector<32xf32>
    %162 = vector.multi_reduction <add>, %159, %cst_97 [1] : vector<32x32xf32> to vector<32xf32>
    %163 = vector.shape_cast %162 : vector<32xf32> to vector<32x1xf32>
    %cst_98 = arith.constant 3.200000e+01 : f32
    %164 = vector.broadcast %cst_98 : f32 to vector<32x1xf32>
    %165 = arith.divf %163, %164 : vector<32x1xf32>
    %166 = vector.broadcast %165 : vector<32x1xf32> to vector<32x32xf32>
    %167 = arith.subf %159, %166 : vector<32x32xf32>
    %168 = arith.mulf %167, %167 : vector<32x32xf32>
    %cst_99 = arith.constant dense<0.000000e+00> : vector<32xf32>
    %169 = vector.multi_reduction <add>, %168, %cst_99 [1] : vector<32x32xf32> to vector<32xf32>
    %170 = vector.shape_cast %169 : vector<32xf32> to vector<32x1xf32>
    %cst_100 = arith.constant 3.200000e+01 : f32
    %171 = vector.broadcast %cst_100 : f32 to vector<32x1xf32>
    %172 = arith.divf %170, %171 : vector<32x1xf32>
    %cst_101 = arith.constant 9.99999974E-6 : f32
    %173 = vector.broadcast %cst_101 : f32 to vector<32x1xf32>
    %174 = arith.addf %172, %173 : vector<32x1xf32>
    %175 = math.rsqrt %174 : vector<32x1xf32>
    %176 = vector.broadcast %175 : vector<32x1xf32> to vector<32x32xf32>
    %177 = arith.mulf %167, %176 : vector<32x32xf32>
    %178 = vector.broadcast %160 : vector<1x32xf32> to vector<32x32xf32>
    %179 = arith.mulf %177, %178 : vector<32x32xf32>
    %180 = vector.broadcast %161 : vector<1x32xf32> to vector<32x32xf32>
    %181 = arith.addf %179, %180 : vector<32x32xf32>
    %c0_102 = arith.constant 0 : index
    %c0_103 = arith.constant 0 : index
    %182 = vector.load %arg49[%c0_102, %c0_103] : memref<32x32xf32, #tpu.memory_space<vmem>>, vector<32x32xf32>
    tpu.vector_store %arg49[%c0_102, %c0_103], %181 {strides = array<i32>} : memref<32x32xf32, #tpu.memory_space<vmem>>, vector<32x32xf32>,
    return
  }
  func.func @transform_0(%arg0: i32) -> (i32, i32) {
    %c0_i32 = arith.constant 0 : i32
    %c0_i32_0 = arith.constant 0 : i32
    return %arg0, %c0_i32 : i32, i32
  }
  func.func @transform_1(%arg0: i32) -> (i32, i32) {
    %c0_i32 = arith.constant 0 : i32
    %c0_i32_0 = arith.constant 0 : i32
    %c0_i32_1 = arith.constant 0 : i32
    return %c0_i32, %c0_i32_0 : i32, i32
  }
  func.func @transform_2(%arg0: i32) -> (i32, i32) {
    %c0_i32 = arith.constant 0 : i32
    %c0_i32_0 = arith.constant 0 : i32
    %c0_i32_1 = arith.constant 0 : i32
    return %c0_i32, %c0_i32_0 : i32, i32
  }
  func.func @transform_3(%arg0: i32) -> (i32, i32) {
    %c0_i32 = arith.constant 0 : i32
    %c0_i32_0 = arith.constant 0 : i32
    %c0_i32_1 = arith.constant 0 : i32
    return %c0_i32, %c0_i32_0 : i32, i32
  }
  func.func @transform_4(%arg0: i32) -> (i32, i32) {
    %c0_i32 = arith.constant 0 : i32
    %c0_i32_0 = arith.constant 0 : i32
    %c0_i32_1 = arith.constant 0 : i32
    return %c0_i32, %c0_i32_0 : i32, i32
  }
  func.func @transform_5(%arg0: i32) -> (i32, i32) {
    %c0_i32 = arith.constant 0 : i32
    %c0_i32_0 = arith.constant 0 : i32
    %c0_i32_1 = arith.constant 0 : i32
    return %c0_i32, %c0_i32_0 : i32, i32
  }
  func.func @transform_6(%arg0: i32) -> (i32, i32) {
    %c0_i32 = arith.constant 0 : i32
    %c0_i32_0 = arith.constant 0 : i32
    %c0_i32_1 = arith.constant 0 : i32
    return %c0_i32, %c0_i32_0 : i32, i32
  }
  func.func @transform_7(%arg0: i32) -> (i32, i32) {
    %c0_i32 = arith.constant 0 : i32
    %c0_i32_0 = arith.constant 0 : i32
    %c0_i32_1 = arith.constant 0 : i32
    return %c0_i32, %c0_i32_0 : i32, i32
  }
  func.func @transform_8(%arg0: i32) -> (i32, i32, i32) {
    %c0_i32 = arith.constant 0 : i32
    %c0_i32_0 = arith.constant 0 : i32
    %c0_i32_1 = arith.constant 0 : i32
    %c0_i32_2 = arith.constant 0 : i32
    return %c0_i32, %c0_i32_0, %c0_i32_1 : i32, i32, i32
  }
  func.func @transform_9(%arg0: i32) -> (i32, i32, i32) {
    %c0_i32 = arith.constant 0 : i32
    %c0_i32_0 = arith.constant 0 : i32
    %c0_i32_1 = arith.constant 0 : i32
    %c0_i32_2 = arith.constant 0 : i32
    return %c0_i32, %c0_i32_0, %c0_i32_1 : i32, i32, i32
  }
  func.func @transform_10(%arg0: i32) -> (i32, i32, i32) {
    %c0_i32 = arith.constant 0 : i32
    %c0_i32_0 = arith.constant 0 : i32
    %c0_i32_1 = arith.constant 0 : i32
    %c0_i32_2 = arith.constant 0 : i32
    return %c0_i32, %c0_i32_0, %c0_i32_1 : i32, i32, i32
  }
  func.func @transform_11(%arg0: i32) -> (i32, i32, i32) {
    %c0_i32 = arith.constant 0 : i32
    %c0_i32_0 = arith.constant 0 : i32
    %c0_i32_1 = arith.constant 0 : i32
    %c0_i32_2 = arith.constant 0 : i32
    return %c0_i32, %c0_i32_0, %c0_i32_1 : i32, i32, i32
  }
  func.func @transform_12(%arg0: i32) -> (i32, i32, i32) {
    %c0_i32 = arith.constant 0 : i32
    %c0_i32_0 = arith.constant 0 : i32
    %c0_i32_1 = arith.constant 0 : i32
    %c0_i32_2 = arith.constant 0 : i32
    return %c0_i32, %c0_i32_0, %c0_i32_1 : i32, i32, i32
  }
  func.func @transform_13(%arg0: i32) -> (i32, i32, i32) {
    %c0_i32 = arith.constant 0 : i32
    %c0_i32_0 = arith.constant 0 : i32
    %c0_i32_1 = arith.constant 0 : i32
    %c0_i32_2 = arith.constant 0 : i32
    return %c0_i32, %c0_i32_0, %c0_i32_1 : i32, i32, i32
  }
  func.func @transform_14(%arg0: i32) -> (i32, i32, i32) {
    %c0_i32 = arith.constant 0 : i32
    %c0_i32_0 = arith.constant 0 : i32
    %c0_i32_1 = arith.constant 0 : i32
    %c0_i32_2 = arith.constant 0 : i32
    return %c0_i32, %c0_i32_0, %c0_i32_1 : i32, i32, i32
  }
  func.func @transform_15(%arg0: i32) -> (i32, i32) {
    %c0_i32 = arith.constant 0 : i32
    %c0_i32_0 = arith.constant 0 : i32
    %c0_i32_1 = arith.constant 0 : i32
    return %c0_i32, %c0_i32_0 : i32, i32
  }
  func.func @transform_16(%arg0: i32) -> (i32, i32, i32) {
    %c0_i32 = arith.constant 0 : i32
    %c0_i32_0 = arith.constant 0 : i32
    %c0_i32_1 = arith.constant 0 : i32
    %c0_i32_2 = arith.constant 0 : i32
    return %c0_i32, %c0_i32_0, %c0_i32_1 : i32, i32, i32
  }
  func.func @transform_17(%arg0: i32) -> (i32, i32, i32) {
    %c0_i32 = arith.constant 0 : i32
    %c0_i32_0 = arith.constant 0 : i32
    %c0_i32_1 = arith.constant 0 : i32
    %c0_i32_2 = arith.constant 0 : i32
    return %c0_i32, %c0_i32_0, %c0_i32_1 : i32, i32, i32
  }
  func.func @transform_18(%arg0: i32) -> (i32, i32, i32) {
    %c0_i32 = arith.constant 0 : i32
    %c0_i32_0 = arith.constant 0 : i32
    %c0_i32_1 = arith.constant 0 : i32
    %c0_i32_2 = arith.constant 0 : i32
    return %c0_i32, %c0_i32_0, %c0_i32_1 : i32, i32, i32
  }
  func.func @transform_19(%arg0: i32) -> (i32, i32, i32) {
    %c0_i32 = arith.constant 0 : i32
    %c0_i32_0 = arith.constant 0 : i32
    %c0_i32_1 = arith.constant 0 : i32
    %c0_i32_2 = arith.constant 0 : i32
    return %c0_i32, %c0_i32_0, %c0_i32_1 : i32, i32, i32
  }
  func.func @transform_20(%arg0: i32) -> (i32, i32, i32) {
    %c0_i32 = arith.constant 0 : i32
    %c0_i32_0 = arith.constant 0 : i32
    %c0_i32_1 = arith.constant 0 : i32
    %c0_i32_2 = arith.constant 0 : i32
    return %c0_i32, %c0_i32_0, %c0_i32_1 : i32, i32, i32
  }
  func.func @transform_21(%arg0: i32) -> (i32, i32, i32) {
    %c0_i32 = arith.constant 0 : i32
    %c0_i32_0 = arith.constant 0 : i32
    %c0_i32_1 = arith.constant 0 : i32
    %c0_i32_2 = arith.constant 0 : i32
    return %c0_i32, %c0_i32_0, %c0_i32_1 : i32, i32, i32
  }
  func.func @transform_22(%arg0: i32) -> (i32, i32, i32) {
    %c0_i32 = arith.constant 0 : i32
    %c0_i32_0 = arith.constant 0 : i32
    %c0_i32_1 = arith.constant 0 : i32
    %c0_i32_2 = arith.constant 0 : i32
    return %c0_i32, %c0_i32_0, %c0_i32_1 : i32, i32, i32
  }
  func.func @transform_23(%arg0: i32) -> (i32, i32) {
    %c0_i32 = arith.constant 0 : i32
    %c0_i32_0 = arith.constant 0 : i32
    %c0_i32_1 = arith.constant 0 : i32
    return %c0_i32, %c0_i32_0 : i32, i32
  }
  func.func @transform_24(%arg0: i32) -> (i32, i32, i32) {
    %c0_i32 = arith.constant 0 : i32
    %c0_i32_0 = arith.constant 0 : i32
    %c0_i32_1 = arith.constant 0 : i32
    %c0_i32_2 = arith.constant 0 : i32
    return %c0_i32, %c0_i32_0, %c0_i32_1 : i32, i32, i32
  }
  func.func @transform_25(%arg0: i32) -> (i32, i32, i32) {
    %c0_i32 = arith.constant 0 : i32
    %c0_i32_0 = arith.constant 0 : i32
    %c0_i32_1 = arith.constant 0 : i32
    %c0_i32_2 = arith.constant 0 : i32
    return %c0_i32, %c0_i32_0, %c0_i32_1 : i32, i32, i32
  }
  func.func @transform_26(%arg0: i32) -> (i32, i32, i32) {
    %c0_i32 = arith.constant 0 : i32
    %c0_i32_0 = arith.constant 0 : i32
    %c0_i32_1 = arith.constant 0 : i32
    %c0_i32_2 = arith.constant 0 : i32
    return %c0_i32, %c0_i32_0, %c0_i32_1 : i32, i32, i32
  }
  func.func @transform_27(%arg0: i32) -> (i32, i32, i32) {
    %c0_i32 = arith.constant 0 : i32
    %c0_i32_0 = arith.constant 0 : i32
    %c0_i32_1 = arith.constant 0 : i32
    %c0_i32_2 = arith.constant 0 : i32
    return %c0_i32, %c0_i32_0, %c0_i32_1 : i32, i32, i32
  }
  func.func @transform_28(%arg0: i32) -> (i32, i32, i32) {
    %c0_i32 = arith.constant 0 : i32
    %c0_i32_0 = arith.constant 0 : i32
    %c0_i32_1 = arith.constant 0 : i32
    %c0_i32_2 = arith.constant 0 : i32
    return %c0_i32, %c0_i32_0, %c0_i32_1 : i32, i32, i32
  }
  func.func @transform_29(%arg0: i32) -> (i32, i32, i32) {
    %c0_i32 = arith.constant 0 : i32
    %c0_i32_0 = arith.constant 0 : i32
    %c0_i32_1 = arith.constant 0 : i32
    %c0_i32_2 = arith.constant 0 : i32
    return %c0_i32, %c0_i32_0, %c0_i32_1 : i32, i32, i32
  }
  func.func @transform_30(%arg0: i32) -> (i32, i32, i32) {
    %c0_i32 = arith.constant 0 : i32
    %c0_i32_0 = arith.constant 0 : i32
    %c0_i32_1 = arith.constant 0 : i32
    %c0_i32_2 = arith.constant 0 : i32
    return %c0_i32, %c0_i32_0, %c0_i32_1 : i32, i32, i32
  }
  func.func @transform_31(%arg0: i32) -> (i32, i32) {
    %c0_i32 = arith.constant 0 : i32
    %c0_i32_0 = arith.constant 0 : i32
    %c0_i32_1 = arith.constant 0 : i32
    return %c0_i32, %c0_i32_0 : i32, i32
  }
  func.func @transform_32(%arg0: i32) -> (i32, i32) {
    %c0_i32 = arith.constant 0 : i32
    %c0_i32_0 = arith.constant 0 : i32
    %c0_i32_1 = arith.constant 0 : i32
    return %c0_i32, %c0_i32_0 : i32, i32
  }
  func.func @transform_33(%arg0: i32) -> (i32, i32) {
    %c0_i32 = arith.constant 0 : i32
    %c0_i32_0 = arith.constant 0 : i32
    %c0_i32_1 = arith.constant 0 : i32
    return %c0_i32, %c0_i32_0 : i32, i32
  }
  func.func @transform_34(%arg0: i32) -> (i32, i32) {
    %c0_i32 = arith.constant 0 : i32
    %c0_i32_0 = arith.constant 0 : i32
    %c0_i32_1 = arith.constant 0 : i32
    return %c0_i32, %c0_i32_0 : i32, i32
  }
  func.func @transform_35(%arg0: i32) -> (i32, i32) {
    %c0_i32 = arith.constant 0 : i32
    %c0_i32_0 = arith.constant 0 : i32
    %c0_i32_1 = arith.constant 0 : i32
    return %c0_i32, %c0_i32_0 : i32, i32
  }
  func.func @transform_36(%arg0: i32) -> (i32, i32) {
    %c0_i32 = arith.constant 0 : i32
    %c0_i32_0 = arith.constant 0 : i32
    %c0_i32_1 = arith.constant 0 : i32
    return %c0_i32, %c0_i32_0 : i32, i32
  }
  func.func @transform_37(%arg0: i32) -> (i32, i32) {
    %c0_i32 = arith.constant 0 : i32
    %c0_i32_0 = arith.constant 0 : i32
    %c0_i32_1 = arith.constant 0 : i32
    return %c0_i32, %c0_i32_0 : i32, i32
  }
  func.func @transform_38(%arg0: i32) -> (i32, i32) {
    %c0_i32 = arith.constant 0 : i32
    %c0_i32_0 = arith.constant 0 : i32
    %c0_i32_1 = arith.constant 0 : i32
    return %c0_i32, %c0_i32_0 : i32, i32
  }
  func.func @transform_39(%arg0: i32) -> (i32, i32) {
    %c0_i32 = arith.constant 0 : i32
    %c0_i32_0 = arith.constant 0 : i32
    %c0_i32_1 = arith.constant 0 : i32
    return %c0_i32, %c0_i32_0 : i32, i32
  }
  func.func @transform_40(%arg0: i32) -> (i32, i32) {
    %c0_i32 = arith.constant 0 : i32
    %c0_i32_0 = arith.constant 0 : i32
    %c0_i32_1 = arith.constant 0 : i32
    return %c0_i32, %c0_i32_0 : i32, i32
  }
  func.func @transform_41(%arg0: i32) -> (i32, i32) {
    %c0_i32 = arith.constant 0 : i32
    %c0_i32_0 = arith.constant 0 : i32
    %c0_i32_1 = arith.constant 0 : i32
    return %c0_i32, %c0_i32_0 : i32, i32
  }
  func.func @transform_42(%arg0: i32) -> (i32, i32) {
    %c0_i32 = arith.constant 0 : i32
    %c0_i32_0 = arith.constant 0 : i32
    %c0_i32_1 = arith.constant 0 : i32
    return %c0_i32, %c0_i32_0 : i32, i32
  }
  func.func @transform_43(%arg0: i32) -> (i32, i32) {
    %c0_i32 = arith.constant 0 : i32
    %c0_i32_0 = arith.constant 0 : i32
    %c0_i32_1 = arith.constant 0 : i32
    return %c0_i32, %c0_i32_0 : i32, i32
  }
  func.func @transform_44(%arg0: i32) -> (i32, i32) {
    %c0_i32 = arith.constant 0 : i32
    %c0_i32_0 = arith.constant 0 : i32
    %c0_i32_1 = arith.constant 0 : i32
    return %c0_i32, %c0_i32_0 : i32, i32
  }
  func.func @transform_45(%arg0: i32) -> (i32, i32) {
    %c0_i32 = arith.constant 0 : i32
    %c0_i32_0 = arith.constant 0 : i32
    %c0_i32_1 = arith.constant 0 : i32
    return %c0_i32, %c0_i32_0 : i32, i32
  }
  func.func @transform_46(%arg0: i32) -> (i32, i32) {
    %c0_i32 = arith.constant 0 : i32
    %c0_i32_0 = arith.constant 0 : i32
    %c0_i32_1 = arith.constant 0 : i32
    return %c0_i32, %c0_i32_0 : i32, i32
  }
  func.func @transform_47(%arg0: i32) -> (i32, i32) {
    %c0_i32 = arith.constant 0 : i32
    %c0_i32_0 = arith.constant 0 : i32
    %c0_i32_1 = arith.constant 0 : i32
    return %c0_i32, %c0_i32_0 : i32, i32
  }
  func.func @transform_48(%arg0: i32) -> (i32, i32) {
    %c0_i32 = arith.constant 0 : i32
    %c0_i32_0 = arith.constant 0 : i32
    return %arg0, %c0_i32 : i32, i32
  }
}

</mosaic_0001>

<bundles_post_ra>
// kernel: tpu_custom_call.1
= control target key start
LH: loop header
LB: loop body
LE: loop exit
PB: predicated region body
PF: predicated region fallthrough
CT: control target
= control target key end

     0   :  { %s5673_s6 = smov 1   ;;  %s5674_s10 = smov 2   ;;  %s6491_s0 = inlined_call_operand.smem [shape: u32[49], index: -1, kind: input, shape index: {}] }
   0x1   :  { %s5731_s5 = sld [smem:[%s6491_s0]]   ;;  %s5675_s14 = smov 3  }
   0x2   :  { %s5736_s9 = sld [smem:[%s6491_s0 + %s5673_s6]]   ;;  %s5676_s18 = smov 4  }
   0x3   :  { %s5741_s13 = sld [smem:[%s6491_s0 + %s5674_s10]]   ;;  %s5677_s22 = smov 5  }
   0x4   :  { %s5746_s17 = sld [smem:[%s6491_s0 + %s5675_s14]]   ;;  %s5678_s26 = smov 6  }
   0x5   :  { %s5751_s21 = sld [smem:[%s6491_s0 + %s5676_s18]]   ;;  %s5679_s30 = smov 7  }
   0x6   :  { %s5756_s25 = sld [smem:[%s6491_s0 + %s5677_s22]]   ;;  %s5680_s4 = smov 8  }
   0x7   :  { %s5761_s29 = sld [smem:[%s6491_s0 + %s5678_s26]]   ;;  %s5681_s10 = smov 9  }
   0x8   :  { %s5766_s3 = sld [smem:[%s6491_s0 + %s5679_s30]]   ;;  %s5682_s15 = smov 10  }
   0x9   :  { %s5771_s8 = sld [smem:[%s6491_s0 + %s5680_s4]]   ;;  %s5683_s20 = smov 11  }
   0xa   :  { %s5776_s14 = sld [smem:[%s6491_s0 + %s5681_s10]]   ;;  %s5684_s26 = smov 12  }
   0xb   :  { %s5781_s19 = sld [smem:[%s6491_s0 + %s5682_s15]]   ;;  %s5685_s1 = smov 13  }
   0xc   :  { %s5786_s24 = sld [smem:[%s6491_s0 + %s5683_s20]]   ;;  %s5686_s7 = smov 14  }
   0xd   :  { %s5791_s30 = sld [smem:[%s6491_s0 + %s5684_s26]]   ;;  %s5687_s15 = smov 15  }
   0xe   :  { %s5796_s6 = sld [smem:[%s6491_s0 + %s5685_s1]]   ;;  %s5688_s22 = smov 16  }
   0xf   :  { %s5801_s12 = sld [smem:[%s6491_s0 + %s5686_s7]]   ;;  %s5689_s28 = smov 17  }
  0x10   :  { %s5806_s20 = sld [smem:[%s6491_s0 + %s5687_s15]]   ;;  %s5690_s7 = smov 18  }
  0x11   :  { %s5811_s27 = sld [smem:[%s6491_s0 + %s5688_s22]]   ;;  %s5691_s15 = smov 19  }
  0x12   :  { %s5816_s4 = sld [smem:[%s6491_s0 + %s5689_s28]]   ;;  %s5692_s22 = smov 20  }
  0x13   :  { %s5693_s28 = smov 21  }
  0x15   :  { %6496 = sst [smem:[#allocation2_spill]] %s5801_s12 }
  0x16   :  { %6497 = sst [smem:[#allocation3_spill]] %s5806_s20 }
  0x17   :  { %6498 = sst [smem:[#allocation4_spill]] %s5811_s27 }
  0x18   :  { %6499 = sst [smem:[#allocation5_spill]] %s5816_s4 }
  0x19   :  { %s5821_s12 = sld [smem:[%s6491_s0 + %s5690_s7]]   ;;  %s5694_s7 = smov 22  }
  0x1a   :  { %s5826_s20 = sld [smem:[%s6491_s0 + %s5691_s15]]   ;;  %s5695_s15 = smov 23  }
  0x1b   :  { %s5831_s27 = sld [smem:[%s6491_s0 + %s5692_s22]]   ;;  %s5696_s22 = smov 24  }
  0x1c   :  { %s5836_s4 = sld [smem:[%s6491_s0 + %s5693_s28]]   ;;  %s5697_s28 = smov 25  }
  0x1f   :  { %6500 = sst [smem:[#allocation6_spill]] %s5821_s12 }
  0x20   :  { %6501 = sst [smem:[#allocation7_spill]] %s5826_s20 }
  0x21   :  { %6502 = sst [smem:[#allocation8_spill]] %s5831_s27 }
  0x22   :  { %6503 = sst [smem:[#allocation9_spill]] %s5836_s4 }
  0x23   :  { %s5841_s12 = sld [smem:[%s6491_s0 + %s5694_s7]]   ;;  %s5698_s7 = smov 26  }
  0x24   :  { %s5846_s20 = sld [smem:[%s6491_s0 + %s5695_s15]]   ;;  %s5699_s15 = smov 27  }
  0x25   :  { %s5851_s27 = sld [smem:[%s6491_s0 + %s5696_s22]]   ;;  %s5700_s22 = smov 28  }
  0x26   :  { %s5856_s4 = sld [smem:[%s6491_s0 + %s5697_s28]]   ;;  %s5701_s28 = smov 29  }
  0x29   :  { %6504 = sst [smem:[#allocation10_spill]] %s5841_s12 }
  0x2a   :  { %6505 = sst [smem:[#allocation11_spill]] %s5846_s20 }
  0x2b   :  { %6506 = sst [smem:[#allocation12_spill]] %s5851_s27 }
  0x2c   :  { %6507 = sst [smem:[#allocation13_spill]] %s5856_s4 }
  0x2d   :  { %s5861_s12 = sld [smem:[%s6491_s0 + %s5698_s7]]   ;;  %s5702_s7 = smov 30  }
  0x2e   :  { %s5866_s20 = sld [smem:[%s6491_s0 + %s5699_s15]]   ;;  %s5703_s15 = smov 31  }
  0x2f   :  { %s5871_s27 = sld [smem:[%s6491_s0 + %s5700_s22]]   ;;  %s5704_s22 = smov 32  }
  0x30   :  { %s5876_s4 = sld [smem:[%s6491_s0 + %s5701_s28]]   ;;  %s5705_s28 = smov 33  }
  0x33   :  { %6508 = sst [smem:[#allocation14_spill]] %s5861_s12 }
  0x34   :  { %6509 = sst [smem:[#allocation15_spill]] %s5866_s20 }
  0x35   :  { %6510 = sst [smem:[#allocation16_spill]] %s5871_s27 }
  0x36   :  { %6511 = sst [smem:[#allocation17_spill]] %s5876_s4 }
  0x37   :  { %s5881_s12 = sld [smem:[%s6491_s0 + %s5702_s7]]   ;;  %s5706_s7 = smov 34  }
  0x38   :  { %s5886_s20 = sld [smem:[%s6491_s0 + %s5703_s15]]   ;;  %s5707_s15 = smov 35  }
  0x39   :  { %s5891_s27 = sld [smem:[%s6491_s0 + %s5704_s22]]   ;;  %s5708_s22 = smov 36  }
  0x3a   :  { %s5896_s4 = sld [smem:[%s6491_s0 + %s5705_s28]]   ;;  %s5709_s28 = smov 37  }
  0x3d   :  { %6512 = sst [smem:[#allocation18_spill]] %s5881_s12 }
  0x3e   :  { %6513 = sst [smem:[#allocation19_spill]] %s5886_s20 }
  0x3f   :  { %6514 = sst [smem:[#allocation20_spill]] %s5891_s27 }
  0x40   :  { %6515 = sst [smem:[#allocation21_spill]] %s5896_s4 }
  0x41   :  { %s5901_s12 = sld [smem:[%s6491_s0 + %s5706_s7]]   ;;  %s5710_s7 = smov 38  }
  0x42   :  { %s5906_s20 = sld [smem:[%s6491_s0 + %s5707_s15]]   ;;  %s5711_s15 = smov 39  }
  0x43   :  { %s5911_s27 = sld [smem:[%s6491_s0 + %s5708_s22]]   ;;  %s5712_s22 = smov 40  }
  0x44   :  { %s5916_s4 = sld [smem:[%s6491_s0 + %s5709_s28]]   ;;  %s5713_s28 = smov 41  }
  0x47   :  { %6516 = sst [smem:[#allocation22_spill]] %s5901_s12 }
  0x48   :  { %6517 = sst [smem:[#allocation23_spill]] %s5906_s20 }
  0x49   :  { %6518 = sst [smem:[#allocation24_spill]] %s5911_s27 }
  0x4a   :  { %6519 = sst [smem:[#allocation25_spill]] %s5916_s4 }
  0x4b   :  { %s5921_s12 = sld [smem:[%s6491_s0 + %s5710_s7]]   ;;  %s5714_s7 = smov 42  }
  0x4c   :  { %s5926_s20 = sld [smem:[%s6491_s0 + %s5711_s15]]   ;;  %s5715_s15 = smov 43  }
  0x4d   :  { %s5931_s27 = sld [smem:[%s6491_s0 + %s5712_s22]]   ;;  %s5716_s22 = smov 44  }
  0x4e   :  { %s5936_s4 = sld [smem:[%s6491_s0 + %s5713_s28]]   ;;  %s5717_s28 = smov 45  }
  0x51   :  { %6520 = sst [smem:[#allocation26_spill]] %s5921_s12 }
  0x52   :  { %6521 = sst [smem:[#allocation27_spill]] %s5926_s20 }
  0x53   :  { %6522 = sst [smem:[#allocation28_spill]] %s5931_s27 }
  0x54   :  { %6523 = sst [smem:[#allocation29_spill]] %s5936_s4 }
  0x55   :  { %s5941_s12 = sld [smem:[%s6491_s0 + %s5714_s7]]   ;;  %s5718_s7 = smov 46  }
  0x56   :  { %s5946_s20 = sld [smem:[%s6491_s0 + %s5715_s15]]   ;;  %s5719_s15 = smov 47  }
  0x57   :  { %s5951_s27 = sld [smem:[%s6491_s0 + %s5716_s22]]   ;;  %s5720_s22 = smov 48  }
  0x58   :  { %s5956_s4 = sld [smem:[%s6491_s0 + %s5717_s28]]   ;;  %s5973_s28 = smov 0  }
  0x5b   :  { %6524 = sst [smem:[#allocation30_spill]] %s5941_s12 }
  0x5c   :  { %6525 = sst [smem:[#allocation31_spill]] %s5946_s20 }
  0x5d   :  { %6526 = sst [smem:[#allocation32_spill]] %s5951_s27 }
  0x5e   :  { %s5961_s12 = sld [smem:[%s6491_s0 + %s5718_s7]]  }
  0x5f   :  { %s5966_s20 = sld [smem:[%s6491_s0 + %s5719_s15]]  }
  0x60   :  { %s5971_s27 = sld [smem:[%s6491_s0 + %s5720_s22]]  }
  0x61 LB: > { %s4494_s1 = sadd.s32 4294967295, %s5619_s28   ;;  %p4498_p0 = scmp.ge.s32.totalorder %s5619_s28, 1  ;;  %s5619_s28 = sphi %s5973_s28, %s107_s28  }
  0x62   : > { %p1312_p1 = scmp.lt.s32.totalorder %s5619_s28, 3 }
  0x64   : > { %p1313_p2 = pnand %p4498_p0, %p1312_p1 }
  0x65   : > { %v1446_v0 = vld [vmem:[%s5741_s13 + $0x10] sm:$0xff] (!%p1313_p2)  ;;  %v1444_v1 = vld [vmem:[%s5741_s13] sm:$0xff] (!%p1313_p2)  ;;  %v5721_v2 = vmov (!%p1313_p2), 0   ;;  %v1447_v3 = vld [vmem:[%s5741_s13 + $0x18] sm:$0xff] (!%p1313_p2)  ;;  %s4499_s0 = sshll.u32 (!%p1313_p2), %s4494_s1, 2  ;;  %v6032_v41 = vmov (!%p1313_p2), 0.0  }
  0x66   : > { %1316 = sbr.rel (%p1313_p2) target bundleno = 6079 (0x17bf), region = 212  ;;  %5472 = vset.pattern.permute.xlu1 (!%p1313_p2), %v5721_v2  ;;  %5471 = vset.pattern.permute.xlu0 (!%p1313_p2), %v5721_v2  ;;  %v1445_v4 = vld [vmem:[%s5741_s13 + $0x8] sm:$0xff] (!%p1313_p2)  ;;  %v1473_v6 = vld [vmem:[%s5761_s29] sm:$0xff] (!%p1313_p2)  ;;  %p1427_p3 = scmp.lt.s32.totalorder (!%p1313_p2), %s4499_s0, 7  ;;  %v1493_v9 = vld [vmem:[%s5751_s21 + $0x18] sm:$0xff] (!%p1313_p2)  ;;  %v6034_v42 = vmov (!%p1313_p2), 0.0  }
  0x67   : > { %1456 = vperm.xlu1 (!%p1313_p2), %5472, %v1446_v0   ;;  %1450 = vperm.xlu0 (!%p1313_p2), %5471, %v1444_v1   ;;  %v1474_v5 = vld [vmem:[%s5761_s29 + $0x8] sm:$0xff] (!%p1313_p2)  ;;  %v1490_v8 = vld [vmem:[%s5751_s21] sm:$0xff] (!%p1313_p2)  ;;  %v1492_v10 = vld [vmem:[%s5751_s21 + $0x10] sm:$0xff] (!%p1313_p2)  ;;  %v5722_v20 = vmov (!%p1313_p2), -1e+30   ;;  %v6036_v43 = vmov (!%p1313_p2), 0.0  }
  0x68   : > { %v1491_v7 = vld [vmem:[%s5751_s21 + $0x8] sm:$0xff] (!%p1313_p2)  ;;  %v6004_v15 = vld [vmem:[%s5736_s9] sm:$0xff] (!%p1313_p2)  ;;  %v6038_v44 = vmov (!%p1313_p2), 0.0   ;;  %s6040_s11 = smov (!%p1313_p2), 0  }
  0x69   : > { %v6007_v16 = vld [vmem:[%s5736_s9 + $0x8] sm:$0xff] (!%p1313_p2)  ;;  %v4503_v17 = vld [vmem:[%s5746_s17] ss:$0 sm:$0xff] (!%p1313_p2) }
  0x6a   : > { %v4504_v27 = vld [vmem:[%s5756_s25] ss:$0 sm:$0xff] (!%p1313_p2) }
  0x6b   : > { %1459 = vperm.xlu1 (!%p1313_p2), %5472, %v1447_v3   ;;  %1453 = vperm.xlu0 (!%p1313_p2), %5471, %v1445_v4   ;;  %v4505_v32 = vld [vmem:[%s5766_s3] ss:$0 sm:$0xff] (!%p1313_p2) }
  0x6d   : > { %s6571_s0 = smov (!%p1427_p3, %s4499_s0), 7 }
  0x6e   : > { %s4500_s2 = sshll.u32 %s6571_s0, 3 }
  0x6f   : > { %1480 = vperm.xlu1 %5472, %v1474_v5   ;;  %1477 = vperm.xlu0 %5471, %v1473_v6   ;;  %s1430_s7 = scalar_lea.vmem %s5731_s5, %s4500_s2  ;;  %s5993_s10 = scalar_lea.vmem %s5971_s27, %s4500_s2 }
  0x70   : > { %v5995_v11 = vld [vmem:[%s1430_s7] sm:$0xff]  ;;  %v5997_v12 = vld [vmem:[%s1430_s7 + $0x8] sm:$0xff]  ;;  %v5999_v13 = vld [vmem:[%s1430_s7 + $0x10] sm:$0xff] }
  0x71   : > { %v6001_v14 = vld [vmem:[%s1430_s7 + $0x18] sm:$0xff] }
  0x73   : > { %1499 = vperm.xlu1 %5472, %v1491_v7   ;;  %1496 = vperm.xlu0 %5471, %v1490_v8  }
  0x77   : > { %1505 = vperm.xlu1 %5472, %v1493_v9   ;;  %1502 = vperm.xlu0 %5471, %v1492_v10  }
  0xe6   : > { %v1457_v18 = vpop.permute.xlu1 %1456  ;;  %v1451_v19 = vpop.permute.xlu0 %1450 }
  0xe7   : > { %vm1467_vm0 = vcmp.eq.s32.totalorder %v1457_v18, %v4503_v17  ;;  %vm1465_vm1 = vcmp.eq.s32.totalorder %v1451_v19, %v4503_v17 }
  0xe8   : > { %v6010_v21 = vsel %vm1467_vm0, 0.0, %v5722_v20  ;;  %v6012_v22 = vsel %vm1465_vm1, 0.0, %v5722_v20 }
  0xea   : > { %v1460_v23 = vpop.permute.xlu1 %1459  ;;  %v1454_v24 = vpop.permute.xlu0 %1453 }
  0xeb   : > { %vm1468_vm2 = vcmp.eq.s32.totalorder %v1460_v23, %v4503_v17  ;;  %vm1466_vm3 = vcmp.eq.s32.totalorder %v1454_v24, %v4503_v17 }
  0xec   : > { %v6014_v25 = vsel %vm1468_vm2, 0.0, %v5722_v20  ;;  %v6016_v26 = vsel %vm1466_vm3, 0.0, %v5722_v20 }
  0xee   : > { %v1481_v28 = vpop.permute.xlu1 %1480  ;;  %v1478_v29 = vpop.permute.xlu0 %1477 }
  0xef   : > { %vm1487_vm4 = vcmp.eq.s32.totalorder %v1481_v28, %v4504_v27  ;;  %vm1486_vm5 = vcmp.eq.s32.totalorder %v1478_v29, %v4504_v27 }
  0xf0   : > { %v6019_v30 = vsel %vm1487_vm4, 0.0, %v5722_v20  ;;  %v6021_v31 = vsel %vm1486_vm5, 0.0, %v5722_v20 }
  0xf2   : > { %v1500_v33 = vpop.permute.xlu1 %1499  ;;  %v1497_v34 = vpop.permute.xlu0 %1496 }
  0xf3   : > { %vm1512_vm6 = vcmp.eq.s32.totalorder %v1500_v33, %v4505_v32  ;;  %vm1511_vm7 = vcmp.eq.s32.totalorder %v1497_v34, %v4505_v32 }
  0xf4   : > { %v6024_v35 = vsel %vm1512_vm6, 0.0, %v5722_v20  ;;  %v6026_v36 = vsel %vm1511_vm7, 0.0, %v5722_v20 }
  0xf6   : > { %v1506_v37 = vpop.permute.xlu1 %1505  ;;  %v1503_v38 = vpop.permute.xlu0 %1502 }
  0xf7   : > { %vm1514_vm8 = vcmp.eq.s32.totalorder %v1506_v37, %v4505_v32  ;;  %vm1513_vm9 = vcmp.eq.s32.totalorder %v1503_v38, %v4505_v32 }
  0xf8   : > { %v6028_v39 = vsel %vm1514_vm8, 0.0, %v5722_v20  ;;  %v6030_v40 = vsel %vm1513_vm9, 0.0, %v5722_v20 }
  0xf9 LB: >> { %vm1543_vm10 = vcmask 261120   ;;  %s6062_s15 = sshll.u32 %s5639_s11, 5  ;;  %s1646_s22 = scalar_lea.vmem %s5786_s24, %s5639_s11  ;;  %vm1837_vm11 = vcmask 64512   ;;  %s5639_s11 = sphi %s6040_s11, %s1524_s11   ;;  %v5635_v44 = vphi %v6038_v44, %v6533_v44   ;;  %v5631_v43 = vphi %v6036_v43, %v6532_v43   ;;  %v5627_v42 = vphi %v6034_v42, %v6531_v42   ;;  %v5623_v41 = vphi %v6032_v41, %v6530_v41  }
  0xfa   : >> { %4813 = vmatprep.mubr.msk.f32.mxu1 %vm1543_vm10, %v5995_v11  ;;  %4799 = vmatprep.mubr.msk.f32.mxu0 %vm1543_vm10, %v5995_v11  ;;  %s1641_s16 = scalar_lea.vmem %s5781_s19, %s6062_s15  ;;  %s1530_s18 = scalar_lea.vmem %s5771_s8, %s6062_s15  ;;  %v4512_v57 = vld [vmem:[%s1646_s22] ss:$0 sm:$0xff]  ;;  %vm6088_vm12 = vmpackc.low %vm1837_vm11, %vm1837_vm11 }
  0xfb   : >> { %v1642_v45 = vld [vmem:[%s1641_s16] sm:$0xff]  ;;  %v1643_v46 = vld [vmem:[%s1641_s16 + $0x8] sm:$0xff]  ;;  %v1644_v47 = vld [vmem:[%s1641_s16 + $0x10] sm:$0xff]  ;;  %s1535_s23 = scalar_lea.vmem %s5776_s14, %s5639_s11  ;;  %s1739_s26 = scalar_lea.vmem %s5791_s30, %s6062_s15 }
  0xfc   : >> { %v5111_v48 = vpack.c.bf16 %v1643_v46, %v1642_v45  ;;  %v1645_v49 = vld [vmem:[%s1641_s16 + $0x18] sm:$0xff]  ;;  %v1531_v50 = vld [vmem:[%s1530_s18] sm:$0xff]  ;;  %v1532_v51 = vld [vmem:[%s1530_s18 + $0x8] sm:$0xff]  ;;  %s1744_s1 = scalar_lea.vmem %s5796_s6, %s5639_s11  ;;  %s6529_s0 = sld [smem:[#allocation2_spill]] }
  0xfd   : >> { %v5115_v52 = vpack.c.bf16 %v1645_v49, %v1644_v47  ;;  %v5103_v53 = vpack.c.bf16 %v1532_v51, %v1531_v50  ;;  %v1533_v54 = vld [vmem:[%s1530_s18 + $0x10] sm:$0xff]  ;;  %v1534_v55 = vld [vmem:[%s1530_s18 + $0x18] sm:$0xff]  ;;  %v4507_v59 = vld [vmem:[%s1535_s23] ss:$0 sm:$0xff]  ;;  %s4534_s2 = sshll.u32 %s5639_s11, 3  ;;  %s1524_s11 = sadd.s32 1, %s5639_s11  }
  0xfe   : >> { %5112 = vmatprep.subr.bf16.mxu1 %v5111_v48  ;;  %v5107_v56 = vpack.c.bf16 %v1534_v55, %v1533_v54  ;;  %v1740_v20 = vld [vmem:[%s1739_s26] sm:$0xff]  ;;  %v1741_v23 = vld [vmem:[%s1739_s26 + $0x8] sm:$0xff]  ;;  %v1742_v24 = vld [vmem:[%s1739_s26 + $0x10] sm:$0xff]  ;;  %p1521_p4 = scmp.ge.s32.totalorder %s1524_s11, 4  }
  0xff   : >> { %5114 = vmatpush3.bf16.msra.mxu1 %v5111_v48  ;;  %5104 = vmatprep.subr.bf16.mxu0 %v5103_v53  ;;  %v5119_v27 = vpack.c.bf16 %v1741_v23, %v1740_v20  ;;  %v1743_v28 = vld [vmem:[%s1739_s26 + $0x18] sm:$0xff]  ;;  %v4517_v20 = vld [vmem:[%s1744_s1] ss:$0 sm:$0xff]  ;;  %s6534_s15 = sld [smem:[#allocation3_spill]] (%p1521_p4)  ;;  %s6535_s11 = sld [smem:[#allocation22_spill]] (%p1521_p4) }
 0x100   : >> { %5116 = vmatprep.subr.bf16.mxu1 %v5115_v52  ;;  %5106 = vmatpush3.bf16.msra.mxu0 %v5103_v53  ;;  %v5123_v29 = vpack.c.bf16 %v1743_v28, %v1742_v24  ;;  %s6536_s16 = sld [smem:[#allocation24_spill]] (%p1521_p4)  ;;  %s6537_s18 = sld [smem:[#allocation20_spill]] (%p1521_p4) }
 0x101   : >> { %5108 = vmatprep.subr.bf16.mxu0 %v5107_v56  ;;  %s6538_s22 = sld [smem:[#allocation21_spill]] (%p1521_p4)  ;;  %s6539_s23 = sld [smem:[#allocation23_spill]] (%p1521_p4) }
 0x102   : >> { %s2097_s7 = scalar_lea.vmem %s6529_s0, %s4534_s2  ;;  %s6540_s26 = sld [smem:[#allocation25_spill]] (%p1521_p4) }
 0x103   : >> { %5118 = vmatpush3.bf16.msra.mxu1 %v5115_v52  ;;  %s6541_s1 = sld [smem:[#allocation26_spill]] (%p1521_p4)  ;;  %s6542_s0 = sld [smem:[#allocation27_spill]] (%p1521_p4) }
 0x104   : >> { %5110 = vmatpush3.bf16.msra.mxu0 %v5107_v56  ;;  %s6230_s2 = smov (%p1521_p4), 0  }
 0x105   : >> { %5120 = vmatprep.subr.bf16.mxu0 %v5119_v27 }
 0x106   : >> { %4814 = vmatmul.mubr.msk.f32.vlgmr.msra.gmra.mrb[0].mxu1 %vm1543_vm10, %v5997_v12 }
 0x107   : >> { %4816 = vmatprep.mubr.msk.f32.mxu1 %vm1543_vm10, %v5999_v13  ;;  %4800 = vmatmul.mubr.msk.f32.vlgmr.msra.gmra.mrb[0].mxu0 %vm1543_vm10, %v5997_v12 }
 0x108   : >> { %4802 = vmatprep.mubr.msk.f32.mxu0 %vm1543_vm10, %v5999_v13  ;;  %5122 = vmatpush3.bf16.msra.mxu0 %v5119_v27 }
 0x109   : >> { %5124 = vmatprep.subr.bf16.mxu0 %v5123_v29 }
 0x10a   : >> { %4817 = vmatmul.mubr.msk.f32.gmra.mrb[2].mxu1 %vm1543_vm10, %v6001_v14 }
 0x10b   : >> { %4803 = vmatmul.mubr.msk.f32.gmra.mrb[2].mxu0 %vm1543_vm10, %v6001_v14 }
 0x10c   : >> { %4827 = vmatprep.mubr.msk.f32.mxu0 %vm1543_vm10, %v5995_v11  ;;  %5126 = vmatpush3.bf16.msra.mxu0 %v5123_v29 }
 0x10f   : >> { %4828 = vmatmul.mubr.msk.f32.vlgmr.msra.gmra.mrb[4].mxu0 %vm1543_vm10, %v5997_v12 }
 0x110   : >> { %4830 = vmatprep.mubr.msk.f32.mxu0 %vm1543_vm10, %v5999_v13 }
 0x113   : >> { %4831 = vmatmul.mubr.msk.f32.gmra.mrb[6].mxu0 %vm1543_vm10, %v6001_v14 }
 0x1d9   : >> { %v4815_v58 = vpop.f32.mrb[0].mxu1 }
 0x1da   : >> { %v1726_v60 = vadd.f32 %v4815_v58, %v4512_v57  ;;  %v1720_v61 = vpop.f32.mrb[1].mxu1  ;;  %v4801_v62 = vpop.f32.mrb[0].mxu0 }
 0x1db   : >> { %v1721_v63 = vadd.f32 %v4512_v57, %v1720_v61  ;;  %v1622_v0 = vpop.f32.mrb[1].mxu0  ;;  %v1628_v18 = vadd.f32 %v4801_v62, %v4507_v59 }
 0x1dc   : >> { %v1623_v2 = vadd.f32 %v4507_v59, %v1622_v0 }
 0x1dd   : >> { %v5127_v3 = vpack.c.bf16 %v1726_v60, %v1721_v63  ;;  %v4818_v4 = vpop.f32.mrb[2].mxu1 }
 0x1de   : >> { %v1736_v5 = vadd.f32 %v4818_v4, %v4512_v57  ;;  %v1730_v6 = vpop.f32.mrb[3].mxu1  ;;  %v4804_v7 = vpop.f32.mrb[2].mxu0  ;;  %4841 = vmatprep.mubr.msk.f32.mxu1 %vm1837_vm11, %v1623_v2 }
 0x1df   : >> { %5129 = vmatprep.subr.msk.bf16.mxu1 %vm6088_vm12, %v5127_v3  ;;  %v1731_v8 = vadd.f32 %v4512_v57, %v1730_v6  ;;  %v1632_v9 = vpop.f32.mrb[3].mxu0  ;;  %v1638_v19 = vadd.f32 %v4804_v7, %v4507_v59 }
 0x1e0   : >> { %5132 = vmatpush3.bf16.xpose.msk.msra.mxu1 %vm6088_vm12, %v5127_v3  ;;  %v1633_v17 = vadd.f32 %v4507_v59, %v1632_v9 }
 0x1e1   : >> { %v5133_v10 = vpack.c.bf16 %v1736_v5, %v1731_v8 }
 0x1e3   : >> { %5135 = vmatprep.subr.msk.bf16.mxu1 %vm6088_vm12, %v5133_v10 }
 0x1e8   : >> { %5138 = vmatpush3.bf16.xpose.msk.msra.mxu1 %vm6088_vm12, %v5133_v10 }
 0x1ef   : >> { %4842 = vmatmul.mubr.msk.f32.vlgmr.msra.gmra.mrb[4].mxu1 %vm1837_vm11, %v1628_v18 }
 0x1f0   : >> { %4844 = vmatprep.mubr.msk.f32.mxu1 %vm1837_vm11, %v1633_v17 }
 0x1f3   : >> { %4845 = vmatmul.mubr.msk.f32.gmra.mrb[6].mxu1 %vm1837_vm11, %v1638_v19  ;;  %v4829_v19 = vpop.f32.mrb[4].mxu0 }
 0x1f4   : >> { %v1818_v23 = vpop.f32.mrb[5].mxu0  ;;  %v1824_v24 = vadd.f32 %v4829_v19, %v4517_v20 }
 0x1f5   : >> { %v1819_v27 = vadd.f32 %v4517_v20, %v1818_v23  ;;  %v4832_v29 = vpop.f32.mrb[6].mxu0 }
 0x1f7   : >> { %v5139_v28 = vpack.c.bf16 %v1824_v24, %v1819_v27 }
 0x1f9   : >> { %5140 = vmatprep.subr.bf16.mxu0 %v5139_v28  ;;  %5305 = vmatprep.subr.bf16.mxu1 %v5139_v28 }
 0x1fa   : >> { %5142 = vmatpush3.bf16.msra.mxu0 %v5139_v28  ;;  %5307 = vmatpush3.bf16.msra.mxu1 %v5139_v28 }
 0x2c2   : >> { %v4843_v32 = vpop.f32.mrb[4].mxu1 }
 0x2c3   : >> { %v1928_v33 = vpop.f32.mrb[5].mxu1  ;;  %v1948_v34 = vmul.f32 0.35355338, %v4843_v32  ;;  %v1828_v32 = vpop.f32.mrb[7].mxu0 }
 0x2c4   : >> { %v1947_v37 = vmul.f32 0.35355338, %v1928_v33  ;;  %v1834_v33 = vadd.f32 %v4832_v29, %v4517_v20 }
 0x2c5   : >> { %v1952_v47 = vadd.f32 %v1948_v34, %v6016_v26  ;;  %v1829_v34 = vadd.f32 %v4517_v20, %v1828_v32 }
 0x2c6   : >> { %v1951_v38 = vadd.f32 %v1947_v37, %v6012_v22  ;;  %v4846_v45 = vpop.f32.mrb[6].mxu1 }
 0x2c7   : >> { %v1938_v46 = vpop.f32.mrb[7].mxu1  ;;  %v1950_v48 = vmul.f32 0.35355338, %v4846_v45  ;;  %v1958_v53 = vsel %vm1543_vm10, %v1952_v47, -inf  ;;  %v5143_v37 = vpack.c.bf16 %v1834_v33, %v1829_v34 }
 0x2c8   : >> { %v1949_v49 = vmul.f32 0.35355338, %v1938_v46  ;;  %v1955_v50 = vsel %vm1543_vm10, %v1951_v38, -inf }
 0x2c9   : >> { %1956 = vmax.xlane.f32.xlu0 %v1955_v50  ;;  %v1954_v52 = vadd.f32 %v1950_v48, %v6014_v25  ;;  %5144 = vmatprep.subr.bf16.mxu0 %v5143_v37 }
 0x2ca   : >> { %v1953_v51 = vadd.f32 %v1949_v49, %v6010_v21  ;;  %5306 = vmatprep.subr.bf16.mxu1 %v5143_v37  ;;  %5146 = vmatpush3.bf16.msra.mxu0 %v5143_v37 }
 0x2cb   : >> { %v1964_v55 = vsel %vm1543_vm10, %v1954_v52, -inf  ;;  %5308 = vmatpush3.bf16.msra.mxu1 %v5143_v37 }
 0x2cc   : >> { %v1961_v54 = vsel %vm1543_vm10, %v1953_v51, -inf }
 0x2cd   : >> { %1959 = vmax.xlane.f32.xlu0 %v1958_v53  ;;  %1962 = vmax.xlane.f32.xlu1 %v1961_v54 }
 0x2d1   : >> { %1965 = vmax.xlane.f32.xlu1 %v1964_v55 }
 0x356   : >> { %v1957_v56 = vpop.xlane.xlu0 %1956 }
 0x357   : >> { %v1967_v57 = vsub.f32 %v1951_v38, %v1957_v56  ;;  %v2098_v38 = vld [vmem:[%s2097_s7] sm:$0xff] }
 0x358   : >> { %4861 = vmatprep.subr.mxu0 %v2098_v38 }
 0x359   : >> { %v1971_v58 = vmul.f32 1.442695, %v1967_v57 }
 0x35a   : >> { %v1960_v59 = vpop.xlane.xlu0 %1959  ;;  %v1963_v60 = vpop.xlane.xlu1 %1962 }
 0x35b   : >> { %5473 = vpow2.f32 %v1971_v58  ;;  %v1968_v61 = vsub.f32 %v1952_v47, %v1960_v59  ;;  %v1969_v62 = vsub.f32 %v1953_v51, %v1963_v60 }
 0x35d   : >> { %v1973_v63 = vmul.f32 1.442695, %v1968_v61  ;;  %v1975_v0 = vmul.f32 1.442695, %v1969_v62 }
 0x35e   : >> { %v1966_v2 = vpop.xlane.xlu1 %1965 }
 0x35f   : >> { %5475 = vpow2.f32 %v1973_v63  ;;  %v1970_v3 = vsub.f32 %v1954_v52, %v1966_v2 }
 0x360   : >> { %5477 = vpow2.f32 %v1975_v0 }
 0x361   : >> { %v1977_v4 = vmul.f32 1.442695, %v1970_v3 }
 0x363   : >> { %5479 = vpow2.f32 %v1977_v4 }
 0x365   : >> { %v5474_v5 = vpop.eup %5473 }
 0x366   : >> { %v1979_v6 = vsel %vm1543_vm10, %v5474_v5, 0.0 }
 0x367   : >> { %1980 = vadd.xlane.f32.xlu0 %v1979_v6 }
 0x369   : >> { %v5476_v7 = vpop.eup %5475 }
 0x36a   : >> { %v5478_v8 = vpop.eup %5477  ;;  %v1982_v9 = vsel %vm1543_vm10, %v5476_v7, 0.0 }
 0x36b   : >> { %1983 = vadd.xlane.f32.xlu1 %v1982_v9  ;;  %v1985_v10 = vsel %vm1543_vm10, %v5478_v8, 0.0 }
 0x36c   : >> { %1986 = vadd.xlane.f32.xlu0 %v1985_v10 }
 0x36d   : >> { %v5480_v17 = vpop.eup %5479 }
 0x36e   : >> { %v1988_v18 = vsel %vm1543_vm10, %v5480_v17, 0.0 }
 0x36f   : >> { %1989 = vadd.xlane.f32.xlu1 %v1988_v18 }
 0x3f4   : >> { %v1981_v45 = vpop.xlane.xlu0 %1980 }
 0x3f5   : >> { %5481 = vrcp.f32 %v1981_v45 }
 0x3f8   : >> { %v1984_v46 = vpop.xlane.xlu1 %1983 }
 0x3f9   : >> { %v1987_v47 = vpop.xlane.xlu0 %1986  ;;  %5483 = vrcp.f32 %v1984_v46 }
 0x3fa   : >> { %5485 = vrcp.f32 %v1987_v47  ;;  %v2291_v47 = vld [vmem:[%s6535_s11] sm:$0xff] (%p1521_p4) }
 0x3fc   : >> { %v1990_v48 = vpop.xlane.xlu1 %1989 }
 0x3fd   : >> { %5487 = vrcp.f32 %v1990_v48  ;;  %v2292_v48 = vld [vmem:[%s6535_s11 + $0x8] sm:$0xff] (%p1521_p4) }
 0x3ff   : >> { %v5482_v49 = vpop.eup %5481 }
 0x400   : >> { %v1995_v50 = vmul.f32 %v5482_v49, %v5474_v5  ;;  %v2293_v49 = vld [vmem:[%s6535_s11 + $0x10] sm:$0xff] (%p1521_p4) }
 0x402   : >> { %4855 = vmatprep.mubr.msk.f32.mxu0 %vm1543_vm10, %v1995_v50  ;;  %v5147_v50 = vpack.c.bf16 (%p1521_p4), %v2292_v48, %v2291_v47  ;;  %v2448_v47 = vld [vmem:[%s6536_s16 + $0x68] sm:$0xff] (%p1521_p4) }
 0x403   : >> { %v5484_v51 = vpop.eup %5483 }
 0x404   : >> { %v5486_v52 = vpop.eup %5485  ;;  %v1996_v53 = vmul.f32 %v5484_v51, %v5476_v7  ;;  %v2294_v51 = vld [vmem:[%s6535_s11 + $0x18] sm:$0xff] (%p1521_p4) }
 0x405   : >> { %v1997_v54 = vmul.f32 %v5486_v52, %v5478_v8  ;;  %v5151_v52 = vpack.c.bf16 (%p1521_p4), %v2294_v51, %v2293_v49  ;;  %v2449_v49 = vld [vmem:[%s6536_s16 + $0x70] sm:$0xff] (%p1521_p4) }
 0x406   : >> { %4856 = vmatmul.mubr.msk.f32.vlgmr.msra.gmra.mrb[8].mxu0 %vm1543_vm10, %v1996_v53  ;;  %v2435_v53 = vld [vmem:[%s6536_s16] sm:$0xff] (%p1521_p4) }
 0x407   : >> { %v5488_v55 = vpop.eup %5487  ;;  %4858 = vmatprep.mubr.msk.f32.mxu1 %vm1543_vm10, %v1997_v54  ;;  %4862 = vmatpush3.msra.mxu0 %v2098_v38  ;;  %v2436_v54 = vld [vmem:[%s6536_s16 + $0x8] sm:$0xff] (%p1521_p4) }
 0x408   : >> { %v1998_v56 = vmul.f32 %v5488_v55, %v5480_v17  ;;  %5148 = vmatprep.subr.bf16.mxu0 (%p1521_p4), %v5147_v50  ;;  %v5155_v55 = vpack.c.bf16 (%p1521_p4), %v2436_v54, %v2435_v53 }
 0x40a   : >> { %4859 = vmatmul.mubr.msk.f32.vlgmr.msra.gmra.mrb[8].mxu1 %vm1543_vm10, %v1998_v56  ;;  %5156 = vmatprep.subr.bf16.mxu1 (%p1521_p4), %v5155_v55 }
 0x40b   : > { %5158 = vmatpush3.bf16.msra.mxu1 (%p1521_p4), %v5155_v55 }
 0x4d9   : >> { %v4857_v57 = vpop.f32.mrb[8].mxu0 }
 0x4da   : >> { %v2077_v58 = vpop.f32.mrb[9].mxu0 }
 0x4db   : >> { %4863 = vmatprep.mubr.msk.f32.mxu0 %vm1837_vm11, %v2077_v58 }
 0x4dc   : >> { %4864 = vmatmul.mubr.msk.f32.vlgmr.msra.gmra.mrb[10].mxu0 %vm1837_vm11, %v4857_v57 }
 0x4dd   : >> { %v4860_v59 = vpop.f32.mrb[8].mxu1  ;;  %5150 = vmatpush3.bf16.msra.mxu0 (%p1521_p4), %v5147_v50  ;;  %v2450_v50 = vld [vmem:[%s6536_s16 + $0x78] sm:$0xff] (%p1521_p4) }
 0x4de   : >> { %v2087_v60 = vpop.f32.mrb[9].mxu1  ;;  %5152 = vmatprep.subr.bf16.mxu0 (%p1521_p4), %v5151_v52  ;;  %v5183_v51 = vpack.c.bf16 (%p1521_p4), %v2450_v50, %v2449_v49 }
 0x4df   : >> { %4866 = vmatprep.mubr.msk.f32.mxu0 %vm1837_vm11, %v2087_v60 }
 0x4e0   : >> { %4867 = vmatmul.mubr.msk.f32.gmra.mrb[12].mxu0 %vm1837_vm11, %v4860_v59 }
 0x4e1   : > { %5154 = vmatpush3.bf16.msra.mxu0 (%p1521_p4), %v5151_v52  ;;  %v4542_v52 = vld [vmem:[%s6539_s23] ss:$0 sm:$0xff] (%p1521_p4) }
 0x5af   : >> { %v4865_v61 = vpop.f32.mrb[10].mxu0 }
 0x5b0   : >> { %v2197_v62 = vadd.f32 %v5631_v43, %v4865_v61   ;;  %v2177_v63 = vpop.f32.mrb[11].mxu0 }
 0x5b1   : >> { %v2196_v0 = vadd.f32 %v5635_v44, %v2177_v63   ;;  %1523 = sbr.rel (!%p1521_p4) target bundleno = 249 (0xf9), region = 332 }
 0x5b2   : >> { %v6532_v43 = vmov %v2197_v62 }
 0x5b3   : >> { %v4868_v2 = vpop.f32.mrb[12].mxu0  ;;  %v6533_v44 = vmov %v2196_v0 }
 0x5b4   : >> { %v2199_v3 = vadd.f32 %v5623_v41, %v4868_v2   ;;  %v2187_v4 = vpop.f32.mrb[13].mxu0  ;;  %v4539_v44 = vld [vmem:[%s6534_s15] ss:$0 sm:$0xff] (%p1521_p4) }
 0x5b5   : >> { %v2198_v5 = vadd.f32 %v5627_v42, %v2187_v4   ;;  %v2207_v6 = vadd.f32 (%p1521_p4), %v4539_v44, %v2196_v0  ;;  %v2208_v8 = vadd.f32 (%p1521_p4), %v4539_v44, %v2197_v62 }
 0x5b6   : >> { %v6530_v41 = vmov %v2199_v3  ;;  %v2210_v9 = vadd.f32 (%p1521_p4), %v4539_v44, %v2199_v3 }
 0x5b7   : >> { %v6531_v42 = vmov %v2198_v5  ;;  %v2209_v7 = vadd.f32 (%p1521_p4), %v4539_v44, %v2198_v5  ;;  %v2211_v10 = vadd.f32 (%p1521_p4), %v2207_v6, %v5995_v11  ;;  %v2212_v18 = vadd.f32 (%p1521_p4), %v2208_v8, %v5997_v12  ;;  %v4540_v44 = vld [vmem:[%s6537_s18] ss:$0 sm:$0xff] (%p1521_p4) }
 0x5b8   : > { %v2214_v19 = vadd.f32 %v2210_v9, %v6001_v14 }
 0x5b9   : > { %v2213_v17 = vadd.f32 %v2209_v7, %v5999_v13  ;;  %v2218_v20 = vsel %vm1543_vm10, %v2211_v10, 0.0  ;;  %v2221_v21 = vsel %vm1543_vm10, %v2212_v18, 0.0  ;;  %v4541_v7 = vld [vmem:[%s6538_s22] ss:$0 sm:$0xff] }
 0x5ba   : > { %2219 = vadd.xlane.f32.xlu0 %v2218_v20  ;;  %v2227_v22 = vsel %vm1543_vm10, %v2214_v19, 0.0 }
 0x5bb   : > { %v2224_v23 = vsel %vm1543_vm10, %v2213_v17, 0.0 }
 0x5bc   : > { %2225 = vadd.xlane.f32.xlu1 %v2224_v23 }
 0x5be   : > { %2222 = vadd.xlane.f32.xlu0 %v2221_v21 }
 0x5c0   : > { %2228 = vadd.xlane.f32.xlu1 %v2227_v22 }
 0x647   : > { %v2220_v25 = vpop.xlane.xlu0 %2219 }
 0x648   : > { %v2231_v26 = vmul.f32 0.03125, %v2220_v25 }
 0x649   : > { %v2226_v11 = vpop.xlane.xlu1 %2225 }
 0x64a   : > { %v2233_v13 = vmul.f32 0.03125, %v2226_v11  ;;  %v2235_v41 = vsub.f32 %v2211_v10, %v2231_v26 }
 0x64b   : > { %v2223_v42 = vpop.xlane.xlu0 %2222 }
 0x64c   : > { %v2237_v12 = vsub.f32 %v2213_v17, %v2233_v13  ;;  %v2232_v43 = vmul.f32 0.03125, %v2223_v42  ;;  %v2239_v27 = vmul.f32 %v2235_v41, %v2235_v41 }
 0x64d   : > { %v2229_v14 = vpop.xlane.xlu1 %2228 }
 0x64e   : > { %v2234_v24 = vmul.f32 0.03125, %v2229_v14  ;;  %v2241_v28 = vmul.f32 %v2237_v12, %v2237_v12  ;;  %v2236_v29 = vsub.f32 %v2212_v18, %v2232_v43  ;;  %v2243_v33 = vsel %vm1543_vm10, %v2239_v27, 0.0  ;;  %v2439_v14 = vld [vmem:[%s6536_s16 + $0x20] sm:$0xff]  ;;  %v2440_v43 = vld [vmem:[%s6536_s16 + $0x28] sm:$0xff]  ;;  %v2441_v27 = vld [vmem:[%s6536_s16 + $0x30] sm:$0xff] }
 0x64f   : > { %2244 = vadd.xlane.f32.xlu0 %v2243_v33  ;;  %v2444_v33 = vld [vmem:[%s6536_s16 + $0x48] sm:$0xff] }
 0x650   : > { %v2238_v32 = vsub.f32 %v2214_v19, %v2234_v24  ;;  %v2249_v34 = vsel %vm1543_vm10, %v2241_v28, 0.0  ;;  %v2240_v37 = vmul.f32 %v2236_v29, %v2236_v29  ;;  %v5163_v24 = vpack.c.bf16 %v2440_v43, %v2439_v14  ;;  %v2442_v28 = vld [vmem:[%s6536_s16 + $0x38] sm:$0xff] }
 0x652   : > { %v2242_v38 = vmul.f32 %v2238_v32, %v2238_v32  ;;  %v2246_v45 = vsel %vm1543_vm10, %v2240_v37, 0.0 }
 0x653   : > { %2250 = vadd.xlane.f32.xlu0 %v2249_v34  ;;  %2247 = vadd.xlane.f32.xlu1 %v2246_v45  ;;  %v2445_v34 = vld [vmem:[%s6536_s16 + $0x50] sm:$0xff] }
 0x654   : > { %v2252_v46 = vsel %vm1543_vm10, %v2242_v38, 0.0  ;;  %v2446_v38 = vld [vmem:[%s6536_s16 + $0x58] sm:$0xff] }
 0x655   : > { %v5175_v45 = vpack.c.bf16 %v2446_v38, %v2445_v34 }
 0x657   : > { %2253 = vadd.xlane.f32.xlu1 %v2252_v46  ;;  %v2447_v46 = vld [vmem:[%s6536_s16 + $0x60] sm:$0xff] }
 0x658   : > { %v5179_v48 = vpack.c.bf16 %v2448_v47, %v2447_v46  ;;  %v4547_v46 = vld [vmem:[%s6540_s26] ss:$0 sm:$0xff] }
 0x6dc   : > { %v2245_v56 = vpop.xlane.xlu0 %2244 }
 0x6dd   : > { %v2255_v57 = vmul.f32 0.03125, %v2245_v56 }
 0x6df   : > { %v2259_v58 = vadd.f32 1e-05, %v2255_v57 }
 0x6e0   : > { %v2248_v59 = vpop.xlane.xlu1 %2247  ;;  %v2251_v60 = vpop.xlane.xlu0 %2250 }
 0x6e1   : > { %5489 = vrsqrt.f32 %v2259_v58  ;;  %v2256_v61 = vmul.f32 0.03125, %v2248_v59  ;;  %v2257_v62 = vmul.f32 0.03125, %v2251_v60 }
 0x6e3   : > { %v2260_v63 = vadd.f32 1e-05, %v2256_v61  ;;  %v2261_v0 = vadd.f32 1e-05, %v2257_v62 }
 0x6e4   : > { %v2254_v2 = vpop.xlane.xlu1 %2253 }
 0x6e5   : > { %5491 = vrsqrt.f32 %v2260_v63  ;;  %v2258_v3 = vmul.f32 0.03125, %v2254_v2 }
 0x6e6   : > { %5493 = vrsqrt.f32 %v2261_v0 }
 0x6e7   : > { %v2262_v4 = vadd.f32 1e-05, %v2258_v3 }
 0x6e9   : > { %5495 = vrsqrt.f32 %v2262_v4 }
 0x6eb   : > { %v5490_v5 = vpop.eup %5489 }
 0x6ec   : > { %v2267_v6 = vmul.f32 %v5490_v5, %v2235_v41  ;;  %v2437_v41 = vld [vmem:[%s6536_s16 + $0x10] sm:$0xff] }
 0x6ee   : > { %v2277_v8 = vmul.f32 %v4540_v44, %v2267_v6 }
 0x6ef   : > { %v5492_v9 = vpop.eup %5491 }
 0x6f0   : > { %v5494_v10 = vpop.eup %5493  ;;  %v6172_v17 = vadd.f32 %v4541_v7, %v2277_v8  ;;  %v2268_v18 = vmul.f32 %v5492_v9, %v2236_v29  ;;  %v5167_v29 = vpack.c.bf16 %v2442_v28, %v2441_v27 }
 0x6f1   : > { %v2269_v19 = vmul.f32 %v5494_v10, %v2237_v12  ;;  %v2438_v12 = vld [vmem:[%s6536_s16 + $0x18] sm:$0xff] }
 0x6f2   : > { %4877 = vmatprep.mubr.msk.f32.mxu0 %vm1543_vm10, %v6172_v17  ;;  %v2278_v20 = vmul.f32 %v4540_v44, %v2268_v18  ;;  %v5159_v42 = vpack.c.bf16 %v2438_v12, %v2437_v41 }
 0x6f3   : > { %v5496_v23 = vpop.eup %5495  ;;  %v2279_v21 = vmul.f32 %v4540_v44, %v2269_v19 }
 0x6f4   : > { %v6176_v22 = vadd.f32 %v4541_v7, %v2278_v20  ;;  %v2270_v25 = vmul.f32 %v5496_v23, %v2238_v32  ;;  %5160 = vmatprep.subr.bf16.mxu1 %v5159_v42  ;;  %v2443_v32 = vld [vmem:[%s6536_s16 + $0x40] sm:$0xff] }
 0x6f5   : > { %v6178_v11 = vadd.f32 %v4541_v7, %v2279_v21  ;;  %5162 = vmatpush3.bf16.msra.mxu1 %v5159_v42  ;;  %v5171_v37 = vpack.c.bf16 %v2444_v33, %v2443_v32 }
 0x6f6   : > { %4878 = vmatmul.mubr.msk.f32.vlgmr.msra.gmra.mrb[0].mxu0 %vm1543_vm10, %v6176_v22  ;;  %v2280_v26 = vmul.f32 %v4540_v44, %v2270_v25  ;;  %5164 = vmatprep.subr.bf16.mxu1 %v5163_v24 }
 0x6f7   : > { %4880 = vmatprep.mubr.msk.f32.mxu0 %vm1543_vm10, %v6178_v11 }
 0x6f8   : > { %v6184_v13 = vadd.f32 %v4541_v7, %v2280_v26 }
 0x6f9   : > { %5166 = vmatpush3.bf16.msra.mxu1 %v5163_v24 }
 0x6fa   : > { %4881 = vmatmul.mubr.msk.f32.gmra.mrb[2].mxu0 %vm1543_vm10, %v6184_v13  ;;  %5168 = vmatprep.subr.bf16.mxu1 %v5167_v29 }
 0x6fd   : > { %5170 = vmatpush3.bf16.msra.mxu1 %v5167_v29 }
 0x6fe   : > { %5172 = vmatprep.subr.bf16.mxu1 %v5171_v37 }
 0x701   : > { %5174 = vmatpush3.bf16.msra.mxu1 %v5171_v37 }
 0x702   : > { %5176 = vmatprep.subr.bf16.mxu1 %v5175_v45 }
 0x705   : > { %5178 = vmatpush3.bf16.msra.mxu1 %v5175_v45 }
 0x706   : > { %5180 = vmatprep.subr.bf16.mxu1 %v5179_v48 }
 0x709   : > { %5182 = vmatpush3.bf16.msra.mxu1 %v5179_v48 }
 0x70a   : > { %5184 = vmatprep.subr.bf16.mxu1 %v5183_v51 }
 0x70d   : > { %5186 = vmatpush3.bf16.msra.mxu1 %v5183_v51 }
 0x7c9   : > { %v4879_v53 = vpop.f32.mrb[0].mxu0 }
 0x7ca   : > { %v2386_v54 = vadd.f32 %v4879_v53, %v4542_v52  ;;  %v2380_v55 = vpop.f32.mrb[1].mxu0 }
 0x7cb   : > { %v2381_v56 = vadd.f32 %v4542_v52, %v2380_v55 }
 0x7cc   : > { %v2404_v57 = vmul.f32 0.044715, %v2386_v54  ;;  %v2400_v43 = vmul.f32 0.5, %v2386_v54 }
 0x7cd   : > { %v4882_v58 = vpop.f32.mrb[2].mxu0  ;;  %v2403_v59 = vmul.f32 0.044715, %v2381_v56  ;;  %v2399_v42 = vmul.f32 0.5, %v2381_v56 }
 0x7ce   : > { %v2408_v60 = vmul.f32 %v2404_v57, %v2386_v54  ;;  %v2396_v61 = vadd.f32 %v4882_v58, %v4542_v52  ;;  %v2390_v62 = vpop.f32.mrb[3].mxu0 }
 0x7cf   : > { %v2391_v63 = vadd.f32 %v4542_v52, %v2390_v62  ;;  %v2407_v0 = vmul.f32 %v2403_v59, %v2381_v56 }
 0x7d0   : > { %v2406_v2 = vmul.f32 0.044715, %v2396_v61  ;;  %v2412_v3 = vmul.f32 %v2408_v60, %v2386_v54  ;;  %v2402_v37 = vmul.f32 0.5, %v2396_v61 }
 0x7d1   : > { %v2405_v4 = vmul.f32 0.044715, %v2391_v63  ;;  %v2411_v5 = vmul.f32 %v2407_v0, %v2381_v56  ;;  %v2401_v33 = vmul.f32 0.5, %v2391_v63 }
 0x7d2   : > { %v2410_v44 = vmul.f32 %v2406_v2, %v2396_v61  ;;  %v2416_v6 = vadd.f32 %v2412_v3, %v2386_v54 }
 0x7d3   : > { %v2409_v7 = vmul.f32 %v2405_v4, %v2391_v63  ;;  %v2415_v8 = vadd.f32 %v2411_v5, %v2381_v56 }
 0x7d4   : > { %v2420_v9 = vmul.f32 0.7978846, %v2416_v6  ;;  %v2414_v10 = vmul.f32 %v2410_v44, %v2396_v61 }
 0x7d5   : > { %v2419_v18 = vmul.f32 0.7978846, %v2415_v8  ;;  %v2413_v19 = vmul.f32 %v2409_v7, %v2391_v63 }
 0x7d6   : > { %5497 = vtanh.f32 %v2420_v9  ;;  %v2418_v20 = vadd.f32 %v2414_v10, %v2396_v61 }
 0x7d7   : > { %5499 = vtanh.f32 %v2419_v18  ;;  %v2417_v23 = vadd.f32 %v2413_v19, %v2391_v63 }
 0x7d8   : > { %v2422_v21 = vmul.f32 0.7978846, %v2418_v20 }
 0x7d9   : > { %v2421_v25 = vmul.f32 0.7978846, %v2417_v23 }
 0x7da   : > { %5501 = vtanh.f32 %v2422_v21 }
 0x7db   : > { %5503 = vtanh.f32 %v2421_v25 }
 0x7e0   : > { %v5498_v26 = vpop.eup %5497 }
 0x7e1   : > { %v5500_v41 = vpop.eup %5499  ;;  %v2428_v12 = vadd.f32 1.0, %v5498_v26 }
 0x7e2   : > { %v2427_v14 = vadd.f32 1.0, %v5500_v41 }
 0x7e3   : > { %v2432_v29 = vmul.f32 %v2428_v12, %v2400_v43 }
 0x7e4   : > { %v5502_v24 = vpop.eup %5501  ;;  %v2431_v27 = vmul.f32 %v2427_v14, %v2399_v42 }
 0x7e5   : > { %v5504_v28 = vpop.eup %5503  ;;  %v2430_v32 = vadd.f32 1.0, %v5502_v24 }
 0x7e6   : > { %4915 = vmatprep.mubr.f32.mxu1 %v2431_v27  ;;  %v2429_v34 = vadd.f32 1.0, %v5504_v28 }
 0x7e7   : > { %4916 = vmatmul.mubr.f32.vlgmr.msra.gmra.mrb[0].mxu1 %v2432_v29  ;;  %v2434_v45 = vmul.f32 %v2430_v32, %v2402_v37 }
 0x7e8   : > { %v2433_v38 = vmul.f32 %v2429_v34, %v2401_v33  ;;  %v4548_v33 = vld [vmem:[%s6541_s1] ss:$0 sm:$0xff] }
 0x7ea   : > { %4918 = vmatprep.mubr.f32.mxu1 %v2433_v38  ;;  %v4549_v38 = vld [vmem:[%s6542_s0] ss:$0 sm:$0xff] }
 0x7eb   : > { %4919 = vmatmul.mubr.f32.gmra.mrb[2].mxu1 %v2434_v45 }
 0x8ba   : > { %v4917_v47 = vpop.f32.mrb[0].mxu1 }
 0x8bb   : > { %v2530_v48 = vadd.f32 %v4917_v47, %v4547_v46  ;;  %v2524_v49 = vpop.f32.mrb[1].mxu1 }
 0x8bc   : > { %v2525_v50 = vadd.f32 %v4547_v46, %v2524_v49 }
 0x8bd   : > { %v2544_v51 = vadd.f32 %v2530_v48, %v6176_v22 }
 0x8be   : > { %v4920_v52 = vpop.f32.mrb[2].mxu1  ;;  %v2543_v53 = vadd.f32 %v2525_v50, %v6172_v17 }
 0x8bf   : > { %v2540_v54 = vadd.f32 %v4920_v52, %v4547_v46  ;;  %v2534_v55 = vpop.f32.mrb[3].mxu1  ;;  %v2552_v56 = vsel %vm1543_vm10, %v2544_v51, 0.0 }
 0x8c0   : > { %v2535_v57 = vadd.f32 %v4547_v46, %v2534_v55  ;;  %2553 = vadd.xlane.f32.xlu1 %v2552_v56  ;;  %v2549_v58 = vsel %vm1543_vm10, %v2543_v53, 0.0 }
 0x8c1   : > { %2550 = vadd.xlane.f32.xlu0 %v2549_v58  ;;  %v2546_v59 = vadd.f32 %v2540_v54, %v6184_v13  ;;  %v6226_v58 = vmov 0.0  }
 0x8c2   : > { %v2545_v60 = vadd.f32 %v2535_v57, %v6178_v11 }
 0x8c3   : > { %v2558_v61 = vsel %vm1543_vm10, %v2546_v59, 0.0 }
 0x8c4   : > { %2559 = vadd.xlane.f32.xlu1 %v2558_v61  ;;  %v2555_v22 = vsel %vm1543_vm10, %v2545_v60, 0.0 }
 0x8c5   : > { %2556 = vadd.xlane.f32.xlu0 %v2555_v22 }
 0x94d   : > { %v2554_v17 = vpop.xlane.xlu1 %2553 }
 0x94e   : > { %v2562_v62 = vmul.f32 0.03125, %v2554_v17  ;;  %v2551_v63 = vpop.xlane.xlu0 %2550 }
 0x94f   : > { %v2561_v0 = vmul.f32 0.03125, %v2551_v63 }
 0x950   : > { %v2566_v2 = vsub.f32 %v2544_v51, %v2562_v62 }
 0x951   : > { %v2565_v3 = vsub.f32 %v2543_v53, %v2561_v0  ;;  %v2560_v4 = vpop.xlane.xlu1 %2559 }
 0x952   : > { %v2564_v5 = vmul.f32 0.03125, %v2560_v4  ;;  %v2557_v44 = vpop.xlane.xlu0 %2556  ;;  %v2570_v6 = vmul.f32 %v2566_v2, %v2566_v2 }
 0x953   : > { %v2563_v7 = vmul.f32 0.03125, %v2557_v44  ;;  %v2569_v13 = vmul.f32 %v2565_v3, %v2565_v3 }
 0x954   : > { %v2568_v8 = vsub.f32 %v2546_v59, %v2564_v5  ;;  %v2576_v11 = vsel %vm1543_vm10, %v2570_v6, 0.0  ;;  %v6228_v59 = vmov 0.0  }
 0x955   : > { %v2567_v9 = vsub.f32 %v2545_v60, %v2563_v7  ;;  %2577 = vadd.xlane.f32.xlu1 %v2576_v11  ;;  %v2573_v10 = vsel %vm1543_vm10, %v2569_v13, 0.0 }
 0x956   : > { %2574 = vadd.xlane.f32.xlu0 %v2573_v10  ;;  %v2572_v18 = vmul.f32 %v2568_v8, %v2568_v8 }
 0x957   : > { %v2571_v19 = vmul.f32 %v2567_v9, %v2567_v9 }
 0x958   : > { %v2582_v20 = vsel %vm1543_vm10, %v2572_v18, 0.0 }
 0x959   : > { %2583 = vadd.xlane.f32.xlu1 %v2582_v20  ;;  %v2579_v23 = vsel %vm1543_vm10, %v2571_v19, 0.0 }
 0x95a   : > { %2580 = vadd.xlane.f32.xlu0 %v2579_v23 }
 0x9e2   : > { %v2578_v21 = vpop.xlane.xlu1 %2577 }
 0x9e3   : > { %v2586_v25 = vmul.f32 0.03125, %v2578_v21  ;;  %v2575_v26 = vpop.xlane.xlu0 %2574 }
 0x9e4   : > { %v2585_v41 = vmul.f32 0.03125, %v2575_v26 }
 0x9e5   : > { %v2590_v12 = vadd.f32 1e-05, %v2586_v25 }
 0x9e6   : > { %v2589_v42 = vadd.f32 1e-05, %v2585_v41  ;;  %v2584_v14 = vpop.xlane.xlu1 %2583 }
 0x9e7   : > { %5505 = vrsqrt.f32 %v2590_v12  ;;  %v2588_v43 = vmul.f32 0.03125, %v2584_v14  ;;  %v2581_v24 = vpop.xlane.xlu0 %2580 }
 0x9e8   : > { %5507 = vrsqrt.f32 %v2589_v42  ;;  %v2587_v27 = vmul.f32 0.03125, %v2581_v24 }
 0x9e9   : > { %v2592_v28 = vadd.f32 1e-05, %v2588_v43 }
 0x9ea   : > { %v2591_v29 = vadd.f32 1e-05, %v2587_v27 }
 0x9eb   : > { %5509 = vrsqrt.f32 %v2592_v28 }
 0x9ec   : > { %5511 = vrsqrt.f32 %v2591_v29 }
 0x9f1   : > { %v5506_v32 = vpop.eup %5505 }
 0x9f2   : > { %v5508_v34 = vpop.eup %5507  ;;  %v2598_v37 = vmul.f32 %v5506_v32, %v2566_v2 }
 0x9f3   : > { %v2597_v45 = vmul.f32 %v5508_v34, %v2565_v3 }
 0x9f4   : > { %v2608_v46 = vmul.f32 %v4548_v33, %v2598_v37 }
 0x9f5   : > { %v5510_v47 = vpop.eup %5509  ;;  %v2607_v48 = vmul.f32 %v4548_v33, %v2597_v45 }
 0x9f6   : > { %v5512_v49 = vpop.eup %5511  ;;  %v6218_v50 = vadd.f32 %v4549_v38, %v2608_v46  ;;  %v2600_v51 = vmul.f32 %v5510_v47, %v2568_v8 }
 0x9f7   : > { %v6220_v52 = vadd.f32 %v4549_v38, %v2607_v48  ;;  %v2599_v53 = vmul.f32 %v5512_v49, %v2567_v9 }
 0x9f8   : > { %v2610_v54 = vmul.f32 %v4548_v33, %v2600_v51 }
 0x9f9   : > { %v2609_v55 = vmul.f32 %v4548_v33, %v2599_v53 }
 0x9fa   : > { %v6222_v56 = vadd.f32 %v4549_v38, %v2610_v54 }
 0x9fb   : > { %v6224_v57 = vadd.f32 %v4549_v38, %v2609_v55 }
 0x9fc LB: >> { %s6543_s7 = sld [smem:[#allocation6_spill]]  ;;  %s6544_s15 = sld [smem:[#allocation4_spill]]  ;;  %4940 = vmatprep.mubr.msk.f32.mxu1 %vm1543_vm10, %v6220_v52  ;;  %4929 = vmatprep.mubr.msk.f32.mxu0 %vm1543_vm10, %v6004_v15  ;;  %s5651_s2 = sphi %s6230_s2, %s2626_s2   ;;  %v5647_v59 = vphi %v6228_v59, %v6551_v59   ;;  %v5643_v58 = vphi %v6226_v58, %v6550_v58  }
 0x9fd   : >> { %s6246_s18 = sshll.u32 %s5651_s2, 5  ;;  %s6545_s26 = sld [smem:[#allocation7_spill]] }
 0x9fe   : >> { %s6546_s1 = sld [smem:[#allocation5_spill]] }
 0xa02   : >> { %s2724_s22 = scalar_lea.vmem %s6543_s7, %s6246_s18  ;;  %s2630_s23 = scalar_lea.vmem %s6544_s15, %s6246_s18 }
 0xa03   : >> { %v2725_v60 = vld [vmem:[%s2724_s22] sm:$0xff]  ;;  %v2726_v61 = vld [vmem:[%s2724_s22 + $0x8] sm:$0xff]  ;;  %v2727_v22 = vld [vmem:[%s2724_s22 + $0x10] sm:$0xff]  ;;  %s2729_s0 = scalar_lea.vmem %s6545_s26, %s5651_s2  ;;  %s6547_s15 = sld [smem:[#allocation8_spill]] }
 0xa04   : >> { %v5195_v17 = vpack.c.bf16 %v2726_v61, %v2725_v60  ;;  %v2728_v62 = vld [vmem:[%s2724_s22 + $0x18] sm:$0xff]  ;;  %v2631_v63 = vld [vmem:[%s2630_s23] sm:$0xff]  ;;  %v2632_v0 = vld [vmem:[%s2630_s23 + $0x8] sm:$0xff]  ;;  %s2635_s7 = scalar_lea.vmem %s6546_s1, %s5651_s2  ;;  %s6549_s26 = sld [smem:[#allocation10_spill]] }
 0xa05   : >> { %v5199_v2 = vpack.c.bf16 %v2728_v62, %v2727_v22  ;;  %v5187_v3 = vpack.c.bf16 %v2632_v0, %v2631_v63  ;;  %v2633_v4 = vld [vmem:[%s2630_s23 + $0x10] sm:$0xff]  ;;  %v2634_v5 = vld [vmem:[%s2630_s23 + $0x18] sm:$0xff]  ;;  %v4554_v6 = vld [vmem:[%s2729_s0] ss:$0 sm:$0xff]  ;;  %s4572_s1 = sshll.u32 %s5651_s2, 3 }
 0xa06   : >> { %5196 = vmatprep.subr.bf16.mxu1 %v5195_v17  ;;  %v5191_v44 = vpack.c.bf16 %v2634_v5, %v2633_v4  ;;  %v4551_v13 = vld [vmem:[%s2635_s7] ss:$0 sm:$0xff] }
 0xa07   : >> { %5198 = vmatpush3.bf16.msra.mxu1 %v5195_v17  ;;  %5188 = vmatprep.subr.bf16.mxu0 %v5187_v3 }
 0xa08   : >> { %5200 = vmatprep.subr.bf16.mxu1 %v5199_v2  ;;  %5190 = vmatpush3.bf16.msra.mxu0 %v5187_v3 }
 0xa09   : >> { %5192 = vmatprep.subr.bf16.mxu0 %v5191_v44  ;;  %s2834_s22 = scalar_lea.vmem %s6547_s15, %s6246_s18  ;;  %s6548_s18 = sld [smem:[#allocation9_spill]] }
 0xa0a   : >> { %v2835_v42 = vld [vmem:[%s2834_s22] sm:$0xff]  ;;  %v2836_v14 = vld [vmem:[%s2834_s22 + $0x8] sm:$0xff]  ;;  %v2837_v43 = vld [vmem:[%s2834_s22 + $0x10] sm:$0xff]  ;;  %s3134_s0 = scalar_lea.vmem %s6549_s26, %s4572_s1 }
 0xa0b   : >> { %5202 = vmatpush3.bf16.msra.mxu1 %v5199_v2  ;;  %v5203_v24 = vpack.c.bf16 %v2836_v14, %v2835_v42  ;;  %v2838_v27 = vld [vmem:[%s2834_s22 + $0x18] sm:$0xff] }
 0xa0c   : >> { %5194 = vmatpush3.bf16.msra.mxu0 %v5191_v44  ;;  %v5207_v28 = vpack.c.bf16 %v2838_v27, %v2837_v43 }
 0xa0d   : >> { %5204 = vmatprep.subr.bf16.mxu0 %v5203_v24 }
 0xa0e   : >> { %4941 = vmatmul.mubr.msk.f32.vlgmr.msra.gmra.mrb[0].mxu1 %vm1543_vm10, %v6218_v50 }
 0xa0f   : >> { %4943 = vmatprep.mubr.msk.f32.mxu1 %vm1543_vm10, %v6224_v57  ;;  %4930 = vmatmul.mubr.msk.f32.vlgmr.msra.gmra.mrb[0].mxu0 %vm1543_vm10, %v6007_v16  ;;  %s2839_s23 = scalar_lea.vmem %s6548_s18, %s5651_s2  ;;  %s2626_s2 = sadd.s32 1, %s5651_s2  }
 0xa10   : >> { %4954 = vmatprep.mubr.msk.f32.mxu0 %vm1543_vm10, %v6220_v52  ;;  %5206 = vmatpush3.bf16.msra.mxu0 %v5203_v24  ;;  %v4559_v62 = vld [vmem:[%s2839_s23] ss:$0 sm:$0xff]  ;;  %p2623_p5 = scmp.ge.s32.totalorder %s2626_s2, 4  }
 0xa11   : >> { %5208 = vmatprep.subr.bf16.mxu0 %v5207_v28  ;;  %s6552_s7 = sld [smem:[#allocation11_spill]] (%p2623_p5)  ;;  %v6312_v43 = vmov (%p2623_p5), 0.0   ;;  %v6314_v24 = vmov (%p2623_p5), 0.0   ;;  %v6318_v27 = vmov (%p2623_p5), 0.0   ;;  %s6320_s15 = smov (%p2623_p5), 0  }
 0xa12   : >> { %4944 = vmatmul.mubr.msk.f32.gmra.mrb[2].mxu1 %vm1543_vm10, %v6222_v56 }
 0xa14   : >> { %5210 = vmatpush3.bf16.msra.mxu0 %v5207_v28 }
 0xa17   : >> { %4955 = vmatmul.mubr.msk.f32.vlgmr.msra.gmra.mrb[2].mxu0 %vm1543_vm10, %v6218_v50 }
 0xa18   : >> { %4957 = vmatprep.mubr.msk.f32.mxu0 %vm1543_vm10, %v6224_v57 }
 0xa1b   : >> { %4958 = vmatmul.mubr.msk.f32.gmra.mrb[4].mxu0 %vm1543_vm10, %v6222_v56 }
 0xae1   : >> { %v4942_v7 = vpop.f32.mrb[0].mxu1 }
 0xae2   : >> { %v2821_v8 = vadd.f32 %v4942_v7, %v4554_v6  ;;  %v2815_v11 = vpop.f32.mrb[1].mxu1  ;;  %v4931_v9 = vpop.f32.mrb[0].mxu0 }
 0xae3   : >> { %v2816_v10 = vadd.f32 %v4554_v6, %v2815_v11  ;;  %v2715_v18 = vpop.f32.mrb[1].mxu0  ;;  %v2721_v12 = vadd.f32 %v4931_v9, %v4551_v13 }
 0xae4   : >> { %v2716_v19 = vadd.f32 %v4551_v13, %v2715_v18  ;;  %v3135_v13 = vld [vmem:[%s3134_s0] sm:$0xff] }
 0xae5   : >> { %v5211_v20 = vpack.c.bf16 %v2821_v8, %v2816_v10  ;;  %v4945_v23 = vpop.f32.mrb[2].mxu1 }
 0xae6   : >> { %v2831_v21 = vadd.f32 %v4945_v23, %v4554_v6  ;;  %v2825_v25 = vpop.f32.mrb[3].mxu1  ;;  %4968 = vmatprep.mubr.msk.f32.mxu1 %vm1837_vm11, %v2716_v19 }
 0xae7   : >> { %5213 = vmatprep.subr.msk.bf16.mxu1 %vm6088_vm12, %v5211_v20  ;;  %v2826_v26 = vadd.f32 %v4554_v6, %v2825_v25 }
 0xae8   : >> { %5216 = vmatpush3.bf16.xpose.msk.msra.mxu1 %vm6088_vm12, %v5211_v20 }
 0xae9   : >> { %v5217_v41 = vpack.c.bf16 %v2831_v21, %v2826_v26 }
 0xaea   : >> { %v4956_v17 = vpop.f32.mrb[2].mxu0 }
 0xaeb   : >> { %5219 = vmatprep.subr.msk.bf16.mxu1 %vm6088_vm12, %v5217_v41  ;;  %v2913_v63 = vpop.f32.mrb[3].mxu0  ;;  %v2919_v0 = vadd.f32 %v4956_v17, %v4559_v62 }
 0xaec   : >> { %v2914_v2 = vadd.f32 %v4559_v62, %v2913_v63 }
 0xaee   : >> { %v5223_v3 = vpack.c.bf16 %v2919_v0, %v2914_v2  ;;  %v4959_v4 = vpop.f32.mrb[4].mxu0 }
 0xaef   : >> { %v2923_v5 = vpop.f32.mrb[5].mxu0  ;;  %v2929_v44 = vadd.f32 %v4959_v4, %v4559_v62 }
 0xaf0   : >> { %5222 = vmatpush3.bf16.xpose.msk.msra.mxu1 %vm6088_vm12, %v5217_v41  ;;  %5224 = vmatprep.subr.bf16.mxu0 %v5223_v3  ;;  %v2924_v6 = vadd.f32 %v4559_v62, %v2923_v5 }
 0xaf1   : >> { %5226 = vmatpush3.bf16.msra.mxu0 %v5223_v3 }
 0xaf2   : >> { %v5227_v7 = vpack.c.bf16 %v2929_v44, %v2924_v6 }
 0xaf4   : >> { %5228 = vmatprep.subr.bf16.mxu0 %v5227_v7 }
 0xaf5   : >> { %5230 = vmatpush3.bf16.msra.mxu0 %v5227_v7 }
 0xaf6   : >> { %4982 = vmatprep.subr.mxu0 %v3135_v13 }
 0xaf7   : >> { %4969 = vmatmul.mubr.msk.f32.vlgmr.msra.gmra.mrb[4].mxu1 %vm1837_vm11, %v2721_v12  ;;  %v4575_v12 = vld [vmem:[%s6552_s7] ss:$0 sm:$0xff] (%p2623_p5) }
 0xbca   : >> { %v4970_v29 = vpop.f32.mrb[4].mxu1 }
 0xbcb   : >> { %v3017_v32 = vpop.f32.mrb[5].mxu1  ;;  %v3027_v33 = vmul.f32 0.35355338, %v4970_v29 }
 0xbcc   : >> { %v3026_v34 = vmul.f32 0.35355338, %v3017_v32 }
 0xbcd   : >> { %v3029_v38 = vadd.f32 %v3027_v33, %v6019_v30 }
 0xbce   : >> { %v3028_v37 = vadd.f32 %v3026_v34, %v6021_v31 }
 0xbcf   : >> { %v3033_v46 = vsel %vm1543_vm10, %v3029_v38, -inf }
 0xbd0   : >> { %v3030_v45 = vsel %vm1543_vm10, %v3028_v37, -inf }
 0xbd1   : >> { %3031 = vmax.xlane.f32.xlu0 %v3030_v45 }
 0xbd5   : >> { %3034 = vmax.xlane.f32.xlu0 %v3033_v46 }
 0xc5e   : >> { %v3032_v47 = vpop.xlane.xlu0 %3031 }
 0xc5f   : >> { %v3036_v48 = vsub.f32 %v3028_v37, %v3032_v47 }
 0xc61   : >> { %v3038_v49 = vmul.f32 1.442695, %v3036_v48 }
 0xc62   : >> { %v3035_v51 = vpop.xlane.xlu0 %3034 }
 0xc63   : >> { %5513 = vpow2.f32 %v3038_v49  ;;  %v3037_v53 = vsub.f32 %v3029_v38, %v3035_v51 }
 0xc65   : >> { %v3040_v54 = vmul.f32 1.442695, %v3037_v53 }
 0xc67   : >> { %5515 = vpow2.f32 %v3040_v54 }
 0xc6d   : >> { %v5514_v55 = vpop.eup %5513 }
 0xc6e   : >> { %v3042_v60 = vsel %vm1543_vm10, %v5514_v55, 0.0 }
 0xc6f   : >> { %3043 = vadd.xlane.f32.xlu1 %v3042_v60 }
 0xc71   : >> { %v5516_v61 = vpop.eup %5515 }
 0xc72   : >> { %v3045_v22 = vsel %vm1543_vm10, %v5516_v61, 0.0 }
 0xc73   : >> { %3046 = vadd.xlane.f32.xlu1 %v3045_v22 }
 0xcfc   : >> { %v3044_v8 = vpop.xlane.xlu1 %3043 }
 0xcfd   : >> { %5517 = vrcp.f32 %v3044_v8 }
 0xd00   : >> { %v3047_v11 = vpop.xlane.xlu1 %3046 }
 0xd01   : >> { %5519 = vrcp.f32 %v3047_v11 }
 0xd07   : >> { %v5518_v9 = vpop.eup %5517 }
 0xd08   : >> { %v3050_v10 = vmul.f32 %v5518_v9, %v5514_v55 }
 0xd0a   : >> { %4979 = vmatprep.mubr.msk.f32.mxu0 %vm1543_vm10, %v3050_v10 }
 0xd0b   : >> { %v5520_v18 = vpop.eup %5519 }
 0xd0c   : >> { %v3051_v19 = vmul.f32 %v5520_v18, %v5516_v61 }
 0xd0e   : >> { %4980 = vmatmul.mubr.msk.f32.vlgmr.msra.gmra.mrb[6].mxu0 %vm1543_vm10, %v3051_v19 }
 0xd0f   : >> { %4983 = vmatpush3.msra.mxu0 %v3135_v13 }
 0xde1   : >> { %v4981_v20 = vpop.f32.mrb[6].mxu0 }
 0xde2   : >> { %v3124_v23 = vpop.f32.mrb[7].mxu0 }
 0xde3   : >> { %4984 = vmatprep.mubr.msk.f32.mxu0 %vm1837_vm11, %v3124_v23 }
 0xde4   : >> { %4985 = vmatmul.mubr.msk.f32.vlgmr.msra.gmra.mrb[8].mxu0 %vm1837_vm11, %v4981_v20 }
 0xeb5   : > { %2625 = sbr.rel (!%p2623_p5) target bundleno = 2556 (0x9fc), region = 343 }
 0xeb7   : >> { %v4986_v21 = vpop.f32.mrb[8].mxu0 }
 0xeb8   : >> { %v3218_v25 = vadd.f32 %v5643_v58, %v4986_v21   ;;  %v3208_v26 = vpop.f32.mrb[9].mxu0 }
 0xeb9   : >> { %v3217_v41 = vadd.f32 %v5647_v59, %v3208_v26  }
 0xeba   : >> { %v6550_v58 = vmov %v3218_v25  ;;  %v6310_v14 = vadd.f32 (%p2623_p5), %v4575_v12, %v3218_v25 }
 0xebb   : >> { %v6551_v59 = vmov %v3217_v41  ;;  %v6308_v42 = vadd.f32 (%p2623_p5), %v4575_v12, %v3217_v41 }
 0xebc   : > { %v6316_v59 = vmov 0.0  }
 0xebd LB: >> { %s6553_s2 = sld [smem:[#allocation14_spill]]  ;;  %s6554_s22 = sld [smem:[#allocation12_spill]]  ;;  %5009 = vmatprep.mubr.msk.f32.mxu1 %vm1543_vm10, %v6308_v42  ;;  %4995 = vmatprep.mubr.msk.f32.mxu0 %vm1543_vm10, %v6220_v52  ;;  %vm3643_vm13 = vcmask 130048   ;;  %s5671_s15 = sphi %s6320_s15, %s3233_s15   ;;  %v5667_v27 = vphi %v6318_v27, %v6563_v27   ;;  %v5663_v59 = vphi %v6316_v59, %v6562_v59   ;;  %v5659_v24 = vphi %v6314_v24, %v6561_v24   ;;  %v5655_v43 = vphi %v6312_v43, %v6560_v43  }
 0xebe   : >> { %s6342_s18 = sshll.u32 %s5671_s15, 5  ;;  %s6555_s1 = sld [smem:[#allocation15_spill]] }
 0xebf   : >> { %s6556_s0 = sld [smem:[#allocation13_spill]] }
 0xec3   : >> { %s3349_s23 = scalar_lea.vmem %s6553_s2, %s6342_s18  ;;  %s3239_s26 = scalar_lea.vmem %s6554_s22, %s6342_s18 }
 0xec4   : >> { %v3350_v15 = vld [vmem:[%s3349_s23] sm:$0xff]  ;;  %v3351_v16 = vld [vmem:[%s3349_s23 + $0x8] sm:$0xff]  ;;  %v3352_v30 = vld [vmem:[%s3349_s23 + $0x10] sm:$0xff]  ;;  %s3354_s7 = scalar_lea.vmem %s6555_s1, %s5671_s15  ;;  %s6557_s22 = sld [smem:[#allocation16_spill]] }
 0xec5   : >> { %v5239_v31 = vpack.c.bf16 %v3351_v16, %v3350_v15  ;;  %v3353_v58 = vld [vmem:[%s3349_s23 + $0x18] sm:$0xff]  ;;  %v3240_v28 = vld [vmem:[%s3239_s26] sm:$0xff]  ;;  %v3241_v29 = vld [vmem:[%s3239_s26 + $0x8] sm:$0xff]  ;;  %s3244_s2 = scalar_lea.vmem %s6556_s0, %s5671_s15  ;;  %s4598_s0 = sshll.u32 %s5671_s15, 3 }
 0xec6   : >> { %v5243_v32 = vpack.c.bf16 %v3353_v58, %v3352_v30  ;;  %v5231_v33 = vpack.c.bf16 %v3241_v29, %v3240_v28  ;;  %v3242_v34 = vld [vmem:[%s3239_s26 + $0x10] sm:$0xff]  ;;  %v3243_v37 = vld [vmem:[%s3239_s26 + $0x18] sm:$0xff]  ;;  %v4582_v45 = vld [vmem:[%s3354_s7] ss:$0 sm:$0xff]  ;;  %s6559_s26 = sld [smem:[#allocation18_spill]] }
 0xec7   : >> { %5240 = vmatprep.subr.bf16.mxu1 %v5239_v31  ;;  %v5235_v38 = vpack.c.bf16 %v3243_v37, %v3242_v34  ;;  %v4577_v47 = vld [vmem:[%s3244_s2] ss:$0 sm:$0xff] }
 0xec8   : >> { %5242 = vmatpush3.bf16.msra.mxu1 %v5239_v31  ;;  %5232 = vmatprep.subr.bf16.mxu0 %v5231_v33 }
 0xec9   : >> { %5244 = vmatprep.subr.bf16.mxu1 %v5243_v32  ;;  %5234 = vmatpush3.bf16.msra.mxu0 %v5231_v33 }
 0xeca   : >> { %5236 = vmatprep.subr.bf16.mxu0 %v5235_v38  ;;  %s3443_s23 = scalar_lea.vmem %s6557_s22, %s6342_s18  ;;  %s6558_s18 = sld [smem:[#allocation17_spill]] }
 0xecb   : >> { %v3444_v0 = vld [vmem:[%s3443_s23] sm:$0xff]  ;;  %v3445_v2 = vld [vmem:[%s3443_s23 + $0x8] sm:$0xff]  ;;  %v3446_v3 = vld [vmem:[%s3443_s23 + $0x10] sm:$0xff] }
 0xecc   : >> { %5246 = vmatpush3.bf16.msra.mxu1 %v5243_v32  ;;  %v5247_v4 = vpack.c.bf16 %v3445_v2, %v3444_v0  ;;  %v3447_v5 = vld [vmem:[%s3443_s23 + $0x18] sm:$0xff]  ;;  %s3786_s7 = scalar_lea.vmem %s6559_s26, %s4598_s0 }
 0xecd   : >> { %5238 = vmatpush3.bf16.msra.mxu0 %v5235_v38  ;;  %v5251_v44 = vpack.c.bf16 %v3447_v5, %v3446_v3 }
 0xece   : >> { %5248 = vmatprep.subr.bf16.mxu0 %v5247_v4 }
 0xecf   : >> { %5010 = vmatmul.mubr.msk.f32.vlgmr.msra.gmra.mrb[0].mxu1 %vm1543_vm10, %v6310_v14 }
 0xed0   : >> { %4996 = vmatmul.mubr.msk.f32.vlgmr.msra.gmra.mrb[0].mxu0 %vm1543_vm10, %v6218_v50  ;;  %s3448_s1 = scalar_lea.vmem %s6558_s18, %s5671_s15  ;;  %s3233_s15 = sadd.s32 1, %s5671_s15  }
 0xed1   : >> { %4998 = vmatprep.mubr.msk.f32.mxu0 %vm1543_vm10, %v6224_v57  ;;  %5250 = vmatpush3.bf16.msra.mxu0 %v5247_v4  ;;  %p3230_p6 = scmp.ge.s32.totalorder %s3233_s15, 4  }
 0xed2   : >> { %5252 = vmatprep.subr.bf16.mxu0 %v5251_v44  ;;  %s6564_s2 = sld [smem:[#allocation19_spill]] (%p3230_p6)  ;;  %s6565_s15 = sld [smem:[#allocation30_spill]] (%p3230_p6) }
 0xed3   : > { %s6566_s22 = sld [smem:[#allocation32_spill]] (%p3230_p6)  ;;  %s6567_s23 = sld [smem:[#allocation28_spill]] (%p3230_p6) }
 0xed4   : >> { %4999 = vmatmul.mubr.msk.f32.gmra.mrb[2].mxu0 %vm1543_vm10, %v6222_v56  ;;  %s6568_s18 = sld [smem:[#allocation29_spill]] (%p3230_p6)  ;;  %s6569_s26 = sld [smem:[#allocation31_spill]] (%p3230_p6) }
 0xed5   : >> { %5020 = vmatprep.mubr.msk.f32.mxu0 %vm1543_vm10, %v6308_v42  ;;  %5254 = vmatpush3.bf16.msra.mxu0 %v5251_v44 }
 0xed8   : >> { %5021 = vmatmul.mubr.msk.f32.vlgmr.msra.gmra.mrb[4].mxu0 %vm1543_vm10, %v6310_v14 }
 0xfa2   : >> { %v5011_v46 = vpop.f32.mrb[0].mxu1 }
 0xfa3   : >> { %v3440_v48 = vadd.f32 %v5011_v46, %v4582_v45  ;;  %v3434_v49 = vpop.f32.mrb[1].mxu1  ;;  %v4997_v51 = vpop.f32.mrb[0].mxu0 }
 0xfa4   : >> { %v3435_v53 = vadd.f32 %v4582_v45, %v3434_v49  ;;  %v3330_v54 = vpop.f32.mrb[1].mxu0  ;;  %v3336_v62 = vadd.f32 %v4997_v51, %v4577_v47 }
 0xfa5   : >> { %v3331_v55 = vadd.f32 %v4577_v47, %v3330_v54 }
 0xfa6   : >> { %v5255_v60 = vpack.c.bf16 %v3440_v48, %v3435_v53 }
 0xfa7   : >> { %v5000_v61 = vpop.f32.mrb[2].mxu0  ;;  %5027 = vmatprep.mubr.msk.f32.mxu1 %vm1837_vm11, %v3331_v55 }
 0xfa8   : >> { %5257 = vmatprep.subr.msk.bf16.mxu1 %vm6088_vm12, %v5255_v60  ;;  %v3340_v22 = vpop.f32.mrb[3].mxu0  ;;  %v3346_v63 = vadd.f32 %v5000_v61, %v4577_v47 }
 0xfa9   : >> { %5260 = vmatpush3.bf16.xpose.msk.msra.mxu1 %vm6088_vm12, %v5255_v60  ;;  %v3341_v17 = vadd.f32 %v4577_v47, %v3340_v22  ;;  %v4585_v60 = vld [vmem:[%s3448_s1] ss:$0 sm:$0xff] }
 0xfab   : >> { %v5022_v55 = vpop.f32.mrb[4].mxu0 }
 0xfac   : >> { %v3522_v61 = vpop.f32.mrb[5].mxu0  ;;  %v3528_v22 = vadd.f32 %v5022_v55, %v4585_v60  ;;  %v3978_v55 = vld [vmem:[%s6565_s15] sm:$0xff] (%p3230_p6) }
 0xfb0   : >> { %5028 = vmatmul.mubr.msk.f32.vlgmr.msra.gmra.mrb[2].mxu1 %vm1837_vm11, %v3336_v62 }
 0xfb1   : >> { %5030 = vmatprep.mubr.msk.f32.mxu1 %vm1837_vm11, %v3341_v17  ;;  %v3523_v17 = vadd.f32 %v4585_v60, %v3522_v61  ;;  %v3979_v60 = vld [vmem:[%s6565_s15 + $0x8] sm:$0xff] (%p3230_p6)  ;;  %v3980_v61 = vld [vmem:[%s6565_s15 + $0x10] sm:$0xff] (%p3230_p6) }
 0xfb3   : >> { %v5261_v62 = vpack.c.bf16 %v3528_v22, %v3523_v17  ;;  %v5265_v22 = vpack.c.bf16 (%p3230_p6), %v3979_v60, %v3978_v55  ;;  %v3981_v17 = vld [vmem:[%s6565_s15 + $0x18] sm:$0xff] (%p3230_p6) }
 0xfb4   : >> { %5031 = vmatmul.mubr.msk.f32.gmra.mrb[4].mxu1 %vm1837_vm11, %v3346_v63  ;;  %v3787_v63 = vld [vmem:[%s3786_s7] sm:$0xff] }
 0xfb5   : >> { %5262 = vmatprep.subr.bf16.mxu0 %v5261_v62  ;;  %5043 = vmatprep.subr.mxu1 %v3787_v63 }
 0xfb6   : >> { %5264 = vmatpush3.bf16.msra.mxu0 %v5261_v62  ;;  %5044 = vmatpush3.msra.mxu1 %v3787_v63  ;;  %v5269_v62 = vpack.c.bf16 (%p3230_p6), %v3981_v17, %v3980_v61  ;;  %v4122_v63 = vld [vmem:[%s6566_s22] sm:$0xff] (%p3230_p6) }
 0xfb7   : > { %5266 = vmatprep.subr.bf16.mxu0 (%p3230_p6), %v5265_v22 }
0x1083   : >> { %v5029_v6 = vpop.f32.mrb[2].mxu1 }
0x1084   : >> { %v3616_v7 = vpop.f32.mrb[3].mxu1  ;;  %v3636_v13 = vmul.f32 0.35355338, %v5029_v6 }
0x1085   : >> { %v3635_v8 = vmul.f32 0.35355338, %v3616_v7 }
0x1086   : >> { %v3640_v18 = vadd.f32 %v3636_v13, %v6024_v35 }
0x1087   : >> { %v3639_v11 = vadd.f32 %v3635_v8, %v6026_v36  ;;  %v5032_v9 = vpop.f32.mrb[4].mxu1 }
0x1088   : >> { %v3626_v10 = vpop.f32.mrb[5].mxu1  ;;  %v3638_v19 = vmul.f32 0.35355338, %v5032_v9  ;;  %v3647_v26 = vsel %vm3643_vm13, %v3640_v18, -inf }
0x1089   : >> { %v3637_v20 = vmul.f32 0.35355338, %v3626_v10  ;;  %v3644_v23 = vsel %vm3643_vm13, %v3639_v11, -inf }
0x108a   : >> { %3645 = vmax.xlane.f32.xlu0 %v3644_v23  ;;  %v3642_v25 = vadd.f32 %v3638_v19, %v6028_v39 }
0x108b   : >> { %v3641_v21 = vadd.f32 %v3637_v20, %v6030_v40 }
0x108c   : >> { %v3653_v12 = vsel %vm3643_vm13, %v3642_v25, -inf }
0x108d   : >> { %v3650_v41 = vsel %vm3643_vm13, %v3641_v21, -inf }
0x108e   : >> { %3648 = vmax.xlane.f32.xlu0 %v3647_v26  ;;  %3651 = vmax.xlane.f32.xlu1 %v3650_v41 }
0x1092   : >> { %3654 = vmax.xlane.f32.xlu1 %v3653_v12 }
0x1117   : >> { %v3646_v15 = vpop.xlane.xlu0 %3645 }
0x1118   : >> { %v3656_v16 = vsub.f32 %v3639_v11, %v3646_v15 }
0x111a   : >> { %v3660_v30 = vmul.f32 1.442695, %v3656_v16 }
0x111b   : >> { %v3649_v31 = vpop.xlane.xlu0 %3648  ;;  %v3652_v58 = vpop.xlane.xlu1 %3651 }
0x111c   : >> { %5521 = vpow2.f32 %v3660_v30  ;;  %v3657_v28 = vsub.f32 %v3640_v18, %v3649_v31  ;;  %v3658_v29 = vsub.f32 %v3641_v21, %v3652_v58 }
0x111e   : >> { %v3662_v32 = vmul.f32 1.442695, %v3657_v28  ;;  %v3664_v33 = vmul.f32 1.442695, %v3658_v29 }
0x111f   : >> { %v3655_v34 = vpop.xlane.xlu1 %3654 }
0x1120   : >> { %5523 = vpow2.f32 %v3662_v32  ;;  %v3659_v37 = vsub.f32 %v3642_v25, %v3655_v34 }
0x1121   : >> { %5525 = vpow2.f32 %v3664_v33 }
0x1122   : >> { %v3666_v38 = vmul.f32 1.442695, %v3659_v37 }
0x1124   : >> { %5527 = vpow2.f32 %v3666_v38 }
0x1126   : >> { %v5522_v45 = vpop.eup %5521 }
0x1127   : >> { %v3668_v46 = vsel %vm3643_vm13, %v5522_v45, 0.0 }
0x1128   : >> { %3669 = vadd.xlane.f32.xlu0 %v3668_v46 }
0x112a   : >> { %v5524_v47 = vpop.eup %5523 }
0x112b   : >> { %v5526_v48 = vpop.eup %5525  ;;  %v3671_v49 = vsel %vm3643_vm13, %v5524_v47, 0.0 }
0x112c   : >> { %3672 = vadd.xlane.f32.xlu1 %v3671_v49  ;;  %v3674_v51 = vsel %vm3643_vm13, %v5526_v48, 0.0 }
0x112d   : >> { %3675 = vadd.xlane.f32.xlu0 %v3674_v51 }
0x112e   : >> { %v5528_v53 = vpop.eup %5527 }
0x112f   : >> { %v3677_v54 = vsel %vm3643_vm13, %v5528_v53, 0.0 }
0x1130   : >> { %3678 = vadd.xlane.f32.xlu1 %v3677_v54 }
0x11b5   : >> { %v3670_v0 = vpop.xlane.xlu0 %3669 }
0x11b6   : >> { %5529 = vrcp.f32 %v3670_v0  ;;  %v4123_v0 = vld [vmem:[%s6566_s22 + $0x8] sm:$0xff] (%p3230_p6) }
0x11b9   : >> { %v3673_v2 = vpop.xlane.xlu1 %3672 }
0x11ba   : >> { %v3676_v3 = vpop.xlane.xlu0 %3675  ;;  %5531 = vrcp.f32 %v3673_v2  ;;  %v5273_v2 = vpack.c.bf16 (%p3230_p6), %v4123_v0, %v4122_v63 }
0x11bb   : >> { %5533 = vrcp.f32 %v3676_v3 }
0x11bc   : > { %5274 = vmatprep.subr.bf16.mxu1 (%p3230_p6), %v5273_v2 }
0x11bd   : >> { %v3679_v4 = vpop.xlane.xlu1 %3678 }
0x11be   : >> { %5535 = vrcp.f32 %v3679_v4 }
0x11c0   : >> { %v5530_v5 = vpop.eup %5529 }
0x11c1   : >> { %v3684_v44 = vmul.f32 %v5530_v5, %v5522_v45 }
0x11c3   : >> { %5037 = vmatprep.mubr.msk.f32.mxu0 %vm3643_vm13, %v3684_v44 }
0x11c4   : >> { %v5532_v6 = vpop.eup %5531 }
0x11c5   : >> { %v5534_v7 = vpop.eup %5533  ;;  %v3685_v13 = vmul.f32 %v5532_v6, %v5524_v47 }
0x11c6   : >> { %v3686_v8 = vmul.f32 %v5534_v7, %v5526_v48 }
0x11c7   : >> { %5038 = vmatmul.mubr.msk.f32.vlgmr.msra.gmra.mrb[6].mxu0 %vm3643_vm13, %v3685_v13 }
0x11c8   : >> { %v5536_v11 = vpop.eup %5535  ;;  %5040 = vmatprep.mubr.msk.f32.mxu0 %vm3643_vm13, %v3686_v8  ;;  %5268 = vmatpush3.bf16.msra.mxu0 (%p3230_p6), %v5265_v22 }
0x11c9   : >> { %v3687_v9 = vmul.f32 %v5536_v11, %v5528_v53  ;;  %5270 = vmatprep.subr.bf16.mxu0 (%p3230_p6), %v5269_v62 }
0x11cb   : >> { %5041 = vmatmul.mubr.msk.f32.gmra.mrb[8].mxu0 %vm3643_vm13, %v3687_v9 }
0x11cc   : > { %5272 = vmatpush3.bf16.msra.mxu0 (%p3230_p6), %v5269_v62 }
0x129a   : >> { %v5039_v10 = vpop.f32.mrb[6].mxu0 }
0x129b   : >> { %v3766_v18 = vpop.f32.mrb[7].mxu0 }
0x129c   : >> { %5045 = vmatprep.mubr.msk.f32.mxu1 %vm1837_vm11, %v3766_v18 }
0x129d   : >> { %5046 = vmatmul.mubr.msk.f32.vlgmr.msra.gmra.mrb[6].mxu1 %vm1837_vm11, %v5039_v10 }
0x129e   : >> { %v5042_v19 = vpop.f32.mrb[8].mxu0  ;;  %5276 = vmatpush3.bf16.msra.mxu1 (%p3230_p6), %v5273_v2 }
0x129f   : >> { %v3776_v20 = vpop.f32.mrb[9].mxu0 }
0x12a0   : >> { %5048 = vmatprep.mubr.msk.f32.mxu1 %vm1837_vm11, %v3776_v20  ;;  %v4604_v20 = vld [vmem:[%s6567_s23] ss:$0 sm:$0xff] (%p3230_p6) }
0x12a1   : >> { %5049 = vmatmul.mubr.msk.f32.gmra.mrb[8].mxu1 %vm1837_vm11, %v5042_v19 }
0x1370   : >> { %v5047_v23 = vpop.f32.mrb[6].mxu1 }
0x1371   : >> { %v3886_v21 = vadd.f32 %v5663_v59, %v5047_v23   ;;  %v3866_v25 = vpop.f32.mrb[7].mxu1 }
0x1372   : >> { %v3885_v26 = vadd.f32 %v5667_v27, %v3866_v25   ;;  %3232 = sbr.rel (!%p3230_p6) target bundleno = 3773 (0xebd), region = 354 }
0x1373   : >> { %v6562_v59 = vmov %v3886_v21 }
0x1374   : >> { %v5050_v41 = vpop.f32.mrb[8].mxu1  ;;  %v6563_v27 = vmov %v3885_v26 }
0x1375   : >> { %v3888_v12 = vadd.f32 %v5655_v43, %v5050_v41   ;;  %v3876_v15 = vpop.f32.mrb[9].mxu1  ;;  %v4603_v27 = vld [vmem:[%s6564_s2] ss:$0 sm:$0xff] (%p3230_p6) }
0x1376   : >> { %v3887_v16 = vadd.f32 %v5659_v24, %v3876_v15   ;;  %v3896_v30 = vadd.f32 (%p3230_p6), %v4603_v27, %v3885_v26  ;;  %v3897_v58 = vadd.f32 (%p3230_p6), %v4603_v27, %v3886_v21  ;;  %v4605_v21 = vld [vmem:[%s6568_s18] ss:$0 sm:$0xff] (%p3230_p6) }
0x1377   : >> { %v6560_v43 = vmov %v3888_v12  ;;  %v3899_v28 = vadd.f32 (%p3230_p6), %v4603_v27, %v3888_v12 }
0x1378   : >> { %v6561_v24 = vmov %v3887_v16  ;;  %v3898_v31 = vadd.f32 (%p3230_p6), %v4603_v27, %v3887_v16  ;;  %v3900_v29 = vadd.f32 (%p3230_p6), %v3896_v30, %v6220_v52  ;;  %v3901_v33 = vadd.f32 (%p3230_p6), %v3897_v58, %v6218_v50 }
0x1379   : > { %v3903_v34 = vadd.f32 %v3899_v28, %v6222_v56 }
0x137a   : > { %v3902_v32 = vadd.f32 %v3898_v31, %v6224_v57  ;;  %v3906_v37 = vsel %vm1543_vm10, %v3900_v29, 0.0  ;;  %v3909_v35 = vsel %vm1543_vm10, %v3901_v33, 0.0 }
0x137b   : > { %3907 = vadd.xlane.f32.xlu0 %v3906_v37  ;;  %v3915_v36 = vsel %vm1543_vm10, %v3903_v34, 0.0  ;;  %v4125_v37 = vld [vmem:[%s6566_s22 + $0x18] sm:$0xff] }
0x137c   : > { %v3912_v38 = vsel %vm1543_vm10, %v3902_v32, 0.0 }
0x137d   : > { %3913 = vadd.xlane.f32.xlu1 %v3912_v38 }
0x137f   : > { %3910 = vadd.xlane.f32.xlu0 %v3909_v35  ;;  %v4126_v35 = vld [vmem:[%s6566_s22 + $0x20] sm:$0xff] }
0x1381   : > { %3916 = vadd.xlane.f32.xlu1 %v3915_v36  ;;  %v4127_v36 = vld [vmem:[%s6566_s22 + $0x28] sm:$0xff] }
0x1408   : > { %v3908_v39 = vpop.xlane.xlu0 %3907 }
0x1409   : > { %v3918_v1 = vmul.f32 0.03125, %v3908_v39  ;;  %v5281_v39 = vpack.c.bf16 %v4127_v36, %v4126_v35 }
0x140a   : > { %v3914_v40 = vpop.xlane.xlu1 %3913 }
0x140b   : > { %v3920_v52 = vmul.f32 0.03125, %v3914_v40  ;;  %v3922_v57 = vsub.f32 %v3900_v29, %v3918_v1  ;;  %v4128_v40 = vld [vmem:[%s6566_s22 + $0x30] sm:$0xff]  ;;  %v4129_v1 = vld [vmem:[%s6566_s22 + $0x38] sm:$0xff] }
0x140c   : > { %v3911_v42 = vpop.xlane.xlu0 %3910 }
0x140d   : > { %v3924_v50 = vsub.f32 %v3902_v32, %v3920_v52  ;;  %v3919_v14 = vmul.f32 0.03125, %v3911_v42  ;;  %v3926_v24 = vmul.f32 %v3922_v57, %v3922_v57  ;;  %v5285_v52 = vpack.c.bf16 %v4129_v1, %v4128_v40  ;;  %v4132_v42 = vld [vmem:[%s6566_s22 + $0x50] sm:$0xff]  ;;  %v4611_v40 = vld [vmem:[%s5956_s4] ss:$0 sm:$0xff] }
0x140e   : > { %v3917_v56 = vpop.xlane.xlu1 %3916 }
0x140f   : > { %v3921_v43 = vmul.f32 0.03125, %v3917_v56  ;;  %v3928_v59 = vmul.f32 %v3924_v50, %v3924_v50  ;;  %v3923_v45 = vsub.f32 %v3901_v33, %v3919_v14  ;;  %v3930_v47 = vsel %vm1543_vm10, %v3926_v24, 0.0  ;;  %v4133_v14 = vld [vmem:[%s6566_s22 + $0x58] sm:$0xff]  ;;  %v4134_v24 = vld [vmem:[%s6566_s22 + $0x60] sm:$0xff] }
0x1410   : > { %3931 = vadd.xlane.f32.xlu0 %v3930_v47  ;;  %v4137_v47 = vld [vmem:[%s6566_s22 + $0x78] sm:$0xff] }
0x1411   : > { %v3925_v46 = vsub.f32 %v3903_v34, %v3921_v43  ;;  %v3936_v48 = vsel %vm1543_vm10, %v3928_v59, 0.0  ;;  %v3927_v49 = vmul.f32 %v3923_v45, %v3923_v45  ;;  %v4124_v34 = vld [vmem:[%s6566_s22 + $0x10] sm:$0xff]  ;;  %v5293_v43 = vpack.c.bf16 %v4133_v14, %v4132_v42  ;;  %v4135_v59 = vld [vmem:[%s6566_s22 + $0x68] sm:$0xff] }
0x1412   : > { %v5277_v38 = vpack.c.bf16 %v4125_v37, %v4124_v34 }
0x1413   : > { %v3929_v51 = vmul.f32 %v3925_v46, %v3925_v46  ;;  %v3933_v53 = vsel %vm1543_vm10, %v3927_v49, 0.0  ;;  %v4606_v49 = vld [vmem:[%s6569_s26] ss:$0 sm:$0xff] }
0x1414   : > { %3937 = vadd.xlane.f32.xlu0 %v3936_v48  ;;  %3934 = vadd.xlane.f32.xlu1 %v3933_v53 }
0x1415   : > { %v3939_v54 = vsel %vm1543_vm10, %v3929_v51, 0.0  ;;  %5278 = vmatprep.subr.bf16.mxu1 %v5277_v38 }
0x1416   : > { %5280 = vmatpush3.bf16.msra.mxu1 %v5277_v38 }
0x1417   : > { %5282 = vmatprep.subr.bf16.mxu1 %v5281_v39 }
0x1418   : > { %3940 = vadd.xlane.f32.xlu1 %v3939_v54 }
0x141a   : > { %5284 = vmatpush3.bf16.msra.mxu1 %v5281_v39 }
0x141b   : > { %5286 = vmatprep.subr.bf16.mxu1 %v5285_v52 }
0x141e   : > { %5288 = vmatpush3.bf16.msra.mxu1 %v5285_v52 }
0x149d   : > { %v3932_v3 = vpop.xlane.xlu0 %3931 }
0x149e   : > { %v3942_v4 = vmul.f32 0.03125, %v3932_v3 }
0x14a0   : > { %v3946_v5 = vadd.f32 1e-05, %v3942_v4 }
0x14a1   : > { %v3935_v44 = vpop.xlane.xlu1 %3934  ;;  %v3938_v6 = vpop.xlane.xlu0 %3937 }
0x14a2   : > { %5537 = vrsqrt.f32 %v3946_v5  ;;  %v3943_v7 = vmul.f32 0.03125, %v3935_v44  ;;  %v3944_v13 = vmul.f32 0.03125, %v3938_v6 }
0x14a4   : > { %v3947_v8 = vadd.f32 1e-05, %v3943_v7  ;;  %v3948_v11 = vadd.f32 1e-05, %v3944_v13 }
0x14a5   : > { %v3941_v9 = vpop.xlane.xlu1 %3940 }
0x14a6   : > { %5539 = vrsqrt.f32 %v3947_v8  ;;  %v3945_v10 = vmul.f32 0.03125, %v3941_v9 }
0x14a7   : > { %5541 = vrsqrt.f32 %v3948_v11 }
0x14a8   : > { %v3949_v18 = vadd.f32 1e-05, %v3945_v10 }
0x14aa   : > { %5543 = vrsqrt.f32 %v3949_v18 }
0x14ac   : > { %v5538_v19 = vpop.eup %5537 }
0x14ad   : > { %v3954_v23 = vmul.f32 %v5538_v19, %v3922_v57  ;;  %v4130_v57 = vld [vmem:[%s6566_s22 + $0x40] sm:$0xff] }
0x14af   : > { %v3964_v25 = vmul.f32 %v4604_v20, %v3954_v23 }
0x14b0   : > { %v5540_v26 = vpop.eup %5539 }
0x14b1   : > { %v5542_v41 = vpop.eup %5541  ;;  %v6434_v12 = vadd.f32 %v4605_v21, %v3964_v25  ;;  %v3955_v15 = vmul.f32 %v5540_v26, %v3923_v45  ;;  %v5297_v45 = vpack.c.bf16 %v4135_v59, %v4134_v24 }
0x14b2   : > { %v3956_v16 = vmul.f32 %v5542_v41, %v3924_v50  ;;  %v4131_v50 = vld [vmem:[%s6566_s22 + $0x48] sm:$0xff] }
0x14b3   : > { %5059 = vmatprep.mubr.msk.f32.mxu0 %vm1543_vm10, %v6434_v12  ;;  %v3965_v27 = vmul.f32 %v4604_v20, %v3955_v15  ;;  %v5289_v56 = vpack.c.bf16 %v4131_v50, %v4130_v57 }
0x14b4   : > { %v5544_v30 = vpop.eup %5543  ;;  %v3966_v31 = vmul.f32 %v4604_v20, %v3956_v16 }
0x14b5   : > { %v6438_v58 = vadd.f32 %v4605_v21, %v3965_v27  ;;  %v3957_v28 = vmul.f32 %v5544_v30, %v3925_v46  ;;  %5290 = vmatprep.subr.bf16.mxu1 %v5289_v56  ;;  %v4136_v46 = vld [vmem:[%s6566_s22 + $0x70] sm:$0xff] }
0x14b6   : > { %v6440_v29 = vadd.f32 %v4605_v21, %v3966_v31  ;;  %5292 = vmatpush3.bf16.msra.mxu1 %v5289_v56  ;;  %v5301_v48 = vpack.c.bf16 %v4137_v47, %v4136_v46 }
0x14b7   : > { %5060 = vmatmul.mubr.msk.f32.vlgmr.msra.gmra.mrb[0].mxu0 %vm1543_vm10, %v6438_v58  ;;  %v3967_v32 = vmul.f32 %v4604_v20, %v3957_v28  ;;  %5294 = vmatprep.subr.bf16.mxu1 %v5293_v43 }
0x14b8   : > { %5062 = vmatprep.mubr.msk.f32.mxu0 %vm1543_vm10, %v6440_v29 }
0x14b9   : > { %v6446_v33 = vadd.f32 %v4605_v21, %v3967_v32 }
0x14ba   : > { %5296 = vmatpush3.bf16.msra.mxu1 %v5293_v43 }
0x14bb   : > { %5063 = vmatmul.mubr.msk.f32.gmra.mrb[2].mxu0 %vm1543_vm10, %v6446_v33  ;;  %5298 = vmatprep.subr.bf16.mxu1 %v5297_v45 }
0x14be   : > { %5300 = vmatpush3.bf16.msra.mxu1 %v5297_v45 }
0x14bf   : > { %5302 = vmatprep.subr.bf16.mxu1 %v5301_v48 }
0x14c2   : > { %5304 = vmatpush3.bf16.msra.mxu1 %v5301_v48 }
0x158a   : > { %v5061_v51 = vpop.f32.mrb[0].mxu0 }
0x158b   : > { %v4073_v53 = vadd.f32 %v5061_v51, %v4606_v49  ;;  %v4067_v54 = vpop.f32.mrb[1].mxu0 }
0x158c   : > { %v4068_v55 = vadd.f32 %v4606_v49, %v4067_v54 }
0x158d   : > { %v4091_v60 = vmul.f32 0.044715, %v4073_v53  ;;  %v4087_v27 = vmul.f32 0.5, %v4073_v53 }
0x158e   : > { %v5064_v61 = vpop.f32.mrb[2].mxu0  ;;  %v4090_v22 = vmul.f32 0.044715, %v4068_v55  ;;  %v4086_v15 = vmul.f32 0.5, %v4068_v55 }
0x158f   : > { %v4095_v17 = vmul.f32 %v4091_v60, %v4073_v53  ;;  %v4083_v62 = vadd.f32 %v5064_v61, %v4606_v49  ;;  %v4077_v63 = vpop.f32.mrb[3].mxu0 }
0x1590   : > { %v4078_v0 = vadd.f32 %v4606_v49, %v4077_v63  ;;  %v4094_v2 = vmul.f32 %v4090_v22, %v4068_v55 }
0x1591   : > { %v4093_v3 = vmul.f32 0.044715, %v4083_v62  ;;  %v4099_v4 = vmul.f32 %v4095_v17, %v4073_v53  ;;  %v4089_v35 = vmul.f32 0.5, %v4083_v62 }
0x1592   : > { %v4092_v5 = vmul.f32 0.044715, %v4078_v0  ;;  %v4098_v44 = vmul.f32 %v4094_v2, %v4068_v55  ;;  %v4088_v37 = vmul.f32 0.5, %v4078_v0 }
0x1593   : > { %v4097_v6 = vmul.f32 %v4093_v3, %v4083_v62  ;;  %v4103_v7 = vadd.f32 %v4099_v4, %v4073_v53 }
0x1594   : > { %v4096_v13 = vmul.f32 %v4092_v5, %v4078_v0  ;;  %v4102_v8 = vadd.f32 %v4098_v44, %v4068_v55 }
0x1595   : > { %v4107_v11 = vmul.f32 0.7978846, %v4103_v7  ;;  %v4101_v9 = vmul.f32 %v4097_v6, %v4083_v62 }
0x1596   : > { %v4106_v10 = vmul.f32 0.7978846, %v4102_v8  ;;  %v4100_v18 = vmul.f32 %v4096_v13, %v4078_v0 }
0x1597   : > { %5545 = vtanh.f32 %v4107_v11  ;;  %v4105_v19 = vadd.f32 %v4101_v9, %v4083_v62 }
0x1598   : > { %5547 = vtanh.f32 %v4106_v10  ;;  %v4104_v20 = vadd.f32 %v4100_v18, %v4078_v0 }
0x1599   : > { %v4109_v23 = vmul.f32 0.7978846, %v4105_v19 }
0x159a   : > { %v4108_v21 = vmul.f32 0.7978846, %v4104_v20 }
0x159b   : > { %5549 = vtanh.f32 %v4109_v23 }
0x159c   : > { %5551 = vtanh.f32 %v4108_v21 }
0x15a1   : > { %v5546_v25 = vpop.eup %5545 }
0x15a2   : > { %v5548_v26 = vpop.eup %5547  ;;  %v4115_v41 = vadd.f32 1.0, %v5546_v25 }
0x15a3   : > { %v4114_v16 = vadd.f32 1.0, %v5548_v26 }
0x15a4   : > { %v4119_v32 = vmul.f32 %v4115_v41, %v4087_v27  ;;  %v4612_v41 = vld [vmem:[%s5961_s12] ss:$0 sm:$0xff] }
0x15a5   : > { %v5550_v30 = vpop.eup %5549  ;;  %v4118_v31 = vmul.f32 %v4114_v16, %v4086_v15  ;;  %v4613_v27 = vld [vmem:[%s5966_s20] ss:$0 sm:$0xff] }
0x15a6   : > { %v5552_v28 = vpop.eup %5551  ;;  %v4117_v34 = vadd.f32 1.0, %v5550_v30 }
0x15a7   : > { %5097 = vmatprep.mubr.f32.mxu1 %v4118_v31  ;;  %v4116_v38 = vadd.f32 1.0, %v5552_v28 }
0x15a8   : > { %5098 = vmatmul.mubr.f32.vlgmr.msra.gmra.mrb[0].mxu1 %v4119_v32  ;;  %v4121_v39 = vmul.f32 %v4117_v34, %v4089_v35 }
0x15a9   : > { %v4120_v36 = vmul.f32 %v4116_v38, %v4088_v37 }
0x15ab   : > { %5100 = vmatprep.mubr.f32.mxu1 %v4120_v36 }
0x15ac   : > { %5101 = vmatmul.mubr.f32.gmra.mrb[2].mxu1 %v4121_v39 }
0x167b   : > { %v5099_v1 = vpop.f32.mrb[0].mxu1 }
0x167c   : > { %v4217_v52 = vadd.f32 %v5099_v1, %v4611_v40  ;;  %v4211_v57 = vpop.f32.mrb[1].mxu1 }
0x167d   : > { %v4212_v50 = vadd.f32 %v4611_v40, %v4211_v57 }
0x167e   : > { %v4231_v42 = vadd.f32 %v4217_v52, %v6438_v58 }
0x167f   : > { %v5102_v56 = vpop.f32.mrb[2].mxu1  ;;  %v4230_v14 = vadd.f32 %v4212_v50, %v6434_v12 }
0x1680   : > { %v4227_v43 = vadd.f32 %v5102_v56, %v4611_v40  ;;  %v4221_v24 = vpop.f32.mrb[3].mxu1  ;;  %v4239_v59 = vsel %vm1543_vm10, %v4231_v42, 0.0 }
0x1681   : > { %v4222_v45 = vadd.f32 %v4611_v40, %v4221_v24  ;;  %4240 = vadd.xlane.f32.xlu1 %v4239_v59  ;;  %v4236_v46 = vsel %vm1543_vm10, %v4230_v14, 0.0 }
0x1682   : > { %4237 = vadd.xlane.f32.xlu0 %v4236_v46  ;;  %v4233_v47 = vadd.f32 %v4227_v43, %v6446_v33 }
0x1683   : > { %v4232_v48 = vadd.f32 %v4222_v45, %v6440_v29 }
0x1684   : > { %v4245_v49 = vsel %vm1543_vm10, %v4233_v47, 0.0 }
0x1685   : > { %4246 = vadd.xlane.f32.xlu1 %v4245_v49  ;;  %v4242_v58 = vsel %vm1543_vm10, %v4232_v48, 0.0 }
0x1686   : > { %4243 = vadd.xlane.f32.xlu0 %v4242_v58 }
0x170e   : > { %v4241_v12 = vpop.xlane.xlu1 %4240 }
0x170f   : > { %v4249_v51 = vmul.f32 0.03125, %v4241_v12  ;;  %v4238_v53 = vpop.xlane.xlu0 %4237 }
0x1710   : > { %v4248_v54 = vmul.f32 0.03125, %v4238_v53 }
0x1711   : > { %v4253_v55 = vsub.f32 %v4231_v42, %v4249_v51 }
0x1712   : > { %v4252_v60 = vsub.f32 %v4230_v14, %v4248_v54  ;;  %v4247_v61 = vpop.xlane.xlu1 %4246 }
0x1713   : > { %v4251_v22 = vmul.f32 0.03125, %v4247_v61  ;;  %v4244_v17 = vpop.xlane.xlu0 %4243  ;;  %v4257_v62 = vmul.f32 %v4253_v55, %v4253_v55 }
0x1714   : > { %v4250_v63 = vmul.f32 0.03125, %v4244_v17  ;;  %v4256_v33 = vmul.f32 %v4252_v60, %v4252_v60 }
0x1715   : > { %v4255_v0 = vsub.f32 %v4233_v47, %v4251_v22  ;;  %v4263_v29 = vsel %vm1543_vm10, %v4257_v62, 0.0 }
0x1716   : > { %v4254_v2 = vsub.f32 %v4232_v48, %v4250_v63  ;;  %4264 = vadd.xlane.f32.xlu1 %v4263_v29  ;;  %v4260_v3 = vsel %vm1543_vm10, %v4256_v33, 0.0 }
0x1717   : > { %4261 = vadd.xlane.f32.xlu0 %v4260_v3  ;;  %v4259_v4 = vmul.f32 %v4255_v0, %v4255_v0 }
0x1718   : > { %v4258_v5 = vmul.f32 %v4254_v2, %v4254_v2 }
0x1719   : > { %v4269_v44 = vsel %vm1543_vm10, %v4259_v4, 0.0 }
0x171a   : > { %4270 = vadd.xlane.f32.xlu1 %v4269_v44  ;;  %v4266_v6 = vsel %vm1543_vm10, %v4258_v5, 0.0 }
0x171b   : > { %4267 = vadd.xlane.f32.xlu0 %v4266_v6 }
0x17a3   : > { %v4265_v7 = vpop.xlane.xlu1 %4264 }
0x17a4   : > { %v4273_v13 = vmul.f32 0.03125, %v4265_v7  ;;  %v4262_v8 = vpop.xlane.xlu0 %4261 }
0x17a5   : > { %v4272_v11 = vmul.f32 0.03125, %v4262_v8 }
0x17a6   : > { %v4277_v9 = vadd.f32 1e-05, %v4273_v13 }
0x17a7   : > { %v4276_v10 = vadd.f32 1e-05, %v4272_v11  ;;  %v4271_v18 = vpop.xlane.xlu1 %4270 }
0x17a8   : > { %5553 = vrsqrt.f32 %v4277_v9  ;;  %v4275_v19 = vmul.f32 0.03125, %v4271_v18  ;;  %v4268_v20 = vpop.xlane.xlu0 %4267 }
0x17a9   : > { %5555 = vrsqrt.f32 %v4276_v10  ;;  %v4274_v23 = vmul.f32 0.03125, %v4268_v20 }
0x17aa   : > { %v4279_v21 = vadd.f32 1e-05, %v4275_v19 }
0x17ab   : > { %v4278_v25 = vadd.f32 1e-05, %v4274_v23 }
0x17ac   : > { %5557 = vrsqrt.f32 %v4279_v21 }
0x17ad   : > { %5559 = vrsqrt.f32 %v4278_v25 }
0x17b2   : > { %v5554_v26 = vpop.eup %5553 }
0x17b3   : > { %v5556_v15 = vpop.eup %5555  ;;  %v4285_v16 = vmul.f32 %v5554_v26, %v4253_v55 }
0x17b4   : > { %v4284_v30 = vmul.f32 %v5556_v15, %v4252_v60 }
0x17b5   : > { %v4295_v31 = vmul.f32 %v4612_v41, %v4285_v16 }
0x17b6   : > { %v5558_v28 = vpop.eup %5557  ;;  %v4294_v32 = vmul.f32 %v4612_v41, %v4284_v30 }
0x17b7   : > { %v5560_v34 = vpop.eup %5559  ;;  %v4305_v37 = vadd.f32 %v4613_v27, %v4295_v31  ;;  %v4287_v38 = vmul.f32 %v5558_v28, %v4255_v0 }
0x17b8   : > { %v4304_v35 = vadd.f32 %v4613_v27, %v4294_v32  ;;  %v4286_v36 = vmul.f32 %v5560_v34, %v4254_v2 }
0x17b9   : > { %4309 = vst.msk [vmem:[%s5993_s10 + $0x8] sm:$0xff] %vm1543_vm10, %v4305_v37  ;;  %v4297_v39 = vmul.f32 %v4612_v41, %v4287_v38 }
0x17ba   : > { %4308 = vst.msk [vmem:[%s5993_s10] sm:$0xff] %vm1543_vm10, %v4304_v35  ;;  %v4296_v40 = vmul.f32 %v4612_v41, %v4286_v36 }
0x17bb   : > { %v4307_v1 = vadd.f32 %v4613_v27, %v4297_v39 }
0x17bc   : > { %v4306_v52 = vadd.f32 %v4613_v27, %v4296_v40 }
0x17bd   : > { %4311 = vst.msk [vmem:[%s5993_s10 + $0x18] sm:$0xff] %vm1543_vm10, %v4307_v1 }
0x17be   : > { %4310 = vst.msk [vmem:[%s5993_s10 + $0x10] sm:$0xff] %vm1543_vm10, %v4306_v52 }
0x17bf PF: > { %s107_s28 = sadd.s32 1, %s5619_s28  }
0x17c0   : > { %p104_p7 = scmp.ge.s32.totalorder %s107_s28, 4  }
0x17c2   :  { %106 = sbr.rel (!%p104_p7) target bundleno = 97 (0x61), region = 365 }

</bundles_post_ra>
